<compile_context>
chip_gen: v7x
topology: tpu7x:2x2x1
jax: 0.10.0
libtpu: 0.0.40
codegen_flags: <defaults>
</compile_context>

<pallas_src>
import functools

import jax
import jax.numpy as jnp
from jax.experimental import pallas as pl
from jax.experimental.pallas import tpu as pltpu  # noqa: F401  (kept for TPU-specific tuning hooks)

LANE = 128          # f32 lane width
SUBLANE = 8         # f32 sublane height
USE_BF16_MXU = True  # cast matmul operands to bf16; accumulate in f32


def _round_up(n, m):
    return ((n + m - 1) // m) * m


def _mm(a, b):
    """MXU matmul with f32 accumulation; optional bf16 operand cast."""
    if USE_BF16_MXU:
        a = a.astype(jnp.bfloat16)
        b = b.astype(jnp.bfloat16)
    return jnp.dot(a, b, preferred_element_type=jnp.float32)


# ---------------------------------------------------------------------------
# Fused forward-pass kernel: everything lives in VMEM for the whole pass.
# ---------------------------------------------------------------------------
def _fused_forward_kernel(
    x_ref, adj_ref, mask_ref,
    w1_ref, b1_ref,
    c1w_ref, c1b_ref,
    c2w_ref, c2b_ref,
    c3w_ref, c3b_ref,
    bng_ref, bnb_ref,
    w2_ref, b2_ref,
    w3_ref, b3_ref,
    o_ref,
    *, n_real,
):
    adj = adj_ref[...]       # (Np, Np) row-normalized ("mean"); padded rows/cols are zero
    mask = mask_ref[...]     # (Np, 1)  1.0 for real nodes, 0.0 for padding

    # linmaps1 (singleton domains) == identity.
    # lin1 + relu   (Dropout p=0.5 is eval-mode identity)
    h = _mm(x_ref[...], w1_ref[...]) + b1_ref[...]
    h = jnp.maximum(h, 0.0) * mask   # zero padded rows so they never leak into stats

    # ConvolutionalLayer_1P x3:  relu([x | mean_{j in N(i)} x_j] @ [Ws;Wa] + b)
    def conv1p(h, w_ref, b_ref):
        agg = _mm(adj, h)                               # neighbor mean (adj resident in VMEM)
        cat = jnp.concatenate([h, agg], axis=1)         # (Np, 2*C_pad)
        y = _mm(cat, w_ref[...]) + b_ref[...]           # single merged MXU matmul
        return jnp.maximum(y, 0.0) * mask

    h = conv1p(h, c1w_ref, c1b_ref)
    h = conv1p(h, c2w_ref, c2b_ref)
    h = conv1p(h, c3w_ref, c3b_ref)

    # BatchNorm over nodes (batch statistics, single-pass sum / sum-of-squares).
    # Padded rows are zero (masked above) so plain sums already give real-node stats.
    inv_n = jnp.float32(1.0 / n_real)
    s = jnp.sum(h, axis=0, keepdims=True)
    ss = jnp.sum(h * h, axis=0, keepdims=True)
    mean = s * inv_n
    var = ss * inv_n - mean * mean
    h = (h - mean) * jax.lax.rsqrt(var + 1e-5) * bng_ref[...] + bnb_ref[...]

    # lin2 + relu (dropout identity), then lin3.  linmaps0 == identity.
    h = jnp.maximum(_mm(h, w2_ref[...]) + b2_ref[...], 0.0)
    h = _mm(h, w3_ref[...]) + b3_ref[...]

    o_ref[...] = h.astype(o_ref.dtype)


# ---------------------------------------------------------------------------
# pallas_call wrapper (grid-less: whole arrays in VMEM, no pipeline scaffold)
# ---------------------------------------------------------------------------
def make_forward(n, n_pad, ncls, ncls_pad):
    kern = functools.partial(_fused_forward_kernel, n_real=float(n))

    @jax.jit
    def forward(params, x_pad, adj, mask):
        out_pad = pl.pallas_call(
            kern,
            out_shape=jax.ShapeDtypeStruct((n_pad, ncls_pad), jnp.float32),
        )(
            x_pad, adj, mask,
            params["w1"], params["b1"],
            params["c1_w"], params["c1_b"],
            params["c2_w"], params["c2_b"],
            params["c3_w"], params["c3_b"],
            params["bn_gamma"], params["bn_beta"],
            params["w2"], params["b2"],
            params["w3"], params["b3"],
        )
        return out_pad[:n, :ncls]

    return forward


# ---------------------------------------------------------------------------
# Glue: static per-graph preprocessing (hoisted out of the hot path), params.
# ---------------------------------------------------------------------------
def build_adj_mean(edge_index, n, n_pad):
    """Dense row-normalized ("mean") adjacency, zero-padded to n_pad."""
    src, dst = edge_index
    a = jnp.zeros((n_pad, n_pad), jnp.float32).at[dst, src].set(1.0)
    a = jnp.maximum(a, a.T)                               # undirected graph
    deg = jnp.maximum(a.sum(axis=1, keepdims=True), 1.0)
    return a / deg                                        # padded rows stay zero


def pad2d(a, rows, cols):
    return jnp.zeros((rows, cols), a.dtype).at[: a.shape[0], : a.shape[1]].set(a)


def init_params(key, num_features, emb, hid, ncls):
    f_pad = _round_up(num_features, LANE)
    emb_pad = _round_up(emb, LANE)
    hid_pad = _round_up(hid, LANE)
    ncls_pad = _round_up(ncls, LANE)

    ks = jax.random.split(key, 9)

    def dense(k, fin, fout):
        return jax.random.normal(k, (fin, fout), jnp.float32) * jnp.sqrt(2.0 / fin)

    def merged_conv_w(k1, k2, cin, cout, cin_pad, cout_pad):
        # Stack [W_self ; W_agg] to match the in-kernel [x | agg] concat layout.
        w = jnp.zeros((2 * cin_pad, cout_pad), jnp.float32)
        w = w.at[:cin, :cout].set(dense(k1, cin, cout))
        w = w.at[cin_pad:cin_pad + cin, :cout].set(dense(k2, cin, cout))
        return w

    zeros_b = lambda c_pad: jnp.zeros((1, c_pad), jnp.float32)

    return {
        "w1": pad2d(dense(ks[0], num_features, emb), f_pad, emb_pad),
        "b1": zeros_b(emb_pad),
        "c1_w": merged_conv_w(ks[1], ks[2], emb, hid, emb_pad, hid_pad),
        "c1_b": zeros_b(hid_pad),
        "c2_w": merged_conv_w(ks[3], ks[4], hid, hid, hid_pad, hid_pad),
        "c2_b": zeros_b(hid_pad),
        "c3_w": merged_conv_w(ks[5], ks[6], hid, hid, hid_pad, hid_pad),
        "c3_b": zeros_b(hid_pad),
        "bn_gamma": jnp.zeros((1, hid_pad), jnp.float32).at[:, :hid].set(1.0),
        "bn_beta": zeros_b(hid_pad),
        "w2": pad2d(dense(ks[7], hid, ncls), hid_pad, ncls_pad),
        "b2": zeros_b(ncls_pad),
        "w3": pad2d(dense(ks[8], ncls, ncls), ncls_pad, ncls_pad),
        "b3": zeros_b(ncls_pad),
    }


if __name__ == "__main__":
    # Wisconsin-like but small: 251 nodes, 128 features, 5 classes, hidden 32.
    N, NUM_FEATURES, EMB, HID, NUM_CLASSES, E = 251, 128, 32, 32, 5, 1024

    N_PAD = _round_up(N, SUBLANE)                 # 251 -> 256
    F_PAD = _round_up(NUM_FEATURES, LANE)
    NCLS_PAD = _round_up(NUM_CLASSES, LANE)

    key = jax.random.PRNGKey(0)
    kx, ks, kd, kp = jax.random.split(key, 4)

    x = jax.random.uniform(kx, (N, NUM_FEATURES), jnp.float32)
    x = x / jnp.maximum(x.sum(axis=-1, keepdims=True), 1e-12)   # NormalizeFeatures()

    src = jax.random.randint(ks, (E,), 0, N)
    dst = jax.random.randint(kd, (E,), 0, N)
    edge_index = jnp.stack([src, dst]).astype(jnp.int32)

    # Static per-graph preprocessing, hoisted out of (and cached across) forward calls.
    adj = build_adj_mean(edge_index, N, N_PAD)
    x_pad = pad2d(x, N_PAD, F_PAD)
    node_mask = jnp.zeros((N_PAD, 1), jnp.float32).at[:N, :].set(1.0)

    params = init_params(kp, NUM_FEATURES, EMB, HID, NUM_CLASSES)
    forward = make_forward(N, N_PAD, NUM_CLASSES, NCLS_PAD)

    out = forward(params, x_pad, adj, node_mask)
    jax.block_until_ready(out)
    assert out.shape == (N, NUM_CLASSES)
    assert bool(jnp.all(jnp.isfinite(out)))
    print("KERNEL_OK")
</pallas_src>

<mosaic_0001>
module attributes {stable_mosaic.version = 11 : i64} {
  func.func @_fused_forward_kernel(%arg0: memref<256x128xf32, #tpu.memory_space<vmem>>, %arg1: memref<256x256xf32, #tpu.memory_space<vmem>>, %arg2: memref<256x1xf32, #tpu.memory_space<vmem>>, %arg3: memref<128x128xf32, #tpu.memory_space<vmem>>, %arg4: memref<1x128xf32, #tpu.memory_space<vmem>>, %arg5: memref<256x128xf32, #tpu.memory_space<vmem>>, %arg6: memref<1x128xf32, #tpu.memory_space<vmem>>, %arg7: memref<256x128xf32, #tpu.memory_space<vmem>>, %arg8: memref<1x128xf32, #tpu.memory_space<vmem>>, %arg9: memref<256x128xf32, #tpu.memory_space<vmem>>, %arg10: memref<1x128xf32, #tpu.memory_space<vmem>>, %arg11: memref<1x128xf32, #tpu.memory_space<vmem>>, %arg12: memref<1x128xf32, #tpu.memory_space<vmem>>, %arg13: memref<128x128xf32, #tpu.memory_space<vmem>>, %arg14: memref<1x128xf32, #tpu.memory_space<vmem>>, %arg15: memref<128x128xf32, #tpu.memory_space<vmem>>, %arg16: memref<1x128xf32, #tpu.memory_space<vmem>>, %arg17: memref<256x128xf32, #tpu.memory_space<vmem>>) attributes {dimension_semantics = [], scalar_prefetch = 0 : i64, scratch_operands = 0 : i64, tpu.core_type = #tpu.core_type<tc>} {
    %c0 = arith.constant 0 : index
    %c0_0 = arith.constant 0 : index
    %0 = vector.load %arg1[%c0, %c0_0] : memref<256x256xf32, #tpu.memory_space<vmem>>, vector<256x256xf32>
    %c0_1 = arith.constant 0 : index
    %c0_2 = arith.constant 0 : index
    %1 = vector.load %arg2[%c0_1, %c0_2] : memref<256x1xf32, #tpu.memory_space<vmem>>, vector<256x1xf32>
    %c0_3 = arith.constant 0 : index
    %c0_4 = arith.constant 0 : index
    %2 = vector.load %arg0[%c0_3, %c0_4] : memref<256x128xf32, #tpu.memory_space<vmem>>, vector<256x128xf32>
    %c0_5 = arith.constant 0 : index
    %c0_6 = arith.constant 0 : index
    %3 = vector.load %arg3[%c0_5, %c0_6] : memref<128x128xf32, #tpu.memory_space<vmem>>, vector<128x128xf32>
    %4 = arith.truncf %2 : vector<256x128xf32> to vector<256x128xbf16>
    %5 = arith.truncf %3 : vector<128x128xf32> to vector<128x128xbf16>
    %cst = arith.constant dense<0.000000e+00> : vector<256x128xf32>
    %6 = tpu.matmul %4, %5, %cst {dimension_numbers = #tpu.dot_dimension_numbers<[1], [0], [0], [1], [0, 0, 1, 1], [], []>} : vector<256x128xbf16>, vector<128x128xbf16>, vector<256x128xf32> -> vector<256x128xf32>
    %c0_7 = arith.constant 0 : index
    %c0_8 = arith.constant 0 : index
    %7 = vector.load %arg4[%c0_7, %c0_8] : memref<1x128xf32, #tpu.memory_space<vmem>>, vector<1x128xf32>
    %8 = vector.broadcast %7 : vector<1x128xf32> to vector<256x128xf32>
    %9 = arith.addf %6, %8 : vector<256x128xf32>
    %cst_9 = arith.constant 0.000000e+00 : f32
    %10 = vector.broadcast %cst_9 : f32 to vector<256x128xf32>
    %11 = arith.maximumf %9, %10 : vector<256x128xf32>
    %12 = vector.broadcast %1 : vector<256x1xf32> to vector<256x128xf32>
    %13 = arith.mulf %11, %12 : vector<256x128xf32>
    %14 = arith.truncf %0 : vector<256x256xf32> to vector<256x256xbf16>
    %15 = arith.truncf %13 : vector<256x128xf32> to vector<256x128xbf16>
    %cst_10 = arith.constant dense<0.000000e+00> : vector<256x128xf32>
    %16 = tpu.matmul %14, %15, %cst_10 {dimension_numbers = #tpu.dot_dimension_numbers<[1], [0], [0], [1], [0, 0, 1, 1], [], []>} : vector<256x256xbf16>, vector<256x128xbf16>, vector<256x128xf32> -> vector<256x128xf32>
    %17 = tpu.concatenate %13, %16 in 1 : vector<256x128xf32>, vector<256x128xf32> -> vector<256x256xf32>
    %c0_11 = arith.constant 0 : index
    %c0_12 = arith.constant 0 : index
    %18 = vector.load %arg5[%c0_11, %c0_12] : memref<256x128xf32, #tpu.memory_space<vmem>>, vector<256x128xf32>
    %19 = arith.truncf %17 : vector<256x256xf32> to vector<256x256xbf16>
    %20 = arith.truncf %18 : vector<256x128xf32> to vector<256x128xbf16>
    %cst_13 = arith.constant dense<0.000000e+00> : vector<256x128xf32>
    %21 = tpu.matmul %19, %20, %cst_13 {dimension_numbers = #tpu.dot_dimension_numbers<[1], [0], [0], [1], [0, 0, 1, 1], [], []>} : vector<256x256xbf16>, vector<256x128xbf16>, vector<256x128xf32> -> vector<256x128xf32>
    %c0_14 = arith.constant 0 : index
    %c0_15 = arith.constant 0 : index
    %22 = vector.load %arg6[%c0_14, %c0_15] : memref<1x128xf32, #tpu.memory_space<vmem>>, vector<1x128xf32>
    %23 = vector.broadcast %22 : vector<1x128xf32> to vector<256x128xf32>
    %24 = arith.addf %21, %23 : vector<256x128xf32>
    %cst_16 = arith.constant 0.000000e+00 : f32
    %25 = vector.broadcast %cst_16 : f32 to vector<256x128xf32>
    %26 = arith.maximumf %24, %25 : vector<256x128xf32>
    %27 = vector.broadcast %1 : vector<256x1xf32> to vector<256x128xf32>
    %28 = arith.mulf %26, %27 : vector<256x128xf32>
    %29 = arith.truncf %0 : vector<256x256xf32> to vector<256x256xbf16>
    %30 = arith.truncf %28 : vector<256x128xf32> to vector<256x128xbf16>
    %cst_17 = arith.constant dense<0.000000e+00> : vector<256x128xf32>
    %31 = tpu.matmul %29, %30, %cst_17 {dimension_numbers = #tpu.dot_dimension_numbers<[1], [0], [0], [1], [0, 0, 1, 1], [], []>} : vector<256x256xbf16>, vector<256x128xbf16>, vector<256x128xf32> -> vector<256x128xf32>
    %32 = tpu.concatenate %28, %31 in 1 : vector<256x128xf32>, vector<256x128xf32> -> vector<256x256xf32>
    %c0_18 = arith.constant 0 : index
    %c0_19 = arith.constant 0 : index
    %33 = vector.load %arg7[%c0_18, %c0_19] : memref<256x128xf32, #tpu.memory_space<vmem>>, vector<256x128xf32>
    %34 = arith.truncf %32 : vector<256x256xf32> to vector<256x256xbf16>
    %35 = arith.truncf %33 : vector<256x128xf32> to vector<256x128xbf16>
    %cst_20 = arith.constant dense<0.000000e+00> : vector<256x128xf32>
    %36 = tpu.matmul %34, %35, %cst_20 {dimension_numbers = #tpu.dot_dimension_numbers<[1], [0], [0], [1], [0, 0, 1, 1], [], []>} : vector<256x256xbf16>, vector<256x128xbf16>, vector<256x128xf32> -> vector<256x128xf32>
    %c0_21 = arith.constant 0 : index
    %c0_22 = arith.constant 0 : index
    %37 = vector.load %arg8[%c0_21, %c0_22] : memref<1x128xf32, #tpu.memory_space<vmem>>, vector<1x128xf32>
    %38 = vector.broadcast %37 : vector<1x128xf32> to vector<256x128xf32>
    %39 = arith.addf %36, %38 : vector<256x128xf32>
    %cst_23 = arith.constant 0.000000e+00 : f32
    %40 = vector.broadcast %cst_23 : f32 to vector<256x128xf32>
    %41 = arith.maximumf %39, %40 : vector<256x128xf32>
    %42 = vector.broadcast %1 : vector<256x1xf32> to vector<256x128xf32>
    %43 = arith.mulf %41, %42 : vector<256x128xf32>
    %44 = arith.truncf %0 : vector<256x256xf32> to vector<256x256xbf16>
    %45 = arith.truncf %43 : vector<256x128xf32> to vector<256x128xbf16>
    %cst_24 = arith.constant dense<0.000000e+00> : vector<256x128xf32>
    %46 = tpu.matmul %44, %45, %cst_24 {dimension_numbers = #tpu.dot_dimension_numbers<[1], [0], [0], [1], [0, 0, 1, 1], [], []>} : vector<256x256xbf16>, vector<256x128xbf16>, vector<256x128xf32> -> vector<256x128xf32>
    %47 = tpu.concatenate %43, %46 in 1 : vector<256x128xf32>, vector<256x128xf32> -> vector<256x256xf32>
    %c0_25 = arith.constant 0 : index
    %c0_26 = arith.constant 0 : index
    %48 = vector.load %arg9[%c0_25, %c0_26] : memref<256x128xf32, #tpu.memory_space<vmem>>, vector<256x128xf32>
    %49 = arith.truncf %47 : vector<256x256xf32> to vector<256x256xbf16>
    %50 = arith.truncf %48 : vector<256x128xf32> to vector<256x128xbf16>
    %cst_27 = arith.constant dense<0.000000e+00> : vector<256x128xf32>
    %51 = tpu.matmul %49, %50, %cst_27 {dimension_numbers = #tpu.dot_dimension_numbers<[1], [0], [0], [1], [0, 0, 1, 1], [], []>} : vector<256x256xbf16>, vector<256x128xbf16>, vector<256x128xf32> -> vector<256x128xf32>
    %c0_28 = arith.constant 0 : index
    %c0_29 = arith.constant 0 : index
    %52 = vector.load %arg10[%c0_28, %c0_29] : memref<1x128xf32, #tpu.memory_space<vmem>>, vector<1x128xf32>
    %53 = vector.broadcast %52 : vector<1x128xf32> to vector<256x128xf32>
    %54 = arith.addf %51, %53 : vector<256x128xf32>
    %cst_30 = arith.constant 0.000000e+00 : f32
    %55 = vector.broadcast %cst_30 : f32 to vector<256x128xf32>
    %56 = arith.maximumf %54, %55 : vector<256x128xf32>
    %57 = vector.broadcast %1 : vector<256x1xf32> to vector<256x128xf32>
    %58 = arith.mulf %56, %57 : vector<256x128xf32>
    %cst_31 = arith.constant dense<0.000000e+00> : vector<128xf32>
    %59 = vector.multi_reduction <add>, %58, %cst_31 [0] : vector<256x128xf32> to vector<128xf32>
    %60 = vector.shape_cast %59 : vector<128xf32> to vector<1x128xf32>
    %61 = arith.mulf %58, %58 : vector<256x128xf32>
    %cst_32 = arith.constant dense<0.000000e+00> : vector<128xf32>
    %62 = vector.multi_reduction <add>, %61, %cst_32 [0] : vector<256x128xf32> to vector<128xf32>
    %63 = vector.shape_cast %62 : vector<128xf32> to vector<1x128xf32>
    %cst_33 = arith.constant 0.00398406386 : f32
    %64 = vector.broadcast %cst_33 : f32 to vector<1x128xf32>
    %65 = arith.mulf %60, %64 : vector<1x128xf32>
    %cst_34 = arith.constant 0.00398406386 : f32
    %66 = vector.broadcast %cst_34 : f32 to vector<1x128xf32>
    %67 = arith.mulf %63, %66 : vector<1x128xf32>
    %68 = arith.mulf %65, %65 : vector<1x128xf32>
    %69 = arith.subf %67, %68 : vector<1x128xf32>
    %70 = vector.broadcast %65 : vector<1x128xf32> to vector<256x128xf32>
    %71 = arith.subf %58, %70 : vector<256x128xf32>
    %cst_35 = arith.constant 9.99999974E-6 : f32
    %72 = vector.broadcast %cst_35 : f32 to vector<1x128xf32>
    %73 = arith.addf %69, %72 : vector<1x128xf32>
    %74 = math.rsqrt %73 : vector<1x128xf32>
    %75 = vector.broadcast %74 : vector<1x128xf32> to vector<256x128xf32>
    %76 = arith.mulf %71, %75 : vector<256x128xf32>
    %c0_36 = arith.constant 0 : index
    %c0_37 = arith.constant 0 : index
    %77 = vector.load %arg11[%c0_36, %c0_37] : memref<1x128xf32, #tpu.memory_space<vmem>>, vector<1x128xf32>
    %78 = vector.broadcast %77 : vector<1x128xf32> to vector<256x128xf32>
    %79 = arith.mulf %76, %78 : vector<256x128xf32>
    %c0_38 = arith.constant 0 : index
    %c0_39 = arith.constant 0 : index
    %80 = vector.load %arg12[%c0_38, %c0_39] : memref<1x128xf32, #tpu.memory_space<vmem>>, vector<1x128xf32>
    %81 = vector.broadcast %80 : vector<1x128xf32> to vector<256x128xf32>
    %82 = arith.addf %79, %81 : vector<256x128xf32>
    %c0_40 = arith.constant 0 : index
    %c0_41 = arith.constant 0 : index
    %83 = vector.load %arg13[%c0_40, %c0_41] : memref<128x128xf32, #tpu.memory_space<vmem>>, vector<128x128xf32>
    %84 = arith.truncf %82 : vector<256x128xf32> to vector<256x128xbf16>
    %85 = arith.truncf %83 : vector<128x128xf32> to vector<128x128xbf16>
    %cst_42 = arith.constant dense<0.000000e+00> : vector<256x128xf32>
    %86 = tpu.matmul %84, %85, %cst_42 {dimension_numbers = #tpu.dot_dimension_numbers<[1], [0], [0], [1], [0, 0, 1, 1], [], []>} : vector<256x128xbf16>, vector<128x128xbf16>, vector<256x128xf32> -> vector<256x128xf32>
    %c0_43 = arith.constant 0 : index
    %c0_44 = arith.constant 0 : index
    %87 = vector.load %arg14[%c0_43, %c0_44] : memref<1x128xf32, #tpu.memory_space<vmem>>, vector<1x128xf32>
    %88 = vector.broadcast %87 : vector<1x128xf32> to vector<256x128xf32>
    %89 = arith.addf %86, %88 : vector<256x128xf32>
    %cst_45 = arith.constant 0.000000e+00 : f32
    %90 = vector.broadcast %cst_45 : f32 to vector<256x128xf32>
    %91 = arith.maximumf %89, %90 : vector<256x128xf32>
    %c0_46 = arith.constant 0 : index
    %c0_47 = arith.constant 0 : index
    %92 = vector.load %arg15[%c0_46, %c0_47] : memref<128x128xf32, #tpu.memory_space<vmem>>, vector<128x128xf32>
    %93 = arith.truncf %91 : vector<256x128xf32> to vector<256x128xbf16>
    %94 = arith.truncf %92 : vector<128x128xf32> to vector<128x128xbf16>
    %cst_48 = arith.constant dense<0.000000e+00> : vector<256x128xf32>
    %95 = tpu.matmul %93, %94, %cst_48 {dimension_numbers = #tpu.dot_dimension_numbers<[1], [0], [0], [1], [0, 0, 1, 1], [], []>} : vector<256x128xbf16>, vector<128x128xbf16>, vector<256x128xf32> -> vector<256x128xf32>
    %c0_49 = arith.constant 0 : index
    %c0_50 = arith.constant 0 : index
    %96 = vector.load %arg16[%c0_49, %c0_50] : memref<1x128xf32, #tpu.memory_space<vmem>>, vector<1x128xf32>
    %97 = vector.broadcast %96 : vector<1x128xf32> to vector<256x128xf32>
    %98 = arith.addf %95, %97 : vector<256x128xf32>
    %c0_51 = arith.constant 0 : index
    %c0_52 = arith.constant 0 : index
    %99 = vector.load %arg17[%c0_51, %c0_52] : memref<256x128xf32, #tpu.memory_space<vmem>>, vector<256x128xf32>
    tpu.vector_store %arg17[%c0_51, %c0_52], %98 {strides = array<i32>} : memref<256x128xf32, #tpu.memory_space<vmem>>, vector<256x128xf32>,
    return
  }
}

</mosaic_0001>

<bundles_post_ra>
// kernel: forward.1
= control target key start
LH: loop header
LB: loop body
LE: loop exit
PB: predicated region body
PF: predicated region fallthrough
CT: control target
= control target key end

     0   :  { %s5641_s0 = inlined_call_operand.vmem [shape: f32[256,128], index: 0, kind: input, shape index: {}]   ;;  %s5642_s1 = inlined_call_operand.hbm [shape: f32[256,256], index: 1, kind: input, shape index: {}]   ;;  %s5643_s2 = inlined_call_operand.vmem [shape: f32[256,1], index: 2, kind: input, shape index: {}]   ;;  %s5644_s3 = inlined_call_operand.hbm [shape: f32[128,128], index: 3, kind: input, shape index: {}]   ;;  %s5645_s4 = inlined_call_operand.vmem [shape: f32[1,128], index: 4, kind: input, shape index: {}]   ;;  %s5646_s5 = inlined_call_operand.hbm [shape: f32[256,128], index: 5, kind: input, shape index: {}]   ;;  %s5647_s6 = inlined_call_operand.vmem [shape: f32[1,128], index: 6, kind: input, shape index: {}]   ;;  %s5648_s7 = inlined_call_operand.hbm [shape: f32[256,128], index: 7, kind: input, shape index: {}]   ;;  %s5649_s8 = inlined_call_operand.vmem [shape: f32[1,128], index: 8, kind: input, shape index: {}]   ;;  %s5650_s9 = inlined_call_operand.hbm [shape: f32[256,128], index: 9, kind: input, shape index: {}]   ;;  %s5651_s10 = inlined_call_operand.vmem [shape: f32[1,128], index: 10, kind: input, shape index: {}]   ;;  %s5652_s11 = inlined_call_operand.vmem [shape: f32[1,128], index: 11, kind: input, shape index: {}]   ;;  %s5653_s12 = inlined_call_operand.vmem [shape: f32[1,128], index: 12, kind: input, shape index: {}]   ;;  %s5654_s13 = inlined_call_operand.hbm [shape: f32[128,128], index: 13, kind: input, shape index: {}]   ;;  %s5655_s14 = inlined_call_operand.vmem [shape: f32[1,128], index: 14, kind: input, shape index: {}]   ;;  %s5656_s15 = inlined_call_operand.hbm [shape: f32[128,128], index: 15, kind: input, shape index: {}]   ;;  %s5657_s16 = inlined_call_operand.vmem [shape: f32[1,128], index: 16, kind: input, shape index: {}]   ;;  %s5658_s17 = inlined_call_operand.vmem [shape: f32[256,128], index: 17, kind: output, shape index: {}]  }
   0x1   :  { %5735 = sst [smem:[#allocation56_spill]] %s5641_s0 }
   0x2   :  { %5736 = sst [smem:[#allocation57_spill]] %s5642_s1 }
   0x3   :  { %5737 = sst [smem:[#allocation58_spill]] %s5658_s17 }
   0x4   :  { %22 = vsyncpa [#allocation3], 0 }
   0x5   :  { %23 = vsyncpa [#allocation5], 0 }
   0x6   :  { %24 = vsyncpa [#allocation8], 0 }
   0x7   :  { %25 = vsyncpa [#allocation11], 0  ;;  %s3995_s24 = smov [#allocation4]   ;;  %s3833_s28 = scalar_lea.hbm %s5644_s3, 2048 }
   0x8   :  { %s47_s25 = sshll.u32 %s3995_s24, 4  ;;  %p3834_p0 = scmp.ne.s32.totalorder %s5644_s3, %s3833_s28  ;;  %s48_s25 = int_to_ptr.vmem [resolvable:$true] %s47_s25 }
   0x9   :  { %p3837_p1 = scmp.lt.u32.totalorder %s3833_s28, %s5644_s3 }
   0xb   :  { %p3839_p2 = pnand %p3837_p1, %p3834_p0 }
   0xd   :  { %3842 = shalt.err (!%p3839_p2)
}
   0xe   :  { %s3843_s19 = scalar_lea.vmem %s48_s25, 2048  ;;  %p3848_p4 = scmp.lt.s32.totalorder %s48_s25, %s48_s25 }
   0xf   :  { %p3844_p3 = scmp.ne.s32.totalorder %s48_s25, %s3843_s19  ;;  %p3849_p5 = scmp.lt.s32.totalorder %s3843_s19, %s3843_s19 }
  0x11   :  { %p3850_p6 = por %p3849_p5, %p3848_p4 }
  0x13   :  { %p3851_p7 = pnand %p3850_p6, %p3844_p3 }
  0x15   :  { %3854 = shalt.err (!%p3851_p7)
}
  0x16   :  { %s3996_s1 = smov 128   ;;  %s3997_s20 = smov 8  }
  0x17   :  { %53 = dma.hbm_to_vmem [thread:$0]  %s5644_s3, 2048, %s48_s25, [#allocation5], %s3996_s1, %s3996_s1, %s3997_s20  }
  0x18   :  { %s3998_s23 = smov [#allocation7]   ;;  %s3999_s26 = smov [#allocation10]  }
  0x19   :  { %s75_s24 = sshll.u32 %s3998_s23, 4  ;;  %s107_s27 = sshll.u32 %s3999_s26, 4  ;;  %s76_s24 = int_to_ptr.vmem [resolvable:$true] %s75_s24  ;;  %s108_s27 = int_to_ptr.vmem [resolvable:$true] %s107_s27 }
  0x1a   :  { %s3855_s0 = scalar_lea.hbm %s5648_s7, 4096 }
  0x1b   :  { %p3856_p8 = scmp.ne.s32.totalorder %s5648_s7, %s3855_s0  ;;  %p3859_p9 = scmp.lt.u32.totalorder %s3855_s0, %s5648_s7 }
  0x1d   :  { %p3861_p10 = pnand %p3859_p9, %p3856_p8 }
  0x1f   :  { %3864 = shalt.err (!%p3861_p10)
}
  0x20   :  { %s3865_s3 = scalar_lea.vmem %s76_s24, 4096  ;;  %p3870_p12 = scmp.lt.s32.totalorder %s76_s24, %s76_s24 }
  0x21   :  { %p3866_p11 = scmp.ne.s32.totalorder %s76_s24, %s3865_s3  ;;  %p3871_p13 = scmp.lt.s32.totalorder %s3865_s3, %s3865_s3 }
  0x23   :  { %p3872_p0 = por %p3871_p13, %p3870_p12 }
  0x25   :  { %p3873_p1 = pnand %p3872_p0, %p3866_p11 }
  0x27   :  { %3876 = shalt.err (!%p3873_p1)
}
  0x28   :  { %81 = dma.hbm_to_vmem [thread:$0]  %s5648_s7, 4096, %s76_s24, [#allocation8], %s3996_s1, %s3996_s1, %s3997_s20  }
  0x29   :  { %s3877_s23 = scalar_lea.hbm %s5654_s13, 2048 }
  0x2a   :  { %p3878_p2 = scmp.ne.s32.totalorder %s5654_s13, %s3877_s23  ;;  %p3881_p3 = scmp.lt.u32.totalorder %s3877_s23, %s5654_s13 }
  0x2c   :  { %p3883_p4 = pnand %p3881_p3, %p3878_p2 }
  0x2e   :  { %3886 = shalt.err (!%p3883_p4)
}
  0x2f   :  { %s3887_s30 = scalar_lea.vmem %s108_s27, 2048  ;;  %p3892_p6 = scmp.lt.s32.totalorder %s108_s27, %s108_s27 }
  0x30   :  { %p3888_p5 = scmp.ne.s32.totalorder %s108_s27, %s3887_s30  ;;  %p3893_p7 = scmp.lt.s32.totalorder %s3887_s30, %s3887_s30 }
  0x32   :  { %p3894_p8 = por %p3893_p7, %p3892_p6 }
  0x34   :  { %p3895_p9 = pnand %p3894_p8, %p3888_p5 }
  0x36   :  { %3898 = shalt.err (!%p3895_p9)
}
  0x37   :  { %113 = dma.hbm_to_vmem [thread:$0]  %s5654_s13, 2048, %s108_s27, [#allocation11], %s3996_s1, %s3996_s1, %s3997_s20  }
  0x38   :  { %s4000_s18 = smov [#allocation2]   ;;  %s5738_s21 = sld [smem:[#allocation57_spill]] }
  0x39   :  { %s33_s19 = sshll.u32 %s4000_s18, 4  ;;  %s34_s19 = int_to_ptr.vmem [resolvable:$true] %s33_s19 }
  0x3e   :  { %s3899_s22 = scalar_lea.hbm %s5738_s21, 8192 }
  0x3f   :  { %p3900_p10 = scmp.ne.s32.totalorder %s5738_s21, %s3899_s22  ;;  %p3903_p11 = scmp.lt.u32.totalorder %s3899_s22, %s5738_s21 }
  0x41   :  { %p3905_p12 = pnand %p3903_p11, %p3900_p10 }
  0x43   :  { %3908 = shalt.err (!%p3905_p12)
}
  0x44   :  { %s3909_s29 = scalar_lea.vmem %s34_s19, 8192  ;;  %p3914_p0 = scmp.lt.s32.totalorder %s34_s19, %s34_s19 }
  0x45   :  { %p3910_p13 = scmp.ne.s32.totalorder %s34_s19, %s3909_s29  ;;  %p3915_p1 = scmp.lt.s32.totalorder %s3909_s29, %s3909_s29 }
  0x47   :  { %p3916_p2 = por %p3915_p1, %p3914_p0 }
  0x49   :  { %p3917_p3 = pnand %p3916_p2, %p3910_p13 }
  0x4b   :  { %3920 = shalt.err (!%p3917_p3)
}
  0x4c   :  { %s4001_s13 = smov 256   ;;  %s4002_s27 = smov 16  }
  0x4d   :  { %39 = dma.hbm_to_vmem [thread:$0]  %s5738_s21, 8192, %s34_s19, [#allocation3], %s4001_s13, %s4001_s13, %s4002_s27  }
  0x4e   :  { %s4003_s7 = smov [#allocation6]   ;;  %s4004_s18 = smov [#allocation9]  }
  0x4f   :  { %s61_s24 = sshll.u32 %s4003_s7, 4  ;;  %s89_s3 = sshll.u32 %s4004_s18, 4  ;;  %s62_s24 = int_to_ptr.vmem [resolvable:$true] %s61_s24  ;;  %s4154_s3 = int_to_ptr.vmem [resolvable:$true] %s89_s3 }
  0x50   :  { %s3921_s17 = scalar_lea.hbm %s5646_s5, 4096 }
  0x51   :  { %p3922_p4 = scmp.ne.s32.totalorder %s5646_s5, %s3921_s17  ;;  %p3925_p5 = scmp.lt.u32.totalorder %s3921_s17, %s5646_s5 }
  0x53   :  { %p3927_p6 = pnand %p3925_p5, %p3922_p4 }
  0x55   :  { %3930 = shalt.err (!%p3927_p6)
}
  0x56   :  { %s3931_s19 = scalar_lea.vmem %s62_s24, 4096  ;;  %p3936_p8 = scmp.lt.s32.totalorder %s62_s24, %s62_s24 }
  0x57   :  { %p3932_p7 = scmp.ne.s32.totalorder %s62_s24, %s3931_s19  ;;  %p3937_p9 = scmp.lt.s32.totalorder %s3931_s19, %s3931_s19 }
  0x59   :  { %p3938_p10 = por %p3937_p9, %p3936_p8 }
  0x5b   :  { %p3939_p11 = pnand %p3938_p10, %p3932_p7 }
  0x5d   :  { %3942 = shalt.err (!%p3939_p11)
}
  0x5e   :  { %67 = dma.hbm_to_vmem [thread:$0]  %s5646_s5, 4096, %s62_s24, [#allocation5], %s3996_s1, %s3996_s1, %s3997_s20  }
  0x5f   :  { %s3943_s30 = scalar_lea.hbm %s5650_s9, 4096 }
  0x60   :  { %p3944_p12 = scmp.ne.s32.totalorder %s5650_s9, %s3943_s30  ;;  %p3947_p13 = scmp.lt.u32.totalorder %s3943_s30, %s5650_s9 }
  0x62   :  { %p3949_p0 = pnand %p3947_p13, %p3944_p12 }
  0x64   :  { %3952 = shalt.err (!%p3949_p0)
}
  0x65   :  { %s3953_s17 = scalar_lea.vmem %s4154_s3, 4096  ;;  %p3958_p2 = scmp.lt.s32.totalorder %s4154_s3, %s4154_s3 }
  0x66   :  { %p3954_p1 = scmp.ne.s32.totalorder %s4154_s3, %s3953_s17  ;;  %p3959_p3 = scmp.lt.s32.totalorder %s3953_s17, %s3953_s17 }
  0x68   :  { %p3960_p4 = por %p3959_p3, %p3958_p2 }
  0x6a   :  { %p3961_p5 = pnand %p3960_p4, %p3954_p1 }
  0x6c   :  { %3964 = shalt.err (!%p3961_p5)
}
  0x6d   :  { %95 = dma.hbm_to_vmem [thread:$0]  %s5650_s9, 4096, %s4154_s3, [#allocation8], %s3996_s1, %s3996_s1, %s3997_s20  }
  0x6e   :  { %s4005_s23 = smov [#allocation12]   ;;  %s3965_s19 = scalar_lea.hbm %s5656_s15, 2048 }
  0x6f   :  { %s121_s26 = sshll.u32 %s4005_s23, 4  ;;  %p3966_p6 = scmp.ne.s32.totalorder %s5656_s15, %s3965_s19  ;;  %s122_s26 = int_to_ptr.vmem [resolvable:$true] %s121_s26 }
  0x70   :  { %p3969_p7 = scmp.lt.u32.totalorder %s3965_s19, %s5656_s15 }
  0x72   :  { %p3971_p8 = pnand %p3969_p7, %p3966_p6 }
  0x74   :  { %3974 = shalt.err (!%p3971_p8)
}
  0x75   :  { %s3975_s30 = scalar_lea.vmem %s122_s26, 2048  ;;  %p3980_p10 = scmp.lt.s32.totalorder %s122_s26, %s122_s26 }
  0x76   :  { %p3976_p9 = scmp.ne.s32.totalorder %s122_s26, %s3975_s30  ;;  %p3981_p11 = scmp.lt.s32.totalorder %s3975_s30, %s3975_s30 }
  0x78   :  { %p3982_p12 = por %p3981_p11, %p3980_p10 }
  0x7a   :  { %p3983_p13 = pnand %p3982_p12, %p3976_p9 }
  0x7c   :  { %3986 = shalt.err (!%p3983_p13)
}
  0x7d   :  { %127 = dma.hbm_to_vmem [thread:$0]  %s5656_s15, 2048, %s122_s26, [#allocation11], %s3996_s1, %s3996_s1, %s3997_s20  }
  0x7e   :  { %3987 = dma.done.wait [#allocation3], 8192  }
  0x7f   :  { %3988 = vsyncadd [#allocation3], 4294959104 }
  0x80   :  { %3989 = dma.done.wait [#allocation5], 6144  }
  0x81   :  { %3990 = vsyncadd [#allocation5], 4294961152 }
  0x82   :  { %3991 = dma.done.wait [#allocation8], 8192  }
  0x83   :  { %3992 = vsyncadd [#allocation8], 4294959104 }
  0x84   :  { %3993 = dma.done.wait [#allocation11], 4096  }
  0x85   :  { %3994 = vsyncadd [#allocation11], 4294963200  ;;  %v4006_v0 = vmov 0   ;;  %v280_v1 = vld [vmem:[#allocation4] sm:$0xff]  ;;  %v281_v2 = vld [vmem:[#allocation4 + $0x8] sm:$0xff]  ;;  %s5739_s20 = sld [smem:[#allocation56_spill]] }
  0x86   :  { %3830 = vset.pattern.permute.xlu1 %v4006_v0  ;;  %3829 = vset.pattern.permute.xlu0 %v4006_v0  ;;  %v282_v3 = vld [vmem:[#allocation4 + $0x10] sm:$0xff]  ;;  %v312_v4 = vpack.c.bf16 %v281_v2, %v280_v1  ;;  %v283_v5 = vld [vmem:[#allocation4 + $0x18] sm:$0xff]  ;;  %v284_v7 = vld [vmem:[#allocation4 + $0x20] sm:$0xff]  ;;  %s5854_s26 = sld [smem:[#allocation58_spill]] }
  0x87   :  { %v313_v6 = vpack.c.bf16 %v283_v5, %v282_v3  ;;  %v285_v8 = vld [vmem:[#allocation4 + $0x28] sm:$0xff]  ;;  %v286_v10 = vld [vmem:[#allocation4 + $0x30] sm:$0xff]  ;;  %v287_v13 = vld [vmem:[#allocation4 + $0x38] sm:$0xff] }
  0x88   :  { %3657 = vmatprep.subr.bf16.mxu0 %v312_v4  ;;  %3801 = vmatprep.subr.bf16.mxu1 %v312_v4  ;;  %v314_v9 = vpack.c.bf16 %v285_v8, %v284_v7  ;;  %v232_v18 = vld [vmem:[%s5643_s2 + $0x80] sm:$0xff]  ;;  %v315_v20 = vpack.c.bf16 %v287_v13, %v286_v10  ;;  %v289_v22 = vld [vmem:[#allocation4 + $0x48] sm:$0xff]  ;;  %v290_v26 = vld [vmem:[#allocation4 + $0x50] sm:$0xff] }
  0x89   :  { %3658 = vmatpush3.bf16.msra.mxu0 %v312_v4  ;;  %3809 = vmatpush3.bf16.msra.mxu1 %v312_v4  ;;  %v216_v19 = vld [vmem:[%s5643_s2] sm:$0xff]  ;;  %v233_v23 = vld [vmem:[%s5643_s2 + $0x88] sm:$0xff]  ;;  %v291_v27 = vld [vmem:[#allocation4 + $0x58] sm:$0xff] }
  0x8a   :  { %3659 = vmatprep.subr.bf16.mxu0 %v313_v6  ;;  %3802 = vmatprep.subr.bf16.mxu1 %v313_v6  ;;  %v288_v21 = vld [vmem:[#allocation4 + $0x40] sm:$0xff]  ;;  %v217_v24 = vld [vmem:[%s5643_s2 + $0x8] sm:$0xff]  ;;  %v234_v28 = vld [vmem:[%s5643_s2 + $0x90] sm:$0xff]  ;;  %v317_v30 = vpack.c.bf16 %v291_v27, %v290_v26 }
  0x8b   :  { %v248_v11 = vld [vmem:[%s5739_s20] sm:$0xff]  ;;  %v249_v12 = vld [vmem:[%s5739_s20 + $0x8] sm:$0xff]  ;;  %602 = vperm.xlu0 %3829, %v232_v18   ;;  %522 = vperm.xlu1 %3830, %v216_v19   ;;  %v316_v25 = vpack.c.bf16 %v289_v22, %v288_v21  ;;  %v235_v29 = vld [vmem:[%s5643_s2 + $0x98] sm:$0xff] }
  0x8c   :  { %v296_v14 = vpack.c.bf16 %v249_v12, %v248_v11  ;;  %v264_v15 = vld [vmem:[%s5739_s20 + $0x80] sm:$0xff]  ;;  %v265_v16 = vld [vmem:[%s5739_s20 + $0x88] sm:$0xff]  ;;  %v218_v33 = vld [vmem:[%s5643_s2 + $0x10] sm:$0xff] }
  0x8d   :  { %v304_v17 = vpack.c.bf16 %v265_v16, %v264_v15  ;;  %3660 = vmatpush3.bf16.msra.mxu0 %v313_v6  ;;  %3810 = vmatpush3.bf16.msra.mxu1 %v313_v6  ;;  %v292_v31 = vld [vmem:[#allocation4 + $0x60] sm:$0xff]  ;;  %v293_v32 = vld [vmem:[#allocation4 + $0x68] sm:$0xff]  ;;  %v219_v34 = vld [vmem:[%s5643_s2 + $0x18] sm:$0xff] }
  0x8e   :  { %3661 = vmatprep.subr.bf16.mxu0 %v314_v9  ;;  %3803 = vmatprep.subr.bf16.mxu1 %v314_v9  ;;  %v318_v35 = vpack.c.bf16 %v293_v32, %v292_v31  ;;  %v294_v36 = vld [vmem:[#allocation4 + $0x70] sm:$0xff]  ;;  %v295_v37 = vld [vmem:[#allocation4 + $0x78] sm:$0xff]  ;;  %v236_v38 = vld [vmem:[%s5643_s2 + $0xa0] sm:$0xff] }
  0x8f   :  { %3673 = vmatprep.mubr.bf16.mxu0 %v296_v14  ;;  %3689 = vmatprep.mubr.bf16.mxu1 %v304_v17  ;;  %v237_v39 = vld [vmem:[%s5643_s2 + $0xa8] sm:$0xff]  ;;  %v319_v40 = vpack.c.bf16 %v295_v37, %v294_v36  ;;  %v250_v41 = vld [vmem:[%s5739_s20 + $0x10] sm:$0xff]  ;;  %v251_v42 = vld [vmem:[%s5739_s20 + $0x18] sm:$0xff] }
  0x90   :  { %607 = vperm.xlu0 %3829, %v233_v23   ;;  %527 = vperm.xlu1 %3830, %v217_v24   ;;  %v266_v43 = vld [vmem:[%s5739_s20 + $0x90] sm:$0xff]  ;;  %v267_v44 = vld [vmem:[%s5739_s20 + $0x98] sm:$0xff]  ;;  %v252_v45 = vld [vmem:[%s5739_s20 + $0x20] sm:$0xff]  ;;  %v297_v51 = vpack.c.bf16 %v251_v42, %v250_v41 }
  0x91   :  { %3662 = vmatpush3.bf16.msra.mxu0 %v314_v9  ;;  %3811 = vmatpush3.bf16.msra.mxu1 %v314_v9  ;;  %v220_v46 = vld [vmem:[%s5643_s2 + $0x20] sm:$0xff]  ;;  %v221_v47 = vld [vmem:[%s5643_s2 + $0x28] sm:$0xff]  ;;  %v305_v52 = vpack.c.bf16 %v267_v44, %v266_v43  ;;  %v238_v55 = vld [vmem:[%s5643_s2 + $0xb0] sm:$0xff] }
  0x92   :  { %3663 = vmatprep.subr.bf16.mxu0 %v315_v20  ;;  %3804 = vmatprep.subr.bf16.mxu1 %v315_v20  ;;  %v253_v48 = vld [vmem:[%s5739_s20 + $0x28] sm:$0xff]  ;;  %v268_v49 = vld [vmem:[%s5739_s20 + $0xa0] sm:$0xff]  ;;  %v239_v56 = vld [vmem:[%s5643_s2 + $0xb8] sm:$0xff] }
  0x93   :  { %v269_v50 = vld [vmem:[%s5739_s20 + $0xa8] sm:$0xff]  ;;  %v298_v53 = vpack.c.bf16 %v253_v48, %v252_v45  ;;  %v254_v57 = vld [vmem:[%s5739_s20 + $0x30] sm:$0xff]  ;;  %v255_v58 = vld [vmem:[%s5739_s20 + $0x38] sm:$0xff] }
  0x94   :  { %612 = vperm.xlu0 %3829, %v234_v28   ;;  %617 = vperm.xlu1 %3830, %v235_v29   ;;  %v306_v54 = vpack.c.bf16 %v269_v50, %v268_v49  ;;  %v270_v59 = vld [vmem:[%s5739_s20 + $0xb0] sm:$0xff]  ;;  %v271_v60 = vld [vmem:[%s5739_s20 + $0xb8] sm:$0xff]  ;;  %v256_v61 = vld [vmem:[%s5739_s20 + $0x40] sm:$0xff]  ;;  %v299_v3 = vpack.c.bf16 %v255_v58, %v254_v57 }
  0x95   :  { %3664 = vmatpush3.bf16.msra.mxu0 %v315_v20  ;;  %3812 = vmatpush3.bf16.msra.mxu1 %v315_v20  ;;  %v257_v62 = vld [vmem:[%s5739_s20 + $0x48] sm:$0xff]  ;;  %v272_v63 = vld [vmem:[%s5739_s20 + $0xc0] sm:$0xff]  ;;  %v222_v1 = vld [vmem:[%s5643_s2 + $0x30] sm:$0xff]  ;;  %v307_v4 = vpack.c.bf16 %v271_v60, %v270_v59 }
  0x96   :  { %3665 = vmatprep.subr.bf16.mxu0 %v316_v25  ;;  %3805 = vmatprep.subr.bf16.mxu1 %v316_v25  ;;  %v273_v0 = vld [vmem:[%s5739_s20 + $0xc8] sm:$0xff]  ;;  %v223_v2 = vld [vmem:[%s5643_s2 + $0x38] sm:$0xff]  ;;  %v300_v5 = vpack.c.bf16 %v257_v62, %v256_v61  ;;  %v240_v7 = vld [vmem:[%s5643_s2 + $0xc0] sm:$0xff] }
  0x97   :  { %v308_v6 = vpack.c.bf16 %v273_v0, %v272_v63  ;;  %v241_v8 = vld [vmem:[%s5643_s2 + $0xc8] sm:$0xff]  ;;  %v258_v9 = vld [vmem:[%s5739_s20 + $0x50] sm:$0xff]  ;;  %v259_v10 = vld [vmem:[%s5739_s20 + $0x58] sm:$0xff] }
  0x98   :  { %532 = vperm.xlu0 %3829, %v218_v33   ;;  %537 = vperm.xlu1 %3830, %v219_v34   ;;  %v274_v11 = vld [vmem:[%s5739_s20 + $0xd0] sm:$0xff]  ;;  %v275_v12 = vld [vmem:[%s5739_s20 + $0xd8] sm:$0xff]  ;;  %v260_v13 = vld [vmem:[%s5739_s20 + $0x60] sm:$0xff]  ;;  %v301_v19 = vpack.c.bf16 %v259_v10, %v258_v9 }
  0x99   :  { %3666 = vmatpush3.bf16.msra.mxu0 %v316_v25  ;;  %3813 = vmatpush3.bf16.msra.mxu1 %v316_v25  ;;  %v261_v14 = vld [vmem:[%s5739_s20 + $0x68] sm:$0xff]  ;;  %v276_v15 = vld [vmem:[%s5739_s20 + $0xe0] sm:$0xff]  ;;  %v309_v20 = vpack.c.bf16 %v275_v12, %v274_v11  ;;  %v242_v23 = vld [vmem:[%s5643_s2 + $0xd0] sm:$0xff] }
  0x9a   :  { %3667 = vmatprep.subr.bf16.mxu0 %v317_v30  ;;  %3806 = vmatprep.subr.bf16.mxu1 %v317_v30  ;;  %v277_v16 = vld [vmem:[%s5739_s20 + $0xe8] sm:$0xff]  ;;  %v224_v17 = vld [vmem:[%s5643_s2 + $0x40] sm:$0xff]  ;;  %v302_v21 = vpack.c.bf16 %v261_v14, %v260_v13  ;;  %v243_v24 = vld [vmem:[%s5643_s2 + $0xd8] sm:$0xff] }
  0x9b   :  { %v225_v18 = vld [vmem:[%s5643_s2 + $0x48] sm:$0xff]  ;;  %v310_v22 = vpack.c.bf16 %v277_v16, %v276_v15  ;;  %v262_v25 = vld [vmem:[%s5739_s20 + $0x70] sm:$0xff]  ;;  %v263_v26 = vld [vmem:[%s5739_s20 + $0x78] sm:$0xff] }
  0x9c   :  { %622 = vperm.xlu0 %3829, %v236_v38   ;;  %627 = vperm.xlu1 %3830, %v237_v39   ;;  %v278_v27 = vld [vmem:[%s5739_s20 + $0xf0] sm:$0xff]  ;;  %v279_v28 = vld [vmem:[%s5739_s20 + $0xf8] sm:$0xff]  ;;  %v303_v31 = vpack.c.bf16 %v263_v26, %v262_v25  ;;  %v244_v33 = vld [vmem:[%s5643_s2 + $0xe0] sm:$0xff] }
  0x9d   :  { %3668 = vmatpush3.bf16.msra.mxu0 %v317_v30  ;;  %3814 = vmatpush3.bf16.msra.mxu1 %v317_v30  ;;  %v226_v29 = vld [vmem:[%s5643_s2 + $0x50] sm:$0xff]  ;;  %v227_v30 = vld [vmem:[%s5643_s2 + $0x58] sm:$0xff]  ;;  %v311_v32 = vpack.c.bf16 %v279_v28, %v278_v27  ;;  %v245_v34 = vld [vmem:[%s5643_s2 + $0xe8] sm:$0xff] }
  0x9e   :  { %3669 = vmatprep.subr.bf16.mxu0 %v318_v35  ;;  %3807 = vmatprep.subr.bf16.mxu1 %v318_v35  ;;  %v229_v36 = vld [vmem:[%s5643_s2 + $0x68] sm:$0xff]  ;;  %v246_v37 = vld [vmem:[%s5643_s2 + $0xf0] sm:$0xff]  ;;  %v247_v38 = vld [vmem:[%s5643_s2 + $0xf8] sm:$0xff] }
  0x9f   :  { %v230_v39 = vld [vmem:[%s5643_s2 + $0x70] sm:$0xff]  ;;  %v153_v41 = vld [vmem:[#allocation2 + $0x8] sm:$0xff]  ;;  %v155_v42 = vld [vmem:[#allocation2 + $0x18] sm:$0xff] }
  0xa0   :  { %542 = vperm.xlu0 %3829, %v220_v46   ;;  %547 = vperm.xlu1 %3830, %v221_v47   ;;  %v4398_v43 = vpack.c.bf16 %v155_v42, %v153_v41 }
  0xa1   :  { %3670 = vmatpush3.bf16.msra.mxu0 %v318_v35  ;;  %3815 = vmatpush3.bf16.msra.mxu1 %v318_v35  ;;  %v228_v35 = vld [vmem:[%s5643_s2 + $0x60] sm:$0xff] }
  0xa2   :  { %3671 = vmatprep.subr.bf16.mxu0 %v319_v40  ;;  %3808 = vmatprep.subr.bf16.mxu1 %v319_v40  ;;  %5740 = vst [vmem:[#allocation17_spill] sm:$0xff] %v4398_v43 }
  0xa4   :  { %632 = vperm.xlu0 %3829, %v238_v55   ;;  %637 = vperm.xlu1 %3830, %v239_v56  }
  0xa5   :  { %3672 = vmatpush3.bf16.msra.mxu0 %v319_v40  ;;  %3816 = vmatpush3.bf16.msra.mxu1 %v319_v40  ;;  %v231_v40 = vld [vmem:[%s5643_s2 + $0x78] sm:$0xff] }
  0xa8   :  { %3674 = vmatmul.mubr.bf16.vlgmr.msra.gmra.mrb[0].mxu0 %v297_v51  ;;  %3690 = vmatmul.mubr.bf16.vlgmr.msra.gmra.mrb[0].mxu1 %v305_v52 }
  0xa9   :  { %3677 = vmatprep.mubr.bf16.mxu0 %v298_v53  ;;  %3693 = vmatprep.mubr.bf16.mxu1 %v306_v54 }
  0xaa   :  { %552 = vperm.xlu0 %3829, %v222_v1   ;;  %557 = vperm.xlu1 %3830, %v223_v2   ;;  %v4448_v2 = vld [vmem:[%s5645_s4] ss:$0 sm:$0xff] }
  0xae   :  { %642 = vperm.xlu0 %3829, %v240_v7   ;;  %647 = vperm.xlu1 %3830, %v241_v8  }
  0xb0   :  { %3678 = vmatmul.mubr.bf16.gmra.mrb[4].mxu0 %v299_v3  ;;  %3694 = vmatmul.mubr.bf16.gmra.mrb[4].mxu1 %v307_v4 }
  0xb1   :  { %3681 = vmatprep.mubr.bf16.mxu0 %v300_v5  ;;  %3697 = vmatprep.mubr.bf16.mxu1 %v308_v6 }
  0xb2   :  { %562 = vperm.xlu0 %3829, %v224_v17   ;;  %567 = vperm.xlu1 %3830, %v225_v18  }
  0xb6   :  { %652 = vperm.xlu0 %3829, %v242_v23   ;;  %657 = vperm.xlu1 %3830, %v243_v24  }
  0xb8   :  { %3682 = vmatmul.mubr.bf16.gmra.mrb[8].mxu0 %v301_v19  ;;  %3698 = vmatmul.mubr.bf16.gmra.mrb[8].mxu1 %v309_v20 }
  0xb9   :  { %3685 = vmatprep.mubr.bf16.mxu0 %v302_v21  ;;  %3701 = vmatprep.mubr.bf16.mxu1 %v310_v22 }
  0xba   :  { %572 = vperm.xlu0 %3829, %v226_v29   ;;  %577 = vperm.xlu1 %3830, %v227_v30  }
  0xbe   :  { %662 = vperm.xlu0 %3829, %v244_v33   ;;  %667 = vperm.xlu1 %3830, %v245_v34  }
  0xc0   :  { %3686 = vmatmul.mubr.bf16.gmra.mrb[12].mxu0 %v303_v31  ;;  %3702 = vmatmul.mubr.bf16.gmra.mrb[12].mxu1 %v311_v32 }
  0xc1   :  { %792 = vmatprep.mubr.bf16.mxu1 %v4398_v43 }
  0xc2   :  { %582 = vperm.xlu0 %3829, %v228_v35   ;;  %587 = vperm.xlu1 %3830, %v229_v36  }
  0xc6   :  { %672 = vperm.xlu0 %3829, %v246_v37   ;;  %677 = vperm.xlu1 %3830, %v247_v38  }
  0xca   :  { %592 = vperm.xlu0 %3829, %v230_v39   ;;  %597 = vperm.xlu1 %3830, %v231_v40  }
 0x10a   :  { %v4401_v44 = vpop.permute.xlu0 %602  ;;  %v4403_v45 = vpop.permute.xlu1 %522 }
 0x10f   :  { %v4405_v46 = vpop.permute.xlu0 %607  ;;  %v4407_v47 = vpop.permute.xlu1 %527 }
 0x113   :  { %v4409_v48 = vpop.permute.xlu0 %612  ;;  %v4411_v49 = vpop.permute.xlu1 %617 }
 0x117   :  { %v4413_v50 = vpop.permute.xlu0 %532  ;;  %v4415_v51 = vpop.permute.xlu1 %537 }
 0x11b   :  { %v4417_v52 = vpop.permute.xlu0 %622  ;;  %v4419_v53 = vpop.permute.xlu1 %627 }
 0x11c   :  { %5741 = vst [vmem:[#allocation18_spill] sm:$0xff] %v4419_v53 }
 0x11f   :  { %v4421_v54 = vpop.permute.xlu0 %542  ;;  %v4423_v55 = vpop.permute.xlu1 %547 }
 0x123   :  { %v4425_v56 = vpop.permute.xlu0 %632  ;;  %v4427_v57 = vpop.permute.xlu1 %637 }
 0x124   :  { %5742 = vst [vmem:[#allocation19_spill] sm:$0xff] %v4425_v56  ;;  %5743 = vst [vmem:[#allocation20_spill] sm:$0xff] %v4427_v57 }
 0x129   :  { %v4429_v58 = vpop.permute.xlu0 %552  ;;  %v4431_v59 = vpop.permute.xlu1 %557 }
 0x12d   :  { %v4433_v60 = vpop.permute.xlu0 %642  ;;  %v4435_v61 = vpop.permute.xlu1 %647 }
 0x12e   :  { %5744 = vst [vmem:[#allocation21_spill] sm:$0xff] %v4433_v60  ;;  %5745 = vst [vmem:[#allocation22_spill] sm:$0xff] %v4435_v61 }
 0x131   :  { %v4437_v62 = vpop.permute.xlu0 %562  ;;  %v4439_v63 = vpop.permute.xlu1 %567 }
 0x135   :  { %v4441_v0 = vpop.permute.xlu0 %652  ;;  %v4443_v1 = vpop.permute.xlu1 %657 }
 0x136   :  { %5746 = vst [vmem:[#allocation23_spill] sm:$0xff] %v4441_v0  ;;  %5747 = vst [vmem:[#allocation24_spill] sm:$0xff] %v4443_v1 }
 0x139   :  { %v4450_v3 = vpop.permute.xlu0 %572  ;;  %v4452_v4 = vpop.permute.xlu1 %577 }
 0x13d   :  { %v4462_v29 = vpop.permute.xlu0 %662  ;;  %v4464_v30 = vpop.permute.xlu1 %667 }
 0x13e   :  { %5748 = vst [vmem:[#allocation25_spill] sm:$0xff] %v4462_v29  ;;  %5749 = vst [vmem:[#allocation26_spill] sm:$0xff] %v4464_v30 }
 0x17b   :  { %v3675_v5 = vpop.f32.mrb[0].mxu0  ;;  %v3691_v6 = vpop.f32.mrb[0].mxu1 }
 0x17c   :  { %v370_v7 = vadd.f32 %v3675_v5, %v4448_v2  ;;  %v434_v8 = vadd.f32 %v3691_v6, %v4448_v2  ;;  %v361_v9 = vpop.f32.mrb[1].mxu0  ;;  %v425_v10 = vpop.f32.mrb[1].mxu1 }
 0x17d   :  { %v362_v11 = vadd.f32 %v4448_v2, %v361_v9  ;;  %v426_v12 = vadd.f32 %v4448_v2, %v425_v10  ;;  %v3676_v13 = vpop.f32.mrb[2].mxu0  ;;  %v3692_v14 = vpop.f32.mrb[2].mxu1 }
 0x17e   :  { %v490_v15 = vmax.f32 %v370_v7, 0.0  ;;  %v506_v16 = vmax.f32 %v434_v8, 0.0  ;;  %v373_v17 = vadd.f32 %v3676_v13, %v4448_v2  ;;  %v437_v18 = vadd.f32 %v3692_v14, %v4448_v2  ;;  %v364_v19 = vpop.f32.mrb[3].mxu0  ;;  %v428_v20 = vpop.f32.mrb[3].mxu1 }
 0x17f   :  { %v488_v21 = vmax.f32 %v362_v11, 0.0  ;;  %v504_v22 = vmax.f32 %v426_v12, 0.0  ;;  %v365_v23 = vadd.f32 %v4448_v2, %v364_v19  ;;  %v429_v24 = vadd.f32 %v4448_v2, %v428_v20 }
 0x180   :  { %v491_v25 = vmax.f32 %v373_v17, 0.0  ;;  %v507_v26 = vmax.f32 %v437_v18, 0.0  ;;  %v682_v31 = vmul.f32 %v4413_v50, %v490_v15  ;;  %v698_v32 = vmul.f32 %v4409_v48, %v506_v16 }
 0x181   :  { %v489_v27 = vmax.f32 %v365_v23, 0.0  ;;  %v505_v28 = vmax.f32 %v429_v24, 0.0  ;;  %v680_v35 = vmul.f32 %v4403_v45, %v488_v21  ;;  %v696_v36 = vmul.f32 %v4401_v44, %v504_v22 }
 0x182   :  { %v683_v33 = vmul.f32 %v4415_v51, %v491_v25  ;;  %v699_v34 = vmul.f32 %v4411_v49, %v507_v26 }
 0x183   :  { %v681_v37 = vmul.f32 %v4407_v47, %v489_v27  ;;  %v697_v38 = vmul.f32 %v4405_v46, %v505_v28  ;;  %v3679_v39 = vpop.f32.mrb[4].mxu0  ;;  %v3695_v40 = vpop.f32.mrb[4].mxu1 }
 0x184   :  { %v4474_v41 = vpack.c.bf16 %v683_v33, %v682_v31  ;;  %v386_v42 = vadd.f32 %v3679_v39, %v4448_v2  ;;  %v450_v5 = vadd.f32 %v3695_v40, %v4448_v2  ;;  %v377_v6 = vpop.f32.mrb[5].mxu0  ;;  %v441_v7 = vpop.f32.mrb[5].mxu1  ;;  %v4478_v8 = vpack.c.bf16 %v699_v34, %v698_v32 }
 0x185   :  { %v4480_v9 = vpack.c.bf16 %v681_v37, %v680_v35  ;;  %v378_v10 = vadd.f32 %v4448_v2, %v377_v6  ;;  %v442_v11 = vadd.f32 %v4448_v2, %v441_v7  ;;  %v3680_v12 = vpop.f32.mrb[6].mxu0  ;;  %v3696_v13 = vpop.f32.mrb[6].mxu1  ;;  %v4484_v14 = vpack.c.bf16 %v697_v38, %v696_v36 }
 0x186   :  { %v494_v15 = vmax.f32 %v386_v42, 0.0  ;;  %v510_v16 = vmax.f32 %v450_v5, 0.0  ;;  %v389_v17 = vadd.f32 %v3680_v12, %v4448_v2  ;;  %v453_v18 = vadd.f32 %v3696_v13, %v4448_v2  ;;  %v380_v19 = vpop.f32.mrb[7].mxu0  ;;  %v444_v20 = vpop.f32.mrb[7].mxu1 }
 0x187   :  { %v492_v21 = vmax.f32 %v378_v10, 0.0  ;;  %v508_v22 = vmax.f32 %v442_v11, 0.0  ;;  %v381_v23 = vadd.f32 %v4448_v2, %v380_v19  ;;  %v445_v24 = vadd.f32 %v4448_v2, %v444_v20  ;;  %2937 = vmatprep.subr.bf16.mxu1 %v4484_v14  ;;  %v4493_v31 = vpop.permute.xlu0 %582  ;;  %v4495_v32 = vpop.permute.xlu1 %587 }
 0x188   :  { %v495_v25 = vmax.f32 %v389_v17, 0.0  ;;  %v511_v26 = vmax.f32 %v453_v18, 0.0  ;;  %2938 = vmatpush3.bf16.msra.mxu1 %v4480_v9  ;;  %v686_v33 = vmul.f32 %v4429_v58, %v494_v15  ;;  %v702_v34 = vmul.f32 %v4425_v56, %v510_v16 }
 0x189   :  { %v493_v27 = vmax.f32 %v381_v23, 0.0  ;;  %v509_v28 = vmax.f32 %v445_v24, 0.0  ;;  %2939 = vmatprep.subr.bf16.mxu1 %v4478_v8  ;;  %v684_v37 = vmul.f32 %v4421_v54, %v492_v21  ;;  %v700_v38 = vmul.f32 %v4417_v52, %v508_v22 }
 0x18a   :  { %v687_v35 = vmul.f32 %v4431_v59, %v495_v25  ;;  %v703_v36 = vmul.f32 %v4427_v57, %v511_v26 }
 0x18b   :  { %v685_v39 = vmul.f32 %v4423_v55, %v493_v27  ;;  %v701_v40 = vmul.f32 %v4419_v53, %v509_v28  ;;  %v3683_v42 = vpop.f32.mrb[8].mxu0  ;;  %v3699_v5 = vpop.f32.mrb[8].mxu1 }
 0x18c   :  { %v4505_v6 = vpack.c.bf16 %v687_v35, %v686_v33  ;;  %v402_v7 = vadd.f32 %v3683_v42, %v4448_v2  ;;  %v466_v10 = vadd.f32 %v3699_v5, %v4448_v2  ;;  %v393_v11 = vpop.f32.mrb[9].mxu0  ;;  %v457_v12 = vpop.f32.mrb[9].mxu1  ;;  %2940 = vmatpush3.bf16.msra.mxu1 %v4474_v41  ;;  %v4510_v13 = vpack.c.bf16 %v703_v36, %v702_v34 }
 0x18d   :  { %v4512_v15 = vpack.c.bf16 %v685_v39, %v684_v37  ;;  %v394_v16 = vadd.f32 %v4448_v2, %v393_v11  ;;  %v458_v17 = vadd.f32 %v4448_v2, %v457_v12  ;;  %v3684_v18 = vpop.f32.mrb[10].mxu0  ;;  %v3700_v19 = vpop.f32.mrb[10].mxu1  ;;  %v4516_v20 = vpack.c.bf16 %v701_v40, %v700_v38 }
 0x18e   :  { %v498_v21 = vmax.f32 %v402_v7, 0.0  ;;  %v514_v22 = vmax.f32 %v466_v10, 0.0  ;;  %v405_v23 = vadd.f32 %v3684_v18, %v4448_v2  ;;  %v469_v24 = vadd.f32 %v3700_v19, %v4448_v2  ;;  %v396_v25 = vpop.f32.mrb[11].mxu0  ;;  %v460_v26 = vpop.f32.mrb[11].mxu1 }
 0x18f   :  { %v496_v27 = vmax.f32 %v394_v16, 0.0  ;;  %v512_v28 = vmax.f32 %v458_v17, 0.0  ;;  %v397_v33 = vadd.f32 %v4448_v2, %v396_v25  ;;  %v461_v34 = vadd.f32 %v4448_v2, %v460_v26  ;;  %2941 = vmatprep.subr.bf16.mxu1 %v4516_v20  ;;  %v4525_v39 = vpop.permute.xlu0 %672  ;;  %v4527_v40 = vpop.permute.xlu1 %677 }
 0x190   :  { %v499_v35 = vmax.f32 %v405_v23, 0.0  ;;  %v515_v36 = vmax.f32 %v469_v24, 0.0  ;;  %2942 = vmatpush3.bf16.msra.mxu1 %v4512_v15  ;;  %5750 = vst [vmem:[#allocation27_spill] sm:$0xff] %v4525_v39  ;;  %5751 = vst [vmem:[#allocation28_spill] sm:$0xff] %v4527_v40  ;;  %v690_v42 = vmul.f32 %v4450_v3, %v498_v21  ;;  %v706_v5 = vmul.f32 %v4441_v0, %v514_v22  ;;  %v926_v0 = vld [vmem:[#allocation6 + $0x28] sm:$0xff] }
 0x191   :  { %v497_v37 = vmax.f32 %v397_v33, 0.0  ;;  %v513_v38 = vmax.f32 %v461_v34, 0.0  ;;  %2943 = vmatprep.subr.bf16.mxu1 %v4510_v13  ;;  %v688_v11 = vmul.f32 %v4437_v62, %v496_v27  ;;  %v704_v12 = vmul.f32 %v4433_v60, %v512_v28 }
 0x192   :  { %v691_v7 = vmul.f32 %v4452_v4, %v499_v35  ;;  %v707_v10 = vmul.f32 %v4443_v1, %v515_v36 }
 0x193   :  { %v689_v16 = vmul.f32 %v4439_v63, %v497_v37  ;;  %v705_v17 = vmul.f32 %v4435_v61, %v513_v38  ;;  %v3687_v18 = vpop.f32.mrb[12].mxu0  ;;  %v3703_v19 = vpop.f32.mrb[12].mxu1  ;;  %v943_v61 = vld [vmem:[#allocation6 + $0xb0] sm:$0xff] }
 0x194   :  { %v4537_v23 = vpack.c.bf16 %v691_v7, %v690_v42  ;;  %v418_v21 = vadd.f32 %v3687_v18, %v4448_v2  ;;  %v482_v22 = vadd.f32 %v3703_v19, %v4448_v2  ;;  %v409_v24 = vpop.f32.mrb[13].mxu0  ;;  %v473_v25 = vpop.f32.mrb[13].mxu1  ;;  %2944 = vmatpush3.bf16.msra.mxu1 %v4505_v6  ;;  %v4542_v26 = vpack.c.bf16 %v707_v10, %v706_v5 }
 0x195   :  { %v4544_v27 = vpack.c.bf16 %v689_v16, %v688_v11  ;;  %v410_v28 = vadd.f32 %v4448_v2, %v409_v24  ;;  %v474_v33 = vadd.f32 %v4448_v2, %v473_v25  ;;  %v3688_v34 = vpop.f32.mrb[14].mxu0  ;;  %v3704_v35 = vpop.f32.mrb[14].mxu1  ;;  %v4548_v36 = vpack.c.bf16 %v705_v17, %v704_v12 }
 0x196   :  { %v502_v37 = vmax.f32 %v418_v21, 0.0  ;;  %v518_v38 = vmax.f32 %v482_v22, 0.0  ;;  %v421_v42 = vadd.f32 %v3688_v34, %v4448_v2  ;;  %v485_v7 = vadd.f32 %v3704_v35, %v4448_v2  ;;  %v412_v18 = vpop.f32.mrb[15].mxu0  ;;  %v476_v19 = vpop.f32.mrb[15].mxu1 }
 0x197   :  { %v500_v5 = vmax.f32 %v410_v28, 0.0  ;;  %v516_v10 = vmax.f32 %v474_v33, 0.0  ;;  %v413_v11 = vadd.f32 %v4448_v2, %v412_v18  ;;  %v477_v16 = vadd.f32 %v4448_v2, %v476_v19  ;;  %2945 = vmatprep.subr.bf16.mxu1 %v4548_v36  ;;  %v4556_v12 = vpop.permute.xlu0 %592  ;;  %v4558_v17 = vpop.permute.xlu1 %597 }
 0x198   :  { %v503_v24 = vmax.f32 %v421_v42, 0.0  ;;  %v519_v25 = vmax.f32 %v485_v7, 0.0  ;;  %2946 = vmatpush3.bf16.msra.mxu1 %v4544_v27  ;;  %v694_v28 = vmul.f32 %v4556_v12, %v502_v37  ;;  %v710_v33 = vmul.f32 %v4525_v39, %v518_v38  ;;  %v942_v39 = vld [vmem:[#allocation6 + $0xa8] sm:$0xff] }
 0x199   :  { %v501_v21 = vmax.f32 %v413_v11, 0.0  ;;  %v517_v22 = vmax.f32 %v477_v16, 0.0  ;;  %2947 = vmatprep.subr.bf16.mxu1 %v4542_v26  ;;  %v692_v35 = vmul.f32 %v4493_v31, %v500_v5  ;;  %v708_v42 = vmul.f32 %v4462_v29, %v516_v10  ;;  %v152_v16 = vld [vmem:[#allocation2] sm:$0xff]  ;;  %v157_v5 = vld [vmem:[#allocation2 + $0x28] sm:$0xff]  ;;  %v159_v10 = vld [vmem:[#allocation2 + $0x38] sm:$0xff] }
 0x19a   :  { %v695_v2 = vmul.f32 %v4558_v17, %v503_v24  ;;  %v711_v34 = vmul.f32 %v4527_v40, %v519_v25  ;;  %v154_v24 = vld [vmem:[#allocation2 + $0x10] sm:$0xff]  ;;  %v937_v25 = vld [vmem:[#allocation6 + $0x80] sm:$0xff]  ;;  %v4584_v1 = vpack.c.bf16 %v159_v10, %v157_v5  ;;  %v928_v5 = vld [vmem:[#allocation6 + $0x38] sm:$0xff] }
 0x19b   :  { %v693_v7 = vmul.f32 %v4495_v32, %v501_v21  ;;  %v709_v18 = vmul.f32 %v4464_v30, %v517_v22  ;;  %v938_v21 = vld [vmem:[#allocation6 + $0x88] sm:$0xff]  ;;  %v921_v40 = vld [vmem:[#allocation6] sm:$0xff]  ;;  %v4581_v30 = vpack.c.bf16 %v154_v24, %v152_v16  ;;  %v163_v10 = vld [vmem:[#allocation2 + $0x58] sm:$0xff] }
 0x19c   :  { %v4569_v19 = vpack.c.bf16 %v695_v2, %v694_v28  ;;  %2948 = vmatpush3.bf16.msra.mxu1 %v4537_v23  ;;  %v4572_v11 = vpack.c.bf16 %v711_v34, %v710_v33  ;;  %v977_v22 = vpack.c.bf16 %v938_v21, %v937_v25  ;;  %v922_v28 = vld [vmem:[#allocation6 + $0x8] sm:$0xff]  ;;  %v939_v2 = vld [vmem:[#allocation6 + $0x90] sm:$0xff]  ;;  %v940_v33 = vld [vmem:[#allocation6 + $0x98] sm:$0xff]  ;;  %5752 = vst [vmem:[#allocation29_spill] sm:$0xff] %v4584_v1 }
 0x19d   :  { %v4574_v37 = vpack.c.bf16 %v693_v7, %v692_v35  ;;  %v4576_v38 = vpack.c.bf16 %v709_v18, %v708_v42  ;;  %v969_v34 = vpack.c.bf16 %v922_v28, %v921_v40  ;;  %v978_v35 = vpack.c.bf16 %v940_v33, %v939_v2  ;;  %v923_v42 = vld [vmem:[#allocation6 + $0x10] sm:$0xff]  ;;  %v924_v7 = vld [vmem:[#allocation6 + $0x18] sm:$0xff]  ;;  %v941_v18 = vld [vmem:[#allocation6 + $0xa0] sm:$0xff] }
 0x19e   :  { %3049 = vmatprep.subr.bf16.mxu0 %v977_v22  ;;  %v970_v29 = vpack.c.bf16 %v924_v7, %v923_v42  ;;  %v979_v25 = vpack.c.bf16 %v942_v39, %v941_v18  ;;  %v925_v21 = vld [vmem:[#allocation6 + $0x20] sm:$0xff]  ;;  %v944_v40 = vld [vmem:[#allocation6 + $0xb8] sm:$0xff]  ;;  %v158_v2 = vld [vmem:[#allocation2 + $0x30] sm:$0xff] }
 0x19f   :  { %2949 = vmatprep.subr.bf16.mxu1 %v4576_v38  ;;  %3050 = vmatpush3.bf16.msra.mxu0 %v969_v34  ;;  %v156_v28 = vld [vmem:[#allocation2 + $0x20] sm:$0xff]  ;;  %v971_v22 = vpack.c.bf16 %v926_v0, %v925_v21  ;;  %v161_v16 = vld [vmem:[#allocation2 + $0x48] sm:$0xff]  ;;  %v980_v24 = vpack.c.bf16 %v944_v40, %v943_v61  ;;  %v927_v33 = vld [vmem:[#allocation6 + $0x30] sm:$0xff] }
 0x1a0   :  { %2950 = vmatpush3.bf16.msra.mxu1 %v4574_v37  ;;  %3051 = vmatprep.subr.bf16.mxu0 %v978_v35  ;;  %v945_v34 = vld [vmem:[#allocation6 + $0xc0] sm:$0xff]  ;;  %v946_v39 = vld [vmem:[#allocation6 + $0xc8] sm:$0xff]  ;;  %v4588_v35 = vpack.c.bf16 %v158_v2, %v156_v28  ;;  %v972_v42 = vpack.c.bf16 %v928_v5, %v927_v33  ;;  %v4590_v7 = vpack.c.bf16 %v163_v10, %v161_v16  ;;  %v947_v21 = vld [vmem:[#allocation6 + $0xd0] sm:$0xff] }
 0x1a1   :  { %2951 = vmatprep.subr.bf16.mxu1 %v4572_v11  ;;  %v981_v18 = vpack.c.bf16 %v946_v39, %v945_v34  ;;  %v930_v0 = vld [vmem:[#allocation6 + $0x48] sm:$0xff]  ;;  %v160_v61 = vld [vmem:[#allocation2 + $0x40] sm:$0xff]  ;;  %v162_v40 = vld [vmem:[#allocation2 + $0x50] sm:$0xff] }
 0x1a2   :  { %v931_v2 = vld [vmem:[#allocation6 + $0x50] sm:$0xff]  ;;  %v165_v16 = vld [vmem:[#allocation2 + $0x68] sm:$0xff]  ;;  %v167_v33 = vld [vmem:[#allocation2 + $0x78] sm:$0xff] }
 0x1a3   :  { %3052 = vmatpush3.bf16.msra.mxu0 %v970_v29  ;;  %v929_v29 = vld [vmem:[#allocation6 + $0x40] sm:$0xff]  ;;  %v4596_v10 = vpack.c.bf16 %v167_v33, %v165_v16  ;;  %v166_v39 = vld [vmem:[#allocation2 + $0x70] sm:$0xff]  ;;  %v177_v16 = vld [vmem:[#allocation2 + $0xc8] sm:$0xff] }
 0x1a4   :  { %2952 = vmatpush3.bf16.msra.mxu1 %v4569_v19  ;;  %3053 = vmatprep.subr.bf16.mxu0 %v979_v25  ;;  %v973_v25 = vpack.c.bf16 %v930_v0, %v929_v29  ;;  %v164_v34 = vld [vmem:[#allocation2 + $0x60] sm:$0xff]  ;;  %v179_v33 = vld [vmem:[#allocation2 + $0xd8] sm:$0xff] }
 0x1a5   :  { %5753 = vst [vmem:[#allocation30_spill] sm:$0xff] %v4596_v10  ;;  %v168_v0 = vld [vmem:[#allocation2 + $0x80] sm:$0xff] }
 0x1a7   :  { %793 = vmatmul.mubr.bf16.vlgmr.msra.gmra.mrb[16].mxu1 %v4581_v30  ;;  %3054 = vmatpush3.bf16.msra.mxu0 %v971_v22  ;;  %v932_v22 = vld [vmem:[#allocation6 + $0x58] sm:$0xff] }
 0x1a8   :  { %800 = vmatprep.mubr.bf16.mxu1 %v4584_v1  ;;  %3055 = vmatprep.subr.bf16.mxu0 %v980_v24  ;;  %v948_v1 = vld [vmem:[#allocation6 + $0xd8] sm:$0xff]  ;;  %v4594_v24 = vpack.c.bf16 %v162_v40, %v160_v61  ;;  %v974_v5 = vpack.c.bf16 %v932_v22, %v931_v2  ;;  %v173_v61 = vld [vmem:[#allocation2 + $0xa8] sm:$0xff]  ;;  %v172_v2 = vld [vmem:[#allocation2 + $0xa0] sm:$0xff] }
 0x1a9   :  { %v982_v28 = vpack.c.bf16 %v948_v1, %v947_v21  ;;  %v171_v1 = vld [vmem:[#allocation2 + $0x98] sm:$0xff]  ;;  %v170_v21 = vld [vmem:[#allocation2 + $0x90] sm:$0xff] }
 0x1aa   :  { %v4606_v40 = vpack.c.bf16 %v170_v21, %v168_v0  ;;  %v174_v22 = vld [vmem:[#allocation2 + $0xb0] sm:$0xff]  ;;  %v183_v0 = vld [vmem:[#allocation2 + $0xf8] sm:$0xff] }
 0x1ab   :  { %3056 = vmatpush3.bf16.msra.mxu0 %v972_v42  ;;  %v169_v42 = vld [vmem:[#allocation2 + $0x88] sm:$0xff] }
 0x1ac   :  { %3057 = vmatprep.subr.bf16.mxu0 %v981_v18  ;;  %v4600_v18 = vpack.c.bf16 %v166_v39, %v164_v34  ;;  %v4602_v29 = vpack.c.bf16 %v171_v1, %v169_v42  ;;  %5756 = vst [vmem:[#allocation33_spill] sm:$0xff] %v4606_v40  ;;  %v4614_v34 = vpack.c.bf16 %v179_v33, %v177_v16  ;;  %v176_v39 = vld [vmem:[#allocation2 + $0xc0] sm:$0xff]  ;;  %v178_v42 = vld [vmem:[#allocation2 + $0xd0] sm:$0xff]  ;;  %v181_v1 = vld [vmem:[#allocation2 + $0xe8] sm:$0xff] }
 0x1ad   :  { %v4618_v21 = vpack.c.bf16 %v178_v42, %v176_v39  ;;  %v187_v16 = vld [vmem:[#allocation2 + $0x118] sm:$0xff]  ;;  %v184_v39 = vld [vmem:[#allocation2 + $0x100] sm:$0xff]  ;;  %v186_v42 = vld [vmem:[#allocation2 + $0x110] sm:$0xff] }
 0x1ae   :  { %5754 = vst [vmem:[#allocation31_spill] sm:$0xff] %v4600_v18  ;;  %5755 = vst [vmem:[#allocation32_spill] sm:$0xff] %v4602_v29 }
 0x1af   :  { %801 = vmatmul.mubr.bf16.gmra.mrb[20].mxu1 %v4588_v35  ;;  %3058 = vmatpush3.bf16.msra.mxu0 %v973_v25  ;;  %v175_v25 = vld [vmem:[#allocation2 + $0xb8] sm:$0xff]  ;;  %5759 = vst [vmem:[#allocation36_spill] sm:$0xff] %v4614_v34  ;;  %5760 = vst [vmem:[#allocation37_spill] sm:$0xff] %v4618_v21 }
 0x1b0   :  { %808 = vmatprep.mubr.bf16.mxu1 %v4590_v7  ;;  %3059 = vmatprep.subr.bf16.mxu0 %v982_v28  ;;  %v4608_v28 = vpack.c.bf16 %v175_v25, %v173_v61  ;;  %v4620_v61 = vpack.c.bf16 %v183_v0, %v181_v1  ;;  %v180_v25 = vld [vmem:[#allocation2 + $0xe0] sm:$0xff]  ;;  %v189_v1 = vld [vmem:[#allocation2 + $0x128] sm:$0xff]  ;;  %v191_v0 = vld [vmem:[#allocation2 + $0x138] sm:$0xff] }
 0x1b2   :  { %5757 = vst [vmem:[#allocation34_spill] sm:$0xff] %v4608_v28  ;;  %5761 = vst [vmem:[#allocation38_spill] sm:$0xff] %v4620_v61 }
 0x1b3   :  { %3060 = vmatpush3.bf16.msra.mxu0 %v974_v5  ;;  %v4612_v5 = vpack.c.bf16 %v174_v22, %v172_v2  ;;  %v182_v2 = vld [vmem:[#allocation2 + $0xf0] sm:$0xff]  ;;  %v185_v22 = vld [vmem:[#allocation2 + $0x108] sm:$0xff] }
 0x1b4   :  { %v4624_v33 = vpack.c.bf16 %v182_v2, %v180_v25  ;;  %v188_v25 = vld [vmem:[#allocation2 + $0x120] sm:$0xff]  ;;  %v190_v2 = vld [vmem:[#allocation2 + $0x130] sm:$0xff] }
 0x1b5   :  { %5758 = vst [vmem:[#allocation35_spill] sm:$0xff] %v4612_v5 }
 0x1b6   :  { %5762 = vst [vmem:[#allocation39_spill] sm:$0xff] %v4624_v33 }
 0x1b7   :  { %809 = vmatmul.mubr.bf16.gmra.mrb[24].mxu1 %v4594_v24 }
 0x1b8   :  { %816 = vmatprep.mubr.bf16.mxu1 %v4596_v10  ;;  %v936_v10 = vld [vmem:[#allocation6 + $0x78] sm:$0xff] }
 0x1bf   :  { %817 = vmatmul.mubr.bf16.gmra.mrb[28].mxu1 %v4600_v18 }
 0x1c0   :  { %824 = vmatprep.mubr.bf16.mxu1 %v4602_v29 }
 0x1c7   :  { %825 = vmatmul.mubr.bf16.gmra.mrb[32].mxu1 %v4606_v40  ;;  %v934_v40 = vld [vmem:[#allocation6 + $0x68] sm:$0xff] }
 0x1c8   :  { %832 = vmatprep.mubr.bf16.mxu1 %v4608_v28  ;;  %v198_v28 = vld [vmem:[#allocation2 + $0x170] sm:$0xff] }
 0x1cf   :  { %833 = vmatmul.mubr.bf16.gmra.mrb[36].mxu1 %v4612_v5  ;;  %v4626_v5 = vpack.c.bf16 %v187_v16, %v185_v22  ;;  %v193_v22 = vld [vmem:[#allocation2 + $0x148] sm:$0xff]  ;;  %v195_v16 = vld [vmem:[#allocation2 + $0x158] sm:$0xff] }
 0x1d0   :  { %840 = vmatprep.mubr.bf16.mxu1 %v4614_v34  ;;  %v4630_v34 = vpack.c.bf16 %v186_v42, %v184_v39  ;;  %v192_v39 = vld [vmem:[#allocation2 + $0x140] sm:$0xff]  ;;  %v194_v42 = vld [vmem:[#allocation2 + $0x150] sm:$0xff] }
 0x1d1   :  { %5763 = vst [vmem:[#allocation40_spill] sm:$0xff] %v4626_v5 }
 0x1d2   :  { %5764 = vst [vmem:[#allocation41_spill] sm:$0xff] %v4630_v34 }
 0x1d7   :  { %841 = vmatmul.mubr.bf16.gmra.mrb[40].mxu1 %v4618_v21  ;;  %v4632_v21 = vpack.c.bf16 %v191_v0, %v189_v1  ;;  %v197_v1 = vld [vmem:[#allocation2 + $0x168] sm:$0xff]  ;;  %v199_v0 = vld [vmem:[#allocation2 + $0x178] sm:$0xff] }
 0x1d8   :  { %848 = vmatprep.mubr.bf16.mxu1 %v4620_v61  ;;  %v4636_v61 = vpack.c.bf16 %v190_v2, %v188_v25  ;;  %v201_v25 = vld [vmem:[#allocation2 + $0x188] sm:$0xff]  ;;  %v949_v2 = vld [vmem:[#allocation6 + $0xe0] sm:$0xff] }
 0x1d9   :  { %5765 = vst [vmem:[#allocation42_spill] sm:$0xff] %v4632_v21 }
 0x1da   :  { %5766 = vst [vmem:[#allocation43_spill] sm:$0xff] %v4636_v61 }
 0x1df   :  { %849 = vmatmul.mubr.bf16.gmra.mrb[44].mxu1 %v4624_v33  ;;  %v4638_v33 = vpack.c.bf16 %v195_v16, %v193_v22  ;;  %v950_v22 = vld [vmem:[#allocation6 + $0xe8] sm:$0xff]  ;;  %v203_v16 = vld [vmem:[#allocation2 + $0x198] sm:$0xff] }
 0x1e0   :  { %856 = vmatprep.mubr.bf16.mxu1 %v4626_v5  ;;  %v4642_v5 = vpack.c.bf16 %v194_v42, %v192_v39  ;;  %v4650_v39 = vpack.c.bf16 %v203_v16, %v201_v25  ;;  %v951_v42 = vld [vmem:[#allocation6 + $0xf0] sm:$0xff] }
 0x1e1   :  { %5767 = vst [vmem:[#allocation44_spill] sm:$0xff] %v4638_v33 }
 0x1e2   :  { %5768 = vst [vmem:[#allocation45_spill] sm:$0xff] %v4642_v5  ;;  %5771 = vst [vmem:[#allocation48_spill] sm:$0xff] %v4650_v39 }
 0x1e7   :  { %857 = vmatmul.mubr.bf16.gmra.mrb[48].mxu1 %v4630_v34  ;;  %v4644_v34 = vpack.c.bf16 %v199_v0, %v197_v1  ;;  %v952_v1 = vld [vmem:[#allocation6 + $0xf8] sm:$0xff] }
 0x1e8   :  { %864 = vmatprep.mubr.bf16.mxu1 %v4632_v21  ;;  %v196_v21 = vld [vmem:[#allocation2 + $0x160] sm:$0xff]  ;;  %v984_v0 = vpack.c.bf16 %v952_v1, %v951_v42  ;;  %v210_v42 = vld [vmem:[#allocation2 + $0x1d0] sm:$0xff]  ;;  %v213_v1 = vld [vmem:[#allocation2 + $0x1e8] sm:$0xff] }
 0x1e9   :  { %5769 = vst [vmem:[#allocation46_spill] sm:$0xff] %v4644_v34  ;;  %v4648_v18 = vpack.c.bf16 %v198_v28, %v196_v21  ;;  %v207_v28 = vld [vmem:[#allocation2 + $0x1b8] sm:$0xff] }
 0x1eb   :  { %5770 = vst [vmem:[#allocation47_spill] sm:$0xff] %v4648_v18 }
 0x1ef   :  { %865 = vmatmul.mubr.bf16.gmra.mrb[52].mxu1 %v4636_v61  ;;  %v983_v61 = vpack.c.bf16 %v950_v22, %v949_v2  ;;  %v200_v2 = vld [vmem:[#allocation2 + $0x180] sm:$0xff]  ;;  %v202_v22 = vld [vmem:[#allocation2 + $0x190] sm:$0xff] }
 0x1f0   :  { %872 = vmatprep.mubr.bf16.mxu1 %v4638_v33  ;;  %v933_v33 = vld [vmem:[#allocation6 + $0x60] sm:$0xff]  ;;  %v4654_v21 = vpack.c.bf16 %v202_v22, %v200_v2 }
 0x1f1   :  { %v975_v29 = vpack.c.bf16 %v934_v40, %v933_v33  ;;  %3061 = vmatprep.subr.bf16.mxu0 %v983_v61  ;;  %v205_v40 = vld [vmem:[#allocation2 + $0x1a8] sm:$0xff]  ;;  %v211_v33 = vld [vmem:[#allocation2 + $0x1d8] sm:$0xff] }
 0x1f2   :  { %5772 = vst [vmem:[#allocation49_spill] sm:$0xff] %v4654_v21  ;;  %v4656_v61 = vpack.c.bf16 %v207_v28, %v205_v40  ;;  %v212_v40 = vld [vmem:[#allocation2 + $0x1e0] sm:$0xff]  ;;  %v214_v28 = vld [vmem:[#allocation2 + $0x1f0] sm:$0xff] }
 0x1f3   :  { %3062 = vmatpush3.bf16.msra.mxu0 %v975_v29  ;;  %v204_v29 = vld [vmem:[#allocation2 + $0x1a0] sm:$0xff] }
 0x1f4   :  { %3063 = vmatprep.subr.bf16.mxu0 %v984_v0  ;;  %5773 = vst [vmem:[#allocation50_spill] sm:$0xff] %v4656_v61  ;;  %v215_v0 = vld [vmem:[#allocation2 + $0x1f8] sm:$0xff] }
 0x1f5   :  { %v4668_v22 = vpack.c.bf16 %v215_v0, %v213_v1 }
 0x1f7   :  { %873 = vmatmul.mubr.bf16.gmra.mrb[56].mxu1 %v4642_v5  ;;  %v935_v5 = vld [vmem:[#allocation6 + $0x70] sm:$0xff]  ;;  %5777 = vst [vmem:[#allocation54_spill] sm:$0xff] %v4668_v22 }
 0x1f8   :  { %880 = vmatprep.mubr.bf16.mxu1 %v4644_v34  ;;  %v976_v34 = vpack.c.bf16 %v936_v10, %v935_v5  ;;  %v206_v10 = vld [vmem:[#allocation2 + $0x1b0] sm:$0xff]  ;;  %v209_v5 = vld [vmem:[#allocation2 + $0x1c8] sm:$0xff] }
 0x1f9   :  { %v4660_v25 = vpack.c.bf16 %v206_v10, %v204_v29  ;;  %v4662_v16 = vpack.c.bf16 %v211_v33, %v209_v5  ;;  %v4672_v29 = vpack.c.bf16 %v214_v28, %v212_v40 }
 0x1fa   :  { %3064 = vmatpush3.bf16.msra.mxu0 %v976_v34  ;;  %v208_v34 = vld [vmem:[#allocation2 + $0x1c0] sm:$0xff] }
 0x1fb   :  { %5774 = vst [vmem:[#allocation51_spill] sm:$0xff] %v4660_v25  ;;  %5775 = vst [vmem:[#allocation52_spill] sm:$0xff] %v4662_v16  ;;  %v4666_v2 = vpack.c.bf16 %v210_v42, %v208_v34 }
 0x1fc   :  { %5778 = vst [vmem:[#allocation55_spill] sm:$0xff] %v4672_v29 }
 0x1fd   :  { %5776 = vst [vmem:[#allocation53_spill] sm:$0xff] %v4666_v2 }
 0x1ff   :  { %881 = vmatmul.mubr.bf16.gmra.mrb[60].mxu1 %v4648_v18 }
 0x200   :  { %888 = vmatprep.mubr.bf16.mxu1 %v4650_v39 }
 0x207   :  { %889 = vmatmul.mubr.bf16.gmra.mrb[64].mxu1 %v4654_v21 }
 0x208   :  { %896 = vmatprep.mubr.bf16.mxu1 %v4656_v61 }
 0x20f   :  { %897 = vmatmul.mubr.bf16.gmra.mrb[68].mxu1 %v4660_v25 }
 0x210   :  { %904 = vmatprep.mubr.bf16.mxu1 %v4662_v16 }
 0x217   :  { %905 = vmatmul.mubr.bf16.gmra.mrb[72].mxu1 %v4666_v2 }
 0x218   :  { %912 = vmatprep.mubr.bf16.mxu1 %v4668_v22 }
 0x21f   :  { %913 = vmatmul.mubr.bf16.gmra.mrb[76].mxu1 %v4672_v29 }
 0x220   :  { %1265 = vmatprep.mubr.bf16.mxu1 %v4398_v43 }
 0x27a   :  { %v2953_v10 = vpop.f32.mrb[16].mxu1 }
 0x27b   :  { %v2954_v5 = vpop.f32.mrb[17].mxu1 }
 0x27c   :  { %v2955_v33 = vadd.f32 %v2954_v5, %v2953_v10  ;;  %v2956_v16 = vpop.f32.mrb[18].mxu1 }
 0x27d   :  { %v2957_v34 = vpop.f32.mrb[19].mxu1 }
 0x27e   :  { %v2958_v42 = vadd.f32 %v2957_v34, %v2956_v16 }
 0x280   :  { %v953_v1 = vpack.c.bf16 %v2958_v42, %v2955_v33 }
 0x282   :  { %v2959_v0 = vpop.f32.mrb[20].mxu1  ;;  %1024 = vmatprep.mubr.bf16.mxu0 %v953_v1 }
 0x283   :  { %v2960_v2 = vpop.f32.mrb[21].mxu1  ;;  %1025 = vmatmul.mubr.bf16.vlgmr.msra.gmra.mrb[16].mxu0 %v4480_v9 }
 0x284   :  { %v2961_v22 = vadd.f32 %v2960_v2, %v2959_v0  ;;  %v2962_v25 = vpop.f32.mrb[22].mxu1 }
 0x285   :  { %v2963_v40 = vpop.f32.mrb[23].mxu1 }
 0x286   :  { %v2964_v28 = vadd.f32 %v2963_v40, %v2962_v25 }
 0x288   :  { %v954_v61 = vpack.c.bf16 %v2964_v28, %v2961_v22 }
 0x28a   :  { %v2965_v29 = vpop.f32.mrb[24].mxu1  ;;  %1032 = vmatprep.mubr.bf16.mxu0 %v954_v61 }
 0x28b   :  { %v2966_v43 = vpop.f32.mrb[25].mxu1  ;;  %1033 = vmatmul.mubr.bf16.gmra.mrb[20].mxu0 %v4474_v41 }
 0x28c   :  { %v2967_v10 = vadd.f32 %v2966_v43, %v2965_v29  ;;  %v2968_v5 = vpop.f32.mrb[26].mxu1 }
 0x28d   :  { %v2969_v21 = vpop.f32.mrb[27].mxu1 }
 0x28e   :  { %v2970_v16 = vadd.f32 %v2969_v21, %v2968_v5 }
 0x290   :  { %v955_v33 = vpack.c.bf16 %v2970_v16, %v2967_v10 }
 0x292   :  { %v2971_v34 = vpop.f32.mrb[28].mxu1  ;;  %1040 = vmatprep.mubr.bf16.mxu0 %v955_v33 }
 0x293   :  { %v2972_v42 = vpop.f32.mrb[29].mxu1  ;;  %1041 = vmatmul.mubr.bf16.gmra.mrb[24].mxu0 %v4512_v15 }
 0x294   :  { %v2973_v9 = vadd.f32 %v2972_v42, %v2971_v34  ;;  %v2974_v2 = vpop.f32.mrb[30].mxu1 }
 0x295   :  { %v2975_v1 = vpop.f32.mrb[31].mxu1 }
 0x296   :  { %v2976_v25 = vadd.f32 %v2975_v1, %v2974_v2 }
 0x298   :  { %v956_v22 = vpack.c.bf16 %v2976_v25, %v2973_v9 }
 0x29a   :  { %v2977_v0 = vpop.f32.mrb[32].mxu1  ;;  %1048 = vmatprep.mubr.bf16.mxu0 %v956_v22 }
 0x29b   :  { %v2978_v61 = vpop.f32.mrb[33].mxu1  ;;  %1049 = vmatmul.mubr.bf16.gmra.mrb[28].mxu0 %v4505_v6 }
 0x29c   :  { %v2979_v43 = vadd.f32 %v2978_v61, %v2977_v0  ;;  %v2980_v41 = vpop.f32.mrb[34].mxu1 }
 0x29d   :  { %v2981_v29 = vpop.f32.mrb[35].mxu1 }
 0x29e   :  { %v2982_v21 = vadd.f32 %v2981_v29, %v2980_v41 }
 0x2a0   :  { %v957_v40 = vpack.c.bf16 %v2982_v21, %v2979_v43 }
 0x2a2   :  { %v2983_v28 = vpop.f32.mrb[36].mxu1  ;;  %1056 = vmatprep.mubr.bf16.mxu0 %v957_v40 }
 0x2a3   :  { %v2984_v10 = vpop.f32.mrb[37].mxu1  ;;  %1057 = vmatmul.mubr.bf16.gmra.mrb[32].mxu0 %v4544_v27 }
 0x2a4   :  { %v2985_v15 = vadd.f32 %v2984_v10, %v2983_v28  ;;  %v2986_v5 = vpop.f32.mrb[38].mxu1 }
 0x2a5   :  { %v2987_v16 = vpop.f32.mrb[39].mxu1 }
 0x2a6   :  { %v2988_v33 = vadd.f32 %v2987_v16, %v2986_v5 }
 0x2a8   :  { %v958_v34 = vpack.c.bf16 %v2988_v33, %v2985_v15 }
 0x2aa   :  { %v2989_v42 = vpop.f32.mrb[40].mxu1  ;;  %1064 = vmatprep.mubr.bf16.mxu0 %v958_v34 }
 0x2ab   :  { %v2990_v9 = vpop.f32.mrb[41].mxu1  ;;  %1065 = vmatmul.mubr.bf16.gmra.mrb[36].mxu0 %v4537_v23 }
 0x2ac   :  { %v2991_v6 = vadd.f32 %v2990_v9, %v2989_v42  ;;  %v2992_v2 = vpop.f32.mrb[42].mxu1 }
 0x2ad   :  { %v2993_v1 = vpop.f32.mrb[43].mxu1 }
 0x2ae   :  { %v2994_v25 = vadd.f32 %v2993_v1, %v2992_v2 }
 0x2b0   :  { %v959_v22 = vpack.c.bf16 %v2994_v25, %v2991_v6 }
 0x2b2   :  { %v2995_v0 = vpop.f32.mrb[44].mxu1  ;;  %1072 = vmatprep.mubr.bf16.mxu0 %v959_v22 }
 0x2b3   :  { %v2996_v61 = vpop.f32.mrb[45].mxu1  ;;  %1073 = vmatmul.mubr.bf16.gmra.mrb[40].mxu0 %v4574_v37 }
 0x2b4   :  { %v2997_v27 = vadd.f32 %v2996_v61, %v2995_v0  ;;  %v2998_v43 = vpop.f32.mrb[46].mxu1 }
 0x2b5   :  { %v2999_v41 = vpop.f32.mrb[47].mxu1 }
 0x2b6   :  { %v3000_v29 = vadd.f32 %v2999_v41, %v2998_v43 }
 0x2b8   :  { %v960_v21 = vpack.c.bf16 %v3000_v29, %v2997_v27 }
 0x2ba   :  { %v3001_v40 = vpop.f32.mrb[48].mxu1  ;;  %1080 = vmatprep.mubr.bf16.mxu0 %v960_v21 }
 0x2bb   :  { %v3002_v28 = vpop.f32.mrb[49].mxu1  ;;  %1081 = vmatmul.mubr.bf16.gmra.mrb[44].mxu0 %v4569_v19 }
 0x2bc   :  { %v3003_v23 = vadd.f32 %v3002_v28, %v3001_v40  ;;  %v3004_v10 = vpop.f32.mrb[50].mxu1 }
 0x2bd   :  { %v3005_v15 = vpop.f32.mrb[51].mxu1 }
 0x2be   :  { %v3006_v5 = vadd.f32 %v3005_v15, %v3004_v10 }
 0x2c0   :  { %v961_v16 = vpack.c.bf16 %v3006_v5, %v3003_v23 }
 0x2c2   :  { %v3007_v33 = vpop.f32.mrb[52].mxu1  ;;  %1088 = vmatprep.mubr.bf16.mxu0 %v961_v16 }
 0x2c3   :  { %v3008_v34 = vpop.f32.mrb[53].mxu1  ;;  %1089 = vmatmul.mubr.bf16.gmra.mrb[48].mxu0 %v4484_v14 }
 0x2c4   :  { %v3009_v37 = vadd.f32 %v3008_v34, %v3007_v33  ;;  %v3010_v42 = vpop.f32.mrb[54].mxu1 }
 0x2c5   :  { %v3011_v9 = vpop.f32.mrb[55].mxu1 }
 0x2c6   :  { %v3012_v6 = vadd.f32 %v3011_v9, %v3010_v42 }
 0x2c8   :  { %v962_v2 = vpack.c.bf16 %v3012_v6, %v3009_v37 }
 0x2ca   :  { %v3013_v1 = vpop.f32.mrb[56].mxu1  ;;  %1096 = vmatprep.mubr.bf16.mxu0 %v962_v2 }
 0x2cb   :  { %v3014_v25 = vpop.f32.mrb[57].mxu1  ;;  %1097 = vmatmul.mubr.bf16.gmra.mrb[52].mxu0 %v4478_v8 }
 0x2cc   :  { %v3015_v19 = vadd.f32 %v3014_v25, %v3013_v1  ;;  %v3016_v22 = vpop.f32.mrb[58].mxu1 }
 0x2cd   :  { %v3017_v0 = vpop.f32.mrb[59].mxu1 }
 0x2ce   :  { %v3018_v61 = vadd.f32 %v3017_v0, %v3016_v22 }
 0x2d0   :  { %v963_v27 = vpack.c.bf16 %v3018_v61, %v3015_v19 }
 0x2d2   :  { %v3019_v43 = vpop.f32.mrb[60].mxu1  ;;  %1104 = vmatprep.mubr.bf16.mxu0 %v963_v27 }
 0x2d3   :  { %v3020_v41 = vpop.f32.mrb[61].mxu1  ;;  %1105 = vmatmul.mubr.bf16.gmra.mrb[56].mxu0 %v4516_v20 }
 0x2d4   :  { %v3021_v14 = vadd.f32 %v3020_v41, %v3019_v43  ;;  %v3022_v29 = vpop.f32.mrb[62].mxu1 }
 0x2d5   :  { %v3023_v21 = vpop.f32.mrb[63].mxu1 }
 0x2d6   :  { %v3024_v40 = vadd.f32 %v3023_v21, %v3022_v29 }
 0x2d8   :  { %v964_v28 = vpack.c.bf16 %v3024_v40, %v3021_v14 }
 0x2da   :  { %v3025_v23 = vpop.f32.mrb[64].mxu1  ;;  %1112 = vmatprep.mubr.bf16.mxu0 %v964_v28 }
 0x2db   :  { %v3026_v10 = vpop.f32.mrb[65].mxu1  ;;  %1113 = vmatmul.mubr.bf16.gmra.mrb[60].mxu0 %v4510_v13 }
 0x2dc   :  { %v3027_v8 = vadd.f32 %v3026_v10, %v3025_v23  ;;  %v3028_v15 = vpop.f32.mrb[66].mxu1 }
 0x2dd   :  { %v3029_v5 = vpop.f32.mrb[67].mxu1 }
 0x2de   :  { %v3030_v16 = vadd.f32 %v3029_v5, %v3028_v15 }
 0x2e0   :  { %v965_v33 = vpack.c.bf16 %v3030_v16, %v3027_v8 }
 0x2e2   :  { %v3031_v34 = vpop.f32.mrb[68].mxu1  ;;  %1120 = vmatprep.mubr.bf16.mxu0 %v965_v33 }
 0x2e3   :  { %v3032_v37 = vpop.f32.mrb[69].mxu1  ;;  %1121 = vmatmul.mubr.bf16.gmra.mrb[64].mxu0 %v4548_v36 }
 0x2e4   :  { %v3033_v20 = vadd.f32 %v3032_v37, %v3031_v34  ;;  %v3034_v42 = vpop.f32.mrb[70].mxu1 }
 0x2e5   :  { %v3035_v9 = vpop.f32.mrb[71].mxu1 }
 0x2e6   :  { %v3036_v6 = vadd.f32 %v3035_v9, %v3034_v42 }
 0x2e8   :  { %v966_v2 = vpack.c.bf16 %v3036_v6, %v3033_v20 }
 0x2ea   :  { %v3037_v1 = vpop.f32.mrb[72].mxu1  ;;  %1128 = vmatprep.mubr.bf16.mxu0 %v966_v2 }
 0x2eb   :  { %v3038_v25 = vpop.f32.mrb[73].mxu1  ;;  %1129 = vmatmul.mubr.bf16.gmra.mrb[68].mxu0 %v4542_v26  ;;  %v4695_v26 = vld [vmem:[%s5647_s6] ss:$0 sm:$0xff] }
 0x2ec   :  { %v3039_v13 = vadd.f32 %v3038_v25, %v3037_v1  ;;  %v3040_v19 = vpop.f32.mrb[74].mxu1 }
 0x2ed   :  { %v3041_v22 = vpop.f32.mrb[75].mxu1 }
 0x2ee   :  { %v3042_v0 = vadd.f32 %v3041_v22, %v3040_v19 }
 0x2f0   :  { %v967_v61 = vpack.c.bf16 %v3042_v0, %v3039_v13 }
 0x2f2   :  { %v3043_v27 = vpop.f32.mrb[76].mxu1  ;;  %1136 = vmatprep.mubr.bf16.mxu0 %v967_v61 }
 0x2f3   :  { %v3044_v43 = vpop.f32.mrb[77].mxu1  ;;  %1137 = vmatmul.mubr.bf16.gmra.mrb[72].mxu0 %v4576_v38 }
 0x2f4   :  { %v3045_v36 = vadd.f32 %v3044_v43, %v3043_v27  ;;  %v3046_v41 = vpop.f32.mrb[78].mxu1 }
 0x2f5   :  { %v3047_v14 = vpop.f32.mrb[79].mxu1 }
 0x2f6   :  { %v3048_v29 = vadd.f32 %v3047_v14, %v3046_v41 }
 0x2f8   :  { %v968_v21 = vpack.c.bf16 %v3048_v29, %v3045_v36 }
 0x2fa   :  { %1144 = vmatprep.mubr.bf16.mxu0 %v968_v21 }
 0x2fb   :  { %1145 = vmatmul.mubr.bf16.gmra.mrb[76].mxu0 %v4572_v11 }
 0x356   :  { %v3065_v40 = vpop.f32.mrb[16].mxu0 }
 0x357   :  { %v3066_v28 = vpop.f32.mrb[17].mxu0 }
 0x358   :  { %v3067_v23 = vadd.f32 %v3066_v28, %v3065_v40  ;;  %v3068_v10 = vpop.f32.mrb[18].mxu0 }
 0x359   :  { %v3069_v8 = vpop.f32.mrb[19].mxu0 }
 0x35a   :  { %v1027_v38 = vadd.f32 %v3067_v23, %v4695_v26  ;;  %v3070_v15 = vadd.f32 %v3069_v8, %v3068_v10 }
 0x35c   :  { %v1153_v5 = vmax.f32 %v1027_v38, 0.0  ;;  %v1030_v16 = vadd.f32 %v3070_v15, %v4695_v26 }
 0x35e   :  { %v1154_v33 = vmax.f32 %v1030_v16, 0.0  ;;  %v3071_v34 = vpop.f32.mrb[20].mxu0  ;;  %v1185_v11 = vmul.f32 %v1153_v5, %v4403_v45 }
 0x35f   :  { %v3072_v37 = vpop.f32.mrb[21].mxu0 }
 0x360   :  { %v1186_v20 = vmul.f32 %v1154_v33, %v4407_v47  ;;  %v3073_v42 = vadd.f32 %v3072_v37, %v3071_v34  ;;  %v3074_v9 = vpop.f32.mrb[22].mxu0 }
 0x361   :  { %v3075_v6 = vpop.f32.mrb[23].mxu0 }
 0x362   :  { %v4701_v2 = vpack.c.bf16 %v1186_v20, %v1185_v11  ;;  %v1035_v1 = vadd.f32 %v3073_v42, %v4695_v26  ;;  %v3076_v25 = vadd.f32 %v3075_v6, %v3074_v9 }
 0x364   :  { %v1155_v13 = vmax.f32 %v1035_v1, 0.0  ;;  %v1038_v19 = vadd.f32 %v3076_v25, %v4695_v26 }
 0x366   :  { %v1156_v22 = vmax.f32 %v1038_v19, 0.0  ;;  %v3077_v0 = vpop.f32.mrb[24].mxu0  ;;  %v1187_v27 = vmul.f32 %v1155_v13, %v4413_v50 }
 0x367   :  { %v3078_v61 = vpop.f32.mrb[25].mxu0 }
 0x368   :  { %v1188_v43 = vmul.f32 %v1156_v22, %v4415_v51  ;;  %v3079_v36 = vadd.f32 %v3078_v61, %v3077_v0  ;;  %v3080_v41 = vpop.f32.mrb[26].mxu0 }
 0x369   :  { %v3081_v14 = vpop.f32.mrb[27].mxu0 }
 0x36a   :  { %v4707_v29 = vpack.c.bf16 %v1188_v43, %v1187_v27  ;;  %v1043_v21 = vadd.f32 %v3079_v36, %v4695_v26  ;;  %v3082_v40 = vadd.f32 %v3081_v14, %v3080_v41 }
 0x36c   :  { %v1157_v28 = vmax.f32 %v1043_v21, 0.0  ;;  %v1046_v23 = vadd.f32 %v3082_v40, %v4695_v26 }
 0x36e   :  { %v1158_v10 = vmax.f32 %v1046_v23, 0.0  ;;  %v3083_v8 = vpop.f32.mrb[28].mxu0  ;;  %v1189_v15 = vmul.f32 %v1157_v28, %v4421_v54 }
 0x36f   :  { %v3084_v38 = vpop.f32.mrb[29].mxu0 }
 0x370   :  { %v1190_v5 = vmul.f32 %v1158_v10, %v4423_v55  ;;  %v3085_v16 = vadd.f32 %v3084_v38, %v3083_v8  ;;  %v3086_v33 = vpop.f32.mrb[30].mxu0 }
 0x371   :  { %v3087_v34 = vpop.f32.mrb[31].mxu0 }
 0x372   :  { %v4713_v37 = vpack.c.bf16 %v1190_v5, %v1189_v15  ;;  %v1051_v11 = vadd.f32 %v3085_v16, %v4695_v26  ;;  %v3088_v20 = vadd.f32 %v3087_v34, %v3086_v33 }
 0x374   :  { %v1159_v42 = vmax.f32 %v1051_v11, 0.0  ;;  %v1054_v9 = vadd.f32 %v3088_v20, %v4695_v26 }
 0x376   :  { %v1160_v6 = vmax.f32 %v1054_v9, 0.0  ;;  %v3089_v1 = vpop.f32.mrb[32].mxu0  ;;  %v1191_v13 = vmul.f32 %v1159_v42, %v4429_v58 }
 0x377   :  { %v3090_v25 = vpop.f32.mrb[33].mxu0 }
 0x378   :  { %v1192_v19 = vmul.f32 %v1160_v6, %v4431_v59  ;;  %v3091_v22 = vadd.f32 %v3090_v25, %v3089_v1  ;;  %v3092_v0 = vpop.f32.mrb[34].mxu0 }
 0x379   :  { %v3093_v61 = vpop.f32.mrb[35].mxu0 }
 0x37a   :  { %v4719_v27 = vpack.c.bf16 %v1192_v19, %v1191_v13  ;;  %v1059_v43 = vadd.f32 %v3091_v22, %v4695_v26  ;;  %v3094_v36 = vadd.f32 %v3093_v61, %v3092_v0 }
 0x37c   :  { %v1161_v41 = vmax.f32 %v1059_v43, 0.0  ;;  %v1062_v14 = vadd.f32 %v3094_v36, %v4695_v26 }
 0x37e   :  { %v1162_v21 = vmax.f32 %v1062_v14, 0.0  ;;  %v3095_v40 = vpop.f32.mrb[36].mxu0  ;;  %v1193_v23 = vmul.f32 %v1161_v41, %v4437_v62 }
 0x37f   :  { %v3096_v28 = vpop.f32.mrb[37].mxu0 }
 0x380   :  { %v1194_v10 = vmul.f32 %v1162_v21, %v4439_v63  ;;  %v3097_v8 = vadd.f32 %v3096_v28, %v3095_v40  ;;  %v3098_v38 = vpop.f32.mrb[38].mxu0 }
 0x381   :  { %v3099_v15 = vpop.f32.mrb[39].mxu0 }
 0x382   :  { %v4725_v5 = vpack.c.bf16 %v1194_v10, %v1193_v23  ;;  %v1067_v16 = vadd.f32 %v3097_v8, %v4695_v26  ;;  %v3100_v33 = vadd.f32 %v3099_v15, %v3098_v38 }
 0x384   :  { %v1163_v34 = vmax.f32 %v1067_v16, 0.0  ;;  %v1070_v11 = vadd.f32 %v3100_v33, %v4695_v26 }
 0x386   :  { %v1164_v20 = vmax.f32 %v1070_v11, 0.0  ;;  %v3101_v42 = vpop.f32.mrb[40].mxu0  ;;  %v1195_v6 = vmul.f32 %v1163_v34, %v4450_v3 }
 0x387   :  { %v3102_v9 = vpop.f32.mrb[41].mxu0 }
 0x388   :  { %v1196_v1 = vmul.f32 %v1164_v20, %v4452_v4  ;;  %v3103_v25 = vadd.f32 %v3102_v9, %v3101_v42  ;;  %v3104_v13 = vpop.f32.mrb[42].mxu0 }
 0x389   :  { %v3105_v19 = vpop.f32.mrb[43].mxu0 }
 0x38a   :  { %v4731_v22 = vpack.c.bf16 %v1196_v1, %v1195_v6  ;;  %v1075_v0 = vadd.f32 %v3103_v25, %v4695_v26  ;;  %v3106_v61 = vadd.f32 %v3105_v19, %v3104_v13 }
 0x38c   :  { %v1165_v43 = vmax.f32 %v1075_v0, 0.0  ;;  %v1078_v36 = vadd.f32 %v3106_v61, %v4695_v26 }
 0x38e   :  { %v1166_v41 = vmax.f32 %v1078_v36, 0.0  ;;  %v3107_v14 = vpop.f32.mrb[44].mxu0  ;;  %v1197_v40 = vmul.f32 %v1165_v43, %v4493_v31 }
 0x38f   :  { %v3108_v21 = vpop.f32.mrb[45].mxu0 }
 0x390   :  { %v1198_v28 = vmul.f32 %v1166_v41, %v4495_v32  ;;  %v3109_v23 = vadd.f32 %v3108_v21, %v3107_v14  ;;  %v3110_v10 = vpop.f32.mrb[46].mxu0 }
 0x391   :  { %v3111_v8 = vpop.f32.mrb[47].mxu0 }
 0x392   :  { %v4737_v38 = vpack.c.bf16 %v1198_v28, %v1197_v40  ;;  %v1083_v15 = vadd.f32 %v3109_v23, %v4695_v26  ;;  %v3112_v16 = vadd.f32 %v3111_v8, %v3110_v10 }
 0x394   :  { %v1167_v33 = vmax.f32 %v1083_v15, 0.0  ;;  %v1086_v34 = vadd.f32 %v3112_v16, %v4695_v26 }
 0x396   :  { %v1168_v11 = vmax.f32 %v1086_v34, 0.0  ;;  %v3113_v20 = vpop.f32.mrb[48].mxu0  ;;  %v1199_v9 = vmul.f32 %v1167_v33, %v4556_v12 }
 0x397   :  { %v3114_v42 = vpop.f32.mrb[49].mxu0 }
 0x398   :  { %v1200_v6 = vmul.f32 %v1168_v11, %v4558_v17  ;;  %v3115_v1 = vadd.f32 %v3114_v42, %v3113_v20  ;;  %v3116_v25 = vpop.f32.mrb[50].mxu0 }
 0x399   :  { %v3117_v13 = vpop.f32.mrb[51].mxu0 }
 0x39a   :  { %v4743_v19 = vpack.c.bf16 %v1200_v6, %v1199_v9  ;;  %v1091_v0 = vadd.f32 %v3115_v1, %v4695_v26  ;;  %v3118_v61 = vadd.f32 %v3117_v13, %v3116_v25 }
 0x39c   :  { %v1169_v43 = vmax.f32 %v1091_v0, 0.0  ;;  %v1094_v36 = vadd.f32 %v3118_v61, %v4695_v26 }
 0x39e   :  { %v1170_v41 = vmax.f32 %v1094_v36, 0.0  ;;  %v3119_v14 = vpop.f32.mrb[52].mxu0  ;;  %v1201_v40 = vmul.f32 %v1169_v43, %v4401_v44 }
 0x39f   :  { %v3120_v21 = vpop.f32.mrb[53].mxu0 }
 0x3a0   :  { %v1202_v28 = vmul.f32 %v1170_v41, %v4405_v46  ;;  %v3121_v23 = vadd.f32 %v3120_v21, %v3119_v14  ;;  %v3122_v10 = vpop.f32.mrb[54].mxu0 }
 0x3a1   :  { %v3123_v8 = vpop.f32.mrb[55].mxu0 }
 0x3a2   :  { %v1099_v15 = vadd.f32 %v3121_v23, %v4695_v26  ;;  %v3124_v16 = vadd.f32 %v3123_v8, %v3122_v10  ;;  %v4750_v33 = vpack.c.bf16 %v1202_v28, %v1201_v40 }
 0x3a4   :  { %v1171_v34 = vmax.f32 %v1099_v15, 0.0  ;;  %v1102_v11 = vadd.f32 %v3124_v16, %v4695_v26  ;;  %3161 = vmatprep.subr.bf16.mxu1 %v4750_v33 }
 0x3a5   :  { %3162 = vmatpush3.bf16.msra.mxu1 %v4701_v2 }
 0x3a6   :  { %v1172_v20 = vmax.f32 %v1102_v11, 0.0  ;;  %v3125_v42 = vpop.f32.mrb[56].mxu0  ;;  %v1203_v6 = vmul.f32 %v1171_v34, %v4409_v48 }
 0x3a7   :  { %v3126_v9 = vpop.f32.mrb[57].mxu0 }
 0x3a8   :  { %v1204_v1 = vmul.f32 %v1172_v20, %v4411_v49  ;;  %v3127_v25 = vadd.f32 %v3126_v9, %v3125_v42  ;;  %v3128_v13 = vpop.f32.mrb[58].mxu0 }
 0x3a9   :  { %v3129_v0 = vpop.f32.mrb[59].mxu0 }
 0x3aa   :  { %v1107_v61 = vadd.f32 %v3127_v25, %v4695_v26  ;;  %v3130_v43 = vadd.f32 %v3129_v0, %v3128_v13  ;;  %v4758_v36 = vpack.c.bf16 %v1204_v1, %v1203_v6 }
 0x3ac   :  { %v1173_v41 = vmax.f32 %v1107_v61, 0.0  ;;  %v1110_v14 = vadd.f32 %v3130_v43, %v4695_v26  ;;  %3163 = vmatprep.subr.bf16.mxu1 %v4758_v36 }
 0x3ad   :  { %3164 = vmatpush3.bf16.msra.mxu1 %v4707_v29 }
 0x3ae   :  { %v1174_v21 = vmax.f32 %v1110_v14, 0.0  ;;  %v3131_v40 = vpop.f32.mrb[60].mxu0  ;;  %v1205_v23 = vmul.f32 %v1173_v41, %v4417_v52 }
 0x3af   :  { %v3132_v28 = vpop.f32.mrb[61].mxu0 }
 0x3b0   :  { %v1206_v10 = vmul.f32 %v1174_v21, %v4419_v53  ;;  %v3133_v8 = vadd.f32 %v3132_v28, %v3131_v40  ;;  %v3134_v15 = vpop.f32.mrb[62].mxu0 }
 0x3b1   :  { %v3135_v16 = vpop.f32.mrb[63].mxu0 }
 0x3b2   :  { %v1115_v34 = vadd.f32 %v3133_v8, %v4695_v26  ;;  %v3136_v11 = vadd.f32 %v3135_v16, %v3134_v15  ;;  %v4766_v20 = vpack.c.bf16 %v1206_v10, %v1205_v23 }
 0x3b4   :  { %v1175_v42 = vmax.f32 %v1115_v34, 0.0  ;;  %v1118_v9 = vadd.f32 %v3136_v11, %v4695_v26  ;;  %3165 = vmatprep.subr.bf16.mxu1 %v4766_v20  ;;  %v5779_v34 = vld [vmem:[#allocation22_spill] sm:$0xff] }
 0x3b5   :  { %3166 = vmatpush3.bf16.msra.mxu1 %v4713_v37 }
 0x3b6   :  { %v1176_v6 = vmax.f32 %v1118_v9, 0.0  ;;  %v3137_v1 = vpop.f32.mrb[64].mxu0  ;;  %v1207_v13 = vmul.f32 %v1175_v42, %v4425_v56 }
 0x3b7   :  { %v3138_v25 = vpop.f32.mrb[65].mxu0 }
 0x3b8   :  { %v1208_v0 = vmul.f32 %v1176_v6, %v4427_v57  ;;  %v3139_v61 = vadd.f32 %v3138_v25, %v3137_v1  ;;  %v3140_v43 = vpop.f32.mrb[66].mxu0  ;;  %v1414_v57 = vld [vmem:[#allocation7 + $0xa0] sm:$0xff] }
 0x3b9   :  { %v3141_v41 = vpop.f32.mrb[67].mxu0 }
 0x3ba   :  { %v1123_v14 = vadd.f32 %v3139_v61, %v4695_v26  ;;  %v3142_v21 = vadd.f32 %v3141_v41, %v3140_v43  ;;  %v4774_v40 = vpack.c.bf16 %v1208_v0, %v1207_v13 }
 0x3bc   :  { %v1177_v28 = vmax.f32 %v1123_v14, 0.0  ;;  %v1126_v23 = vadd.f32 %v3142_v21, %v4695_v26  ;;  %3167 = vmatprep.subr.bf16.mxu1 %v4774_v40  ;;  %v5780_v21 = vld [vmem:[#allocation23_spill] sm:$0xff] }
 0x3bd   :  { %3168 = vmatpush3.bf16.msra.mxu1 %v4719_v27 }
 0x3be   :  { %v1178_v10 = vmax.f32 %v1126_v23, 0.0  ;;  %v3143_v8 = vpop.f32.mrb[68].mxu0  ;;  %v1209_v16 = vmul.f32 %v1177_v28, %v4433_v60  ;;  %v5781_v23 = vld [vmem:[#allocation24_spill] sm:$0xff] }
 0x3bf   :  { %v3144_v15 = vpop.f32.mrb[69].mxu0 }
 0x3c0   :  { %v1210_v11 = vmul.f32 %v1178_v10, %v5779_v34  ;;  %v3145_v42 = vadd.f32 %v3144_v15, %v3143_v8  ;;  %v3146_v9 = vpop.f32.mrb[70].mxu0 }
 0x3c1   :  { %v3147_v6 = vpop.f32.mrb[71].mxu0 }
 0x3c2   :  { %v1131_v1 = vadd.f32 %v3145_v42, %v4695_v26  ;;  %v3148_v25 = vadd.f32 %v3147_v6, %v3146_v9  ;;  %v4782_v13 = vpack.c.bf16 %v1210_v11, %v1209_v16 }
 0x3c4   :  { %v1179_v0 = vmax.f32 %v1131_v1, 0.0  ;;  %v1134_v61 = vadd.f32 %v3148_v25, %v4695_v26  ;;  %3169 = vmatprep.subr.bf16.mxu1 %v4782_v13 }
 0x3c5   :  { %3170 = vmatpush3.bf16.msra.mxu1 %v4725_v5 }
 0x3c6   :  { %v1180_v43 = vmax.f32 %v1134_v61, 0.0  ;;  %v3149_v41 = vpop.f32.mrb[72].mxu0  ;;  %v1211_v28 = vmul.f32 %v1179_v0, %v5780_v21  ;;  %v5782_v21 = vld [vmem:[#allocation25_spill] sm:$0xff] }
 0x3c7   :  { %v3150_v14 = vpop.f32.mrb[73].mxu0 }
 0x3c8   :  { %v1212_v10 = vmul.f32 %v1180_v43, %v5781_v23  ;;  %v3151_v8 = vadd.f32 %v3150_v14, %v3149_v41  ;;  %v3152_v15 = vpop.f32.mrb[74].mxu0  ;;  %v5783_v41 = vld [vmem:[#allocation26_spill] sm:$0xff] }
 0x3c9   :  { %v3153_v42 = vpop.f32.mrb[75].mxu0 }
 0x3ca   :  { %v1139_v16 = vadd.f32 %v3151_v8, %v4695_v26  ;;  %v3154_v11 = vadd.f32 %v3153_v42, %v3152_v15  ;;  %v4790_v9 = vpack.c.bf16 %v1212_v10, %v1211_v28 }
 0x3cc   :  { %v1181_v6 = vmax.f32 %v1139_v16, 0.0  ;;  %v1142_v1 = vadd.f32 %v3154_v11, %v4695_v26  ;;  %3171 = vmatprep.subr.bf16.mxu1 %v4790_v9 }
 0x3cd   :  { %3172 = vmatpush3.bf16.msra.mxu1 %v4731_v22 }
 0x3ce   :  { %v1182_v25 = vmax.f32 %v1142_v1, 0.0  ;;  %v3155_v61 = vpop.f32.mrb[76].mxu0  ;;  %v1213_v43 = vmul.f32 %v1181_v6, %v5782_v21  ;;  %v5784_v1 = vld [vmem:[#allocation27_spill] sm:$0xff]  ;;  %v5785_v21 = vld [vmem:[#allocation28_spill] sm:$0xff] }
 0x3cf   :  { %v3156_v0 = vpop.f32.mrb[77].mxu0 }
 0x3d0   :  { %v1214_v14 = vmul.f32 %v1182_v25, %v5783_v41  ;;  %v3157_v23 = vadd.f32 %v3156_v0, %v3155_v61  ;;  %v3158_v34 = vpop.f32.mrb[78].mxu0  ;;  %v1410_v61 = vld [vmem:[#allocation7 + $0x80] sm:$0xff]  ;;  %v1411_v0 = vld [vmem:[#allocation7 + $0x88] sm:$0xff] }
 0x3d1   :  { %v3159_v8 = vpop.f32.mrb[79].mxu0  ;;  %v1394_v41 = vld [vmem:[#allocation7] sm:$0xff]  ;;  %v1450_v60 = vpack.c.bf16 %v1411_v0, %v1410_v61  ;;  %v1399_v0 = vld [vmem:[#allocation7 + $0x28] sm:$0xff] }
 0x3d2   :  { %v1147_v28 = vadd.f32 %v3157_v23, %v4695_v26  ;;  %v3160_v10 = vadd.f32 %v3159_v8, %v3158_v34  ;;  %v4798_v15 = vpack.c.bf16 %v1214_v14, %v1213_v43  ;;  %v1395_v23 = vld [vmem:[#allocation7 + $0x8] sm:$0xff]  ;;  %v1412_v34 = vld [vmem:[#allocation7 + $0x90] sm:$0xff]  ;;  %v1413_v43 = vld [vmem:[#allocation7 + $0x98] sm:$0xff] }
 0x3d3   :  { %v1442_v8 = vpack.c.bf16 %v1395_v23, %v1394_v41  ;;  %3273 = vmatprep.subr.bf16.mxu0 %v1450_v60  ;;  %v1398_v61 = vld [vmem:[#allocation7 + $0x20] sm:$0xff]  ;;  %v1400_v23 = vld [vmem:[#allocation7 + $0x30] sm:$0xff] }
 0x3d4   :  { %v1183_v42 = vmax.f32 %v1147_v28, 0.0  ;;  %v1150_v16 = vadd.f32 %v3160_v10, %v4695_v26  ;;  %3173 = vmatprep.subr.bf16.mxu1 %v4798_v15  ;;  %v1451_v26 = vpack.c.bf16 %v1413_v43, %v1412_v34  ;;  %v1396_v28 = vld [vmem:[#allocation7 + $0x10] sm:$0xff]  ;;  %v1397_v10 = vld [vmem:[#allocation7 + $0x18] sm:$0xff]  ;;  %v1444_v41 = vpack.c.bf16 %v1399_v0, %v1398_v61  ;;  %v1418_v43 = vld [vmem:[#allocation7 + $0xc0] sm:$0xff] }
 0x3d5   :  { %3174 = vmatpush3.bf16.msra.mxu1 %v4737_v38  ;;  %3274 = vmatpush3.bf16.msra.mxu0 %v1442_v8  ;;  %v1401_v34 = vld [vmem:[#allocation7 + $0x38] sm:$0xff]  ;;  %v1419_v8 = vld [vmem:[#allocation7 + $0xc8] sm:$0xff] }
 0x3d6   :  { %v1184_v11 = vmax.f32 %v1150_v16, 0.0  ;;  %v1215_v6 = vmul.f32 %v1183_v42, %v5784_v1  ;;  %v1415_v16 = vld [vmem:[#allocation7 + $0xa8] sm:$0xff]  ;;  %v1443_v42 = vpack.c.bf16 %v1397_v10, %v1396_v28  ;;  %3275 = vmatprep.subr.bf16.mxu0 %v1451_v26  ;;  %v1445_v28 = vpack.c.bf16 %v1401_v34, %v1400_v23  ;;  %v1402_v26 = vld [vmem:[#allocation7 + $0x40] sm:$0xff]  ;;  %v1421_v1 = vld [vmem:[#allocation7 + $0xd8] sm:$0xff] }
 0x3d7   :  { %v1403_v10 = vld [vmem:[#allocation7 + $0x48] sm:$0xff]  ;;  %v1405_v61 = vld [vmem:[#allocation7 + $0x58] sm:$0xff]  ;;  %v5790_v23 = vld [vmem:[#allocation33_spill] sm:$0xff] }
 0x3d8   :  { %v1216_v25 = vmul.f32 %v1184_v11, %v5785_v21  ;;  %v1452_v11 = vpack.c.bf16 %v1415_v16, %v1414_v57  ;;  %v1416_v21 = vld [vmem:[#allocation7 + $0xb0] sm:$0xff]  ;;  %v1454_v57 = vpack.c.bf16 %v1419_v8, %v1418_v43  ;;  %v5791_v34 = vld [vmem:[#allocation34_spill] sm:$0xff]  ;;  %v5794_v8 = vld [vmem:[#allocation37_spill] sm:$0xff] }
 0x3d9   :  { %3276 = vmatpush3.bf16.msra.mxu0 %v1443_v42  ;;  %v1420_v16 = vld [vmem:[#allocation7 + $0xd0] sm:$0xff]  ;;  %v1446_v42 = vpack.c.bf16 %v1403_v10, %v1402_v26  ;;  %v5797_v26 = vld [vmem:[#allocation40_spill] sm:$0xff]  ;;  %v5798_v10 = vld [vmem:[#allocation41_spill] sm:$0xff] }
 0x3da   :  { %v4805_v14 = vpack.c.bf16 %v1216_v25, %v1215_v6  ;;  %v1417_v6 = vld [vmem:[#allocation7 + $0xb8] sm:$0xff]  ;;  %v5786_v25 = vld [vmem:[#allocation29_spill] sm:$0xff]  ;;  %3277 = vmatprep.subr.bf16.mxu0 %v1452_v11  ;;  %v1404_v11 = vld [vmem:[#allocation7 + $0x50] sm:$0xff] }
 0x3db   :  { %v1453_v60 = vpack.c.bf16 %v1417_v6, %v1416_v21  ;;  %v1455_v21 = vpack.c.bf16 %v1421_v1, %v1420_v16  ;;  %v1447_v0 = vpack.c.bf16 %v1405_v61, %v1404_v11  ;;  %v5787_v6 = vld [vmem:[#allocation30_spill] sm:$0xff]  ;;  %v5792_v43 = vld [vmem:[#allocation35_spill] sm:$0xff]  ;;  %v5793_v1 = vld [vmem:[#allocation36_spill] sm:$0xff] }
 0x3dc   :  { %3175 = vmatprep.subr.bf16.mxu1 %v4805_v14  ;;  %v5799_v16 = vld [vmem:[#allocation42_spill] sm:$0xff]  ;;  %v5802_v11 = vld [vmem:[#allocation45_spill] sm:$0xff] }
 0x3dd   :  { %3176 = vmatpush3.bf16.msra.mxu1 %v4743_v19  ;;  %3278 = vmatpush3.bf16.msra.mxu0 %v1444_v41  ;;  %v5788_v41 = vld [vmem:[#allocation31_spill] sm:$0xff]  ;;  %v5803_v61 = vld [vmem:[#allocation46_spill] sm:$0xff] }
 0x3de   :  { %3279 = vmatprep.subr.bf16.mxu0 %v1453_v60  ;;  %v5789_v60 = vld [vmem:[#allocation32_spill] sm:$0xff] }
 0x3e0   :  { %1266 = vmatmul.mubr.bf16.vlgmr.msra.gmra.mrb[80].mxu1 %v4581_v30 }
 0x3e1   :  { %1273 = vmatprep.mubr.bf16.mxu1 %v5786_v25  ;;  %3280 = vmatpush3.bf16.msra.mxu0 %v1445_v28  ;;  %v5795_v28 = vld [vmem:[#allocation38_spill] sm:$0xff] }
 0x3e2   :  { %3281 = vmatprep.subr.bf16.mxu0 %v1454_v57  ;;  %v5796_v57 = vld [vmem:[#allocation39_spill] sm:$0xff] }
 0x3e5   :  { %3282 = vmatpush3.bf16.msra.mxu0 %v1446_v42  ;;  %v5800_v42 = vld [vmem:[#allocation43_spill] sm:$0xff] }
 0x3e6   :  { %3283 = vmatprep.subr.bf16.mxu0 %v1455_v21  ;;  %v5801_v21 = vld [vmem:[#allocation44_spill] sm:$0xff] }
 0x3e8   :  { %1274 = vmatmul.mubr.bf16.gmra.mrb[84].mxu1 %v4588_v35 }
 0x3e9   :  { %1281 = vmatprep.mubr.bf16.mxu1 %v4590_v7  ;;  %3284 = vmatpush3.bf16.msra.mxu0 %v1447_v0  ;;  %v1422_v0 = vld [vmem:[#allocation7 + $0xe0] sm:$0xff] }
 0x3f0   :  { %1282 = vmatmul.mubr.bf16.gmra.mrb[88].mxu1 %v4594_v24 }
 0x3f1   :  { %1289 = vmatprep.mubr.bf16.mxu1 %v5787_v6 }
 0x3f8   :  { %1290 = vmatmul.mubr.bf16.gmra.mrb[92].mxu1 %v5788_v41 }
 0x3f9   :  { %1297 = vmatprep.mubr.bf16.mxu1 %v5789_v60 }
 0x400   :  { %1298 = vmatmul.mubr.bf16.gmra.mrb[96].mxu1 %v5790_v23  ;;  %v1409_v23 = vld [vmem:[#allocation7 + $0x78] sm:$0xff] }
 0x401   :  { %1305 = vmatprep.mubr.bf16.mxu1 %v5791_v34 }
 0x408   :  { %1306 = vmatmul.mubr.bf16.gmra.mrb[100].mxu1 %v5792_v43  ;;  %v1407_v43 = vld [vmem:[#allocation7 + $0x68] sm:$0xff] }
 0x409   :  { %1313 = vmatprep.mubr.bf16.mxu1 %v5793_v1 }
 0x410   :  { %1314 = vmatmul.mubr.bf16.gmra.mrb[104].mxu1 %v5794_v8  ;;  %v1423_v8 = vld [vmem:[#allocation7 + $0xe8] sm:$0xff] }
 0x411   :  { %1321 = vmatprep.mubr.bf16.mxu1 %v5795_v28  ;;  %v1456_v1 = vpack.c.bf16 %v1423_v8, %v1422_v0  ;;  %v1406_v28 = vld [vmem:[#allocation7 + $0x60] sm:$0xff]  ;;  %v5805_v8 = vld [vmem:[#allocation50_spill] sm:$0xff]  ;;  %v5806_v0 = vld [vmem:[#allocation51_spill] sm:$0xff] }
 0x413   :  { %3285 = vmatprep.subr.bf16.mxu0 %v1456_v1  ;;  %v5808_v1 = vld [vmem:[#allocation53_spill] sm:$0xff] }
 0x418   :  { %1322 = vmatmul.mubr.bf16.gmra.mrb[108].mxu1 %v5796_v57  ;;  %v1448_v57 = vpack.c.bf16 %v1407_v43, %v1406_v28  ;;  %v5807_v43 = vld [vmem:[#allocation52_spill] sm:$0xff]  ;;  %v5809_v28 = vld [vmem:[#allocation54_spill] sm:$0xff] }
 0x419   :  { %1329 = vmatprep.mubr.bf16.mxu1 %v5797_v26  ;;  %v1424_v26 = vld [vmem:[#allocation7 + $0xf0] sm:$0xff] }
 0x41a   :  { %3286 = vmatpush3.bf16.msra.mxu0 %v1448_v57  ;;  %v5810_v57 = vld [vmem:[#allocation55_spill] sm:$0xff] }
 0x420   :  { %1330 = vmatmul.mubr.bf16.gmra.mrb[112].mxu1 %v5798_v10  ;;  %v1425_v10 = vld [vmem:[#allocation7 + $0xf8] sm:$0xff] }
 0x421   :  { %1337 = vmatprep.mubr.bf16.mxu1 %v5799_v16  ;;  %v1457_v34 = vpack.c.bf16 %v1425_v10, %v1424_v26  ;;  %v1408_v16 = vld [vmem:[#allocation7 + $0x70] sm:$0xff] }
 0x423   :  { %3287 = vmatprep.subr.bf16.mxu0 %v1457_v34 }
 0x428   :  { %1338 = vmatmul.mubr.bf16.gmra.mrb[116].mxu1 %v5800_v42  ;;  %v1449_v42 = vpack.c.bf16 %v1409_v23, %v1408_v16  ;;  %v5811_v23 = vld [vmem:[#allocation17_spill] sm:$0xff] }
 0x429   :  { %1345 = vmatprep.mubr.bf16.mxu1 %v5801_v21 }
 0x42a   :  { %3288 = vmatpush3.bf16.msra.mxu0 %v1449_v42 }
 0x430   :  { %1346 = vmatmul.mubr.bf16.gmra.mrb[120].mxu1 %v5802_v11 }
 0x431   :  { %1353 = vmatprep.mubr.bf16.mxu1 %v5803_v61  ;;  %v5804_v61 = vld [vmem:[#allocation49_spill] sm:$0xff] }
 0x438   :  { %1354 = vmatmul.mubr.bf16.gmra.mrb[124].mxu1 %v4648_v18 }
 0x439   :  { %1361 = vmatprep.mubr.bf16.mxu1 %v4650_v39 }
 0x440   :  { %1362 = vmatmul.mubr.bf16.gmra.mrb[128].mxu1 %v5804_v61 }
 0x441   :  { %1369 = vmatprep.mubr.bf16.mxu1 %v5805_v8 }
 0x448   :  { %1370 = vmatmul.mubr.bf16.gmra.mrb[132].mxu1 %v5806_v0 }
 0x449   :  { %1377 = vmatprep.mubr.bf16.mxu1 %v5807_v43 }
 0x450   :  { %1378 = vmatmul.mubr.bf16.gmra.mrb[136].mxu1 %v5808_v1 }
 0x451   :  { %1385 = vmatprep.mubr.bf16.mxu1 %v5809_v28 }
 0x458   :  { %1386 = vmatmul.mubr.bf16.gmra.mrb[140].mxu1 %v5810_v57 }
 0x459   :  { %1738 = vmatprep.mubr.bf16.mxu1 %v5811_v23 }
 0x4b3   :  { %v3177_v34 = vpop.f32.mrb[80].mxu1 }
 0x4b4   :  { %v3178_v26 = vpop.f32.mrb[81].mxu1 }
 0x4b5   :  { %v3179_v10 = vadd.f32 %v3178_v26, %v3177_v34  ;;  %v3180_v16 = vpop.f32.mrb[82].mxu1 }
 0x4b6   :  { %v3181_v42 = vpop.f32.mrb[83].mxu1 }
 0x4b7   :  { %v3182_v61 = vadd.f32 %v3181_v42, %v3180_v16 }
 0x4b9   :  { %v1426_v39 = vpack.c.bf16 %v3182_v61, %v3179_v10 }
 0x4bb   :  { %v3183_v8 = vpop.f32.mrb[84].mxu1  ;;  %1497 = vmatprep.mubr.bf16.mxu0 %v1426_v39 }
 0x4bc   :  { %v3184_v0 = vpop.f32.mrb[85].mxu1  ;;  %1498 = vmatmul.mubr.bf16.vlgmr.msra.gmra.mrb[80].mxu0 %v4701_v2 }
 0x4bd   :  { %v3185_v43 = vadd.f32 %v3184_v0, %v3183_v8  ;;  %v3186_v1 = vpop.f32.mrb[86].mxu1 }
 0x4be   :  { %v3187_v18 = vpop.f32.mrb[87].mxu1 }
 0x4bf   :  { %v3188_v28 = vadd.f32 %v3187_v18, %v3186_v1 }
 0x4c1   :  { %v1427_v11 = vpack.c.bf16 %v3188_v28, %v3185_v43 }
 0x4c3   :  { %v3189_v57 = vpop.f32.mrb[88].mxu1  ;;  %1505 = vmatprep.mubr.bf16.mxu0 %v1427_v11 }
 0x4c4   :  { %v3190_v23 = vpop.f32.mrb[89].mxu1  ;;  %1506 = vmatmul.mubr.bf16.gmra.mrb[84].mxu0 %v4707_v29 }
 0x4c5   :  { %v3191_v34 = vadd.f32 %v3190_v23, %v3189_v57  ;;  %v3192_v26 = vpop.f32.mrb[90].mxu1 }
 0x4c6   :  { %v3193_v21 = vpop.f32.mrb[91].mxu1 }
 0x4c7   :  { %v3194_v16 = vadd.f32 %v3193_v21, %v3192_v26 }
 0x4c9   :  { %v1428_v61 = vpack.c.bf16 %v3194_v16, %v3191_v34 }
 0x4cb   :  { %v3195_v10 = vpop.f32.mrb[92].mxu1  ;;  %1513 = vmatprep.mubr.bf16.mxu0 %v1428_v61 }
 0x4cc   :  { %v3196_v39 = vpop.f32.mrb[93].mxu1  ;;  %1514 = vmatmul.mubr.bf16.gmra.mrb[88].mxu0 %v4713_v37 }
 0x4cd   :  { %v3197_v2 = vadd.f32 %v3196_v39, %v3195_v10  ;;  %v3198_v8 = vpop.f32.mrb[94].mxu1 }
 0x4ce   :  { %v3199_v0 = vpop.f32.mrb[95].mxu1 }
 0x4cf   :  { %v3200_v18 = vadd.f32 %v3199_v0, %v3198_v8 }
 0x4d1   :  { %v1429_v43 = vpack.c.bf16 %v3200_v18, %v3197_v2 }
 0x4d3   :  { %v3201_v1 = vpop.f32.mrb[96].mxu1  ;;  %1521 = vmatprep.mubr.bf16.mxu0 %v1429_v43 }
 0x4d4   :  { %v3202_v11 = vpop.f32.mrb[97].mxu1  ;;  %1522 = vmatmul.mubr.bf16.gmra.mrb[92].mxu0 %v4719_v27 }
 0x4d5   :  { %v3203_v29 = vadd.f32 %v3202_v11, %v3201_v1  ;;  %v3204_v28 = vpop.f32.mrb[98].mxu1 }
 0x4d6   :  { %v3205_v57 = vpop.f32.mrb[99].mxu1 }
 0x4d7   :  { %v3206_v21 = vadd.f32 %v3205_v57, %v3204_v28 }
 0x4d9   :  { %v1430_v42 = vpack.c.bf16 %v3206_v21, %v3203_v29 }
 0x4db   :  { %v3207_v23 = vpop.f32.mrb[100].mxu1  ;;  %1529 = vmatprep.mubr.bf16.mxu0 %v1430_v42 }
 0x4dc   :  { %v3208_v34 = vpop.f32.mrb[101].mxu1  ;;  %1530 = vmatmul.mubr.bf16.gmra.mrb[96].mxu0 %v4725_v5 }
 0x4dd   :  { %v3209_v37 = vadd.f32 %v3208_v34, %v3207_v23  ;;  %v3210_v26 = vpop.f32.mrb[102].mxu1 }
 0x4de   :  { %v3211_v16 = vpop.f32.mrb[103].mxu1 }
 0x4df   :  { %v3212_v61 = vadd.f32 %v3211_v16, %v3210_v26 }
 0x4e1   :  { %v1431_v10 = vpack.c.bf16 %v3212_v61, %v3209_v37 }
 0x4e3   :  { %v3213_v39 = vpop.f32.mrb[104].mxu1  ;;  %1537 = vmatprep.mubr.bf16.mxu0 %v1431_v10 }
 0x4e4   :  { %v3214_v2 = vpop.f32.mrb[105].mxu1  ;;  %1538 = vmatmul.mubr.bf16.gmra.mrb[100].mxu0 %v4731_v22 }
 0x4e5   :  { %v3215_v27 = vadd.f32 %v3214_v2, %v3213_v39  ;;  %v3216_v8 = vpop.f32.mrb[106].mxu1 }
 0x4e6   :  { %v3217_v0 = vpop.f32.mrb[107].mxu1 }
 0x4e7   :  { %v3218_v18 = vadd.f32 %v3217_v0, %v3216_v8 }
 0x4e9   :  { %v1432_v43 = vpack.c.bf16 %v3218_v18, %v3215_v27 }
 0x4eb   :  { %v3219_v1 = vpop.f32.mrb[108].mxu1  ;;  %1545 = vmatprep.mubr.bf16.mxu0 %v1432_v43 }
 0x4ec   :  { %v3220_v11 = vpop.f32.mrb[109].mxu1  ;;  %1546 = vmatmul.mubr.bf16.gmra.mrb[104].mxu0 %v4737_v38 }
 0x4ed   :  { %v3221_v5 = vadd.f32 %v3220_v11, %v3219_v1  ;;  %v3222_v29 = vpop.f32.mrb[110].mxu1 }
 0x4ee   :  { %v3223_v28 = vpop.f32.mrb[111].mxu1 }
 0x4ef   :  { %v3224_v57 = vadd.f32 %v3223_v28, %v3222_v29 }
 0x4f1   :  { %v1433_v21 = vpack.c.bf16 %v3224_v57, %v3221_v5 }
 0x4f3   :  { %v3225_v42 = vpop.f32.mrb[112].mxu1  ;;  %1553 = vmatprep.mubr.bf16.mxu0 %v1433_v21 }
 0x4f4   :  { %v3226_v23 = vpop.f32.mrb[113].mxu1  ;;  %1554 = vmatmul.mubr.bf16.gmra.mrb[108].mxu0 %v4743_v19 }
 0x4f5   :  { %v3227_v22 = vadd.f32 %v3226_v23, %v3225_v42  ;;  %v3228_v34 = vpop.f32.mrb[114].mxu1 }
 0x4f6   :  { %v3229_v37 = vpop.f32.mrb[115].mxu1 }
 0x4f7   :  { %v3230_v26 = vadd.f32 %v3229_v37, %v3228_v34 }
 0x4f9   :  { %v1434_v16 = vpack.c.bf16 %v3230_v26, %v3227_v22 }
 0x4fb   :  { %v3231_v61 = vpop.f32.mrb[116].mxu1  ;;  %1561 = vmatprep.mubr.bf16.mxu0 %v1434_v16 }
 0x4fc   :  { %v3232_v10 = vpop.f32.mrb[117].mxu1  ;;  %1562 = vmatmul.mubr.bf16.gmra.mrb[112].mxu0 %v4750_v33 }
 0x4fd   :  { %v3233_v38 = vadd.f32 %v3232_v10, %v3231_v61  ;;  %v3234_v39 = vpop.f32.mrb[118].mxu1 }
 0x4fe   :  { %v3235_v2 = vpop.f32.mrb[119].mxu1 }
 0x4ff   :  { %v3236_v27 = vadd.f32 %v3235_v2, %v3234_v39 }
 0x501   :  { %v1435_v8 = vpack.c.bf16 %v3236_v27, %v3233_v38 }
 0x503   :  { %v3237_v0 = vpop.f32.mrb[120].mxu1  ;;  %1569 = vmatprep.mubr.bf16.mxu0 %v1435_v8 }
 0x504   :  { %v3238_v18 = vpop.f32.mrb[121].mxu1  ;;  %1570 = vmatmul.mubr.bf16.gmra.mrb[116].mxu0 %v4758_v36 }
 0x505   :  { %v3239_v19 = vadd.f32 %v3238_v18, %v3237_v0  ;;  %v3240_v43 = vpop.f32.mrb[122].mxu1 }
 0x506   :  { %v3241_v1 = vpop.f32.mrb[123].mxu1 }
 0x507   :  { %v3242_v11 = vadd.f32 %v3241_v1, %v3240_v43 }
 0x509   :  { %v1436_v5 = vpack.c.bf16 %v3242_v11, %v3239_v19 }
 0x50b   :  { %v3243_v29 = vpop.f32.mrb[124].mxu1  ;;  %1577 = vmatprep.mubr.bf16.mxu0 %v1436_v5 }
 0x50c   :  { %v3244_v28 = vpop.f32.mrb[125].mxu1  ;;  %1578 = vmatmul.mubr.bf16.gmra.mrb[120].mxu0 %v4766_v20 }
 0x50d   :  { %v3245_v33 = vadd.f32 %v3244_v28, %v3243_v29  ;;  %v3246_v57 = vpop.f32.mrb[126].mxu1 }
 0x50e   :  { %v3247_v21 = vpop.f32.mrb[127].mxu1 }
 0x50f   :  { %v3248_v42 = vadd.f32 %v3247_v21, %v3246_v57 }
 0x511   :  { %v1437_v23 = vpack.c.bf16 %v3248_v42, %v3245_v33 }
 0x513   :  { %v3249_v22 = vpop.f32.mrb[128].mxu1  ;;  %1585 = vmatprep.mubr.bf16.mxu0 %v1437_v23 }
 0x514   :  { %v3250_v34 = vpop.f32.mrb[129].mxu1  ;;  %1586 = vmatmul.mubr.bf16.gmra.mrb[124].mxu0 %v4774_v40 }
 0x515   :  { %v3251_v36 = vadd.f32 %v3250_v34, %v3249_v22  ;;  %v3252_v37 = vpop.f32.mrb[130].mxu1 }
 0x516   :  { %v3253_v26 = vpop.f32.mrb[131].mxu1 }
 0x517   :  { %v3254_v16 = vadd.f32 %v3253_v26, %v3252_v37 }
 0x519   :  { %v1438_v61 = vpack.c.bf16 %v3254_v16, %v3251_v36 }
 0x51b   :  { %v3255_v10 = vpop.f32.mrb[132].mxu1  ;;  %1593 = vmatprep.mubr.bf16.mxu0 %v1438_v61 }
 0x51c   :  { %v3256_v38 = vpop.f32.mrb[133].mxu1  ;;  %1594 = vmatmul.mubr.bf16.gmra.mrb[128].mxu0 %v4782_v13 }
 0x51d   :  { %v3257_v20 = vadd.f32 %v3256_v38, %v3255_v10  ;;  %v3258_v39 = vpop.f32.mrb[134].mxu1 }
 0x51e   :  { %v3259_v2 = vpop.f32.mrb[135].mxu1 }
 0x51f   :  { %v3260_v27 = vadd.f32 %v3259_v2, %v3258_v39 }
 0x521   :  { %v1439_v8 = vpack.c.bf16 %v3260_v27, %v3257_v20 }
 0x523   :  { %v3261_v0 = vpop.f32.mrb[136].mxu1  ;;  %1601 = vmatprep.mubr.bf16.mxu0 %v1439_v8 }
 0x524   :  { %v3262_v18 = vpop.f32.mrb[137].mxu1  ;;  %1602 = vmatmul.mubr.bf16.gmra.mrb[132].mxu0 %v4790_v9  ;;  %v4860_v9 = vld [vmem:[%s5649_s8] ss:$0 sm:$0xff] }
 0x525   :  { %v3263_v40 = vadd.f32 %v3262_v18, %v3261_v0  ;;  %v3264_v19 = vpop.f32.mrb[138].mxu1 }
 0x526   :  { %v3265_v43 = vpop.f32.mrb[139].mxu1 }
 0x527   :  { %v3266_v1 = vadd.f32 %v3265_v43, %v3264_v19 }
 0x529   :  { %v1440_v11 = vpack.c.bf16 %v3266_v1, %v3263_v40 }
 0x52b   :  { %v3267_v5 = vpop.f32.mrb[140].mxu1  ;;  %1609 = vmatprep.mubr.bf16.mxu0 %v1440_v11 }
 0x52c   :  { %v3268_v29 = vpop.f32.mrb[141].mxu1  ;;  %1610 = vmatmul.mubr.bf16.gmra.mrb[136].mxu0 %v4798_v15 }
 0x52d   :  { %v3269_v13 = vadd.f32 %v3268_v29, %v3267_v5  ;;  %v3270_v28 = vpop.f32.mrb[142].mxu1 }
 0x52e   :  { %v3271_v33 = vpop.f32.mrb[143].mxu1 }
 0x52f   :  { %v3272_v57 = vadd.f32 %v3271_v33, %v3270_v28 }
 0x531   :  { %v1441_v21 = vpack.c.bf16 %v3272_v57, %v3269_v13 }
 0x533   :  { %1617 = vmatprep.mubr.bf16.mxu0 %v1441_v21 }
 0x534   :  { %1618 = vmatmul.mubr.bf16.gmra.mrb[140].mxu0 %v4805_v14 }
 0x58f   :  { %v3289_v42 = vpop.f32.mrb[80].mxu0 }
 0x590   :  { %v3290_v23 = vpop.f32.mrb[81].mxu0 }
 0x591   :  { %v3291_v22 = vadd.f32 %v3290_v23, %v3289_v42  ;;  %v3292_v34 = vpop.f32.mrb[82].mxu0 }
 0x592   :  { %v3293_v36 = vpop.f32.mrb[83].mxu0 }
 0x593   :  { %v1500_v15 = vadd.f32 %v3291_v22, %v4860_v9  ;;  %v3294_v37 = vadd.f32 %v3293_v36, %v3292_v34 }
 0x595   :  { %v1626_v26 = vmax.f32 %v1500_v15, 0.0  ;;  %v1503_v16 = vadd.f32 %v3294_v37, %v4860_v9 }
 0x597   :  { %v1627_v61 = vmax.f32 %v1503_v16, 0.0  ;;  %v3295_v10 = vpop.f32.mrb[84].mxu0  ;;  %v1658_v14 = vmul.f32 %v1626_v26, %v4403_v45 }
 0x598   :  { %v3296_v38 = vpop.f32.mrb[85].mxu0 }
 0x599   :  { %v1659_v20 = vmul.f32 %v1627_v61, %v4407_v47  ;;  %v3297_v39 = vadd.f32 %v3296_v38, %v3295_v10  ;;  %v3298_v2 = vpop.f32.mrb[86].mxu0 }
 0x59a   :  { %v3299_v27 = vpop.f32.mrb[87].mxu0 }
 0x59b   :  { %v4866_v8 = vpack.c.bf16 %v1659_v20, %v1658_v14  ;;  %v1508_v0 = vadd.f32 %v3297_v39, %v4860_v9  ;;  %v3300_v18 = vadd.f32 %v3299_v27, %v3298_v2 }
 0x59d   :  { %v1628_v40 = vmax.f32 %v1508_v0, 0.0  ;;  %v1511_v19 = vadd.f32 %v3300_v18, %v4860_v9 }
 0x59f   :  { %v1629_v43 = vmax.f32 %v1511_v19, 0.0  ;;  %v3301_v1 = vpop.f32.mrb[88].mxu0  ;;  %v1660_v5 = vmul.f32 %v1628_v40, %v4413_v50 }
 0x5a0   :  { %v3302_v11 = vpop.f32.mrb[89].mxu0 }
 0x5a1   :  { %v1661_v29 = vmul.f32 %v1629_v43, %v4415_v51  ;;  %v3303_v13 = vadd.f32 %v3302_v11, %v3301_v1  ;;  %v3304_v28 = vpop.f32.mrb[90].mxu0 }
 0x5a2   :  { %v3305_v33 = vpop.f32.mrb[91].mxu0 }
 0x5a3   :  { %v4872_v57 = vpack.c.bf16 %v1661_v29, %v1660_v5  ;;  %v1516_v21 = vadd.f32 %v3303_v13, %v4860_v9  ;;  %v3306_v42 = vadd.f32 %v3305_v33, %v3304_v28 }
 0x5a5   :  { %v1630_v23 = vmax.f32 %v1516_v21, 0.0  ;;  %v1519_v22 = vadd.f32 %v3306_v42, %v4860_v9 }
 0x5a7   :  { %v1631_v34 = vmax.f32 %v1519_v22, 0.0  ;;  %v3307_v36 = vpop.f32.mrb[92].mxu0  ;;  %v1662_v37 = vmul.f32 %v1630_v23, %v4421_v54 }
 0x5a8   :  { %v3308_v15 = vpop.f32.mrb[93].mxu0 }
 0x5a9   :  { %v1663_v26 = vmul.f32 %v1631_v34, %v4423_v55  ;;  %v3309_v16 = vadd.f32 %v3308_v15, %v3307_v36  ;;  %v3310_v61 = vpop.f32.mrb[94].mxu0 }
 0x5aa   :  { %v3311_v10 = vpop.f32.mrb[95].mxu0 }
 0x5ab   :  { %v4878_v38 = vpack.c.bf16 %v1663_v26, %v1662_v37  ;;  %v1524_v14 = vadd.f32 %v3309_v16, %v4860_v9  ;;  %v3312_v20 = vadd.f32 %v3311_v10, %v3310_v61 }
 0x5ad   :  { %v1632_v39 = vmax.f32 %v1524_v14, 0.0  ;;  %v1527_v2 = vadd.f32 %v3312_v20, %v4860_v9 }
 0x5af   :  { %v1633_v27 = vmax.f32 %v1527_v2, 0.0  ;;  %v3313_v0 = vpop.f32.mrb[96].mxu0  ;;  %v1664_v40 = vmul.f32 %v1632_v39, %v4429_v58 }
 0x5b0   :  { %v3314_v18 = vpop.f32.mrb[97].mxu0 }
 0x5b1   :  { %v1665_v19 = vmul.f32 %v1633_v27, %v4431_v59  ;;  %v3315_v43 = vadd.f32 %v3314_v18, %v3313_v0  ;;  %v3316_v1 = vpop.f32.mrb[98].mxu0 }
 0x5b2   :  { %v3317_v11 = vpop.f32.mrb[99].mxu0 }
 0x5b3   :  { %v4884_v5 = vpack.c.bf16 %v1665_v19, %v1664_v40  ;;  %v1532_v29 = vadd.f32 %v3315_v43, %v4860_v9  ;;  %v3318_v13 = vadd.f32 %v3317_v11, %v3316_v1 }
 0x5b5   :  { %v1634_v28 = vmax.f32 %v1532_v29, 0.0  ;;  %v1535_v33 = vadd.f32 %v3318_v13, %v4860_v9 }
 0x5b7   :  { %v1635_v21 = vmax.f32 %v1535_v33, 0.0  ;;  %v3319_v42 = vpop.f32.mrb[100].mxu0  ;;  %v1666_v22 = vmul.f32 %v1634_v28, %v4437_v62 }
 0x5b8   :  { %v3320_v23 = vpop.f32.mrb[101].mxu0 }
 0x5b9   :  { %v1667_v34 = vmul.f32 %v1635_v21, %v4439_v63  ;;  %v3321_v36 = vadd.f32 %v3320_v23, %v3319_v42  ;;  %v3322_v15 = vpop.f32.mrb[102].mxu0 }
 0x5ba   :  { %v3323_v37 = vpop.f32.mrb[103].mxu0 }
 0x5bb   :  { %v4890_v26 = vpack.c.bf16 %v1667_v34, %v1666_v22  ;;  %v1540_v16 = vadd.f32 %v3321_v36, %v4860_v9  ;;  %v3324_v61 = vadd.f32 %v3323_v37, %v3322_v15 }
 0x5bd   :  { %v1636_v10 = vmax.f32 %v1540_v16, 0.0  ;;  %v1543_v14 = vadd.f32 %v3324_v61, %v4860_v9 }
 0x5bf   :  { %v1637_v20 = vmax.f32 %v1543_v14, 0.0  ;;  %v3325_v39 = vpop.f32.mrb[104].mxu0  ;;  %v1668_v27 = vmul.f32 %v1636_v10, %v4450_v3 }
 0x5c0   :  { %v3326_v2 = vpop.f32.mrb[105].mxu0 }
 0x5c1   :  { %v1669_v0 = vmul.f32 %v1637_v20, %v4452_v4  ;;  %v3327_v18 = vadd.f32 %v3326_v2, %v3325_v39  ;;  %v3328_v40 = vpop.f32.mrb[106].mxu0 }
 0x5c2   :  { %v3329_v19 = vpop.f32.mrb[107].mxu0 }
 0x5c3   :  { %v4896_v43 = vpack.c.bf16 %v1669_v0, %v1668_v27  ;;  %v1548_v1 = vadd.f32 %v3327_v18, %v4860_v9  ;;  %v3330_v11 = vadd.f32 %v3329_v19, %v3328_v40 }
 0x5c5   :  { %v1638_v29 = vmax.f32 %v1548_v1, 0.0  ;;  %v1551_v13 = vadd.f32 %v3330_v11, %v4860_v9 }
 0x5c7   :  { %v1639_v28 = vmax.f32 %v1551_v13, 0.0  ;;  %v3331_v33 = vpop.f32.mrb[108].mxu0  ;;  %v1670_v42 = vmul.f32 %v1638_v29, %v4493_v31 }
 0x5c8   :  { %v3332_v21 = vpop.f32.mrb[109].mxu0 }
 0x5c9   :  { %v1671_v23 = vmul.f32 %v1639_v28, %v4495_v32  ;;  %v3333_v22 = vadd.f32 %v3332_v21, %v3331_v33  ;;  %v3334_v34 = vpop.f32.mrb[110].mxu0 }
 0x5ca   :  { %v3335_v36 = vpop.f32.mrb[111].mxu0 }
 0x5cb   :  { %v4902_v15 = vpack.c.bf16 %v1671_v23, %v1670_v42  ;;  %v1556_v37 = vadd.f32 %v3333_v22, %v4860_v9  ;;  %v3336_v16 = vadd.f32 %v3335_v36, %v3334_v34 }
 0x5cd   :  { %v1640_v61 = vmax.f32 %v1556_v37, 0.0  ;;  %v1559_v10 = vadd.f32 %v3336_v16, %v4860_v9 }
 0x5cf   :  { %v1641_v14 = vmax.f32 %v1559_v10, 0.0  ;;  %v3337_v20 = vpop.f32.mrb[112].mxu0  ;;  %v1672_v2 = vmul.f32 %v1640_v61, %v4556_v12 }
 0x5d0   :  { %v3338_v39 = vpop.f32.mrb[113].mxu0 }
 0x5d1   :  { %v1673_v27 = vmul.f32 %v1641_v14, %v4558_v17  ;;  %v3339_v0 = vadd.f32 %v3338_v39, %v3337_v20  ;;  %v3340_v18 = vpop.f32.mrb[114].mxu0 }
 0x5d2   :  { %v3341_v40 = vpop.f32.mrb[115].mxu0 }
 0x5d3   :  { %v4908_v19 = vpack.c.bf16 %v1673_v27, %v1672_v2  ;;  %v1564_v1 = vadd.f32 %v3339_v0, %v4860_v9  ;;  %v3342_v11 = vadd.f32 %v3341_v40, %v3340_v18 }
 0x5d5   :  { %v1642_v29 = vmax.f32 %v1564_v1, 0.0  ;;  %v1567_v13 = vadd.f32 %v3342_v11, %v4860_v9 }
 0x5d7   :  { %v1643_v28 = vmax.f32 %v1567_v13, 0.0  ;;  %v3343_v33 = vpop.f32.mrb[116].mxu0  ;;  %v1674_v42 = vmul.f32 %v1642_v29, %v4401_v44 }
 0x5d8   :  { %v3344_v21 = vpop.f32.mrb[117].mxu0 }
 0x5d9   :  { %v1675_v23 = vmul.f32 %v1643_v28, %v4405_v46  ;;  %v3345_v22 = vadd.f32 %v3344_v21, %v3343_v33  ;;  %v3346_v34 = vpop.f32.mrb[118].mxu0 }
 0x5da   :  { %v3347_v36 = vpop.f32.mrb[119].mxu0 }
 0x5db   :  { %v1572_v37 = vadd.f32 %v3345_v22, %v4860_v9  ;;  %v3348_v16 = vadd.f32 %v3347_v36, %v3346_v34  ;;  %v4915_v61 = vpack.c.bf16 %v1675_v23, %v1674_v42 }
 0x5dd   :  { %v1644_v10 = vmax.f32 %v1572_v37, 0.0  ;;  %v1575_v14 = vadd.f32 %v3348_v16, %v4860_v9  ;;  %3385 = vmatprep.subr.bf16.mxu1 %v4915_v61 }
 0x5de   :  { %3386 = vmatpush3.bf16.msra.mxu1 %v4866_v8 }
 0x5df   :  { %v1645_v20 = vmax.f32 %v1575_v14, 0.0  ;;  %v3349_v39 = vpop.f32.mrb[120].mxu0  ;;  %v1676_v27 = vmul.f32 %v1644_v10, %v4409_v48 }
 0x5e0   :  { %v3350_v2 = vpop.f32.mrb[121].mxu0 }
 0x5e1   :  { %v1677_v0 = vmul.f32 %v1645_v20, %v4411_v49  ;;  %v3351_v18 = vadd.f32 %v3350_v2, %v3349_v39  ;;  %v3352_v40 = vpop.f32.mrb[122].mxu0 }
 0x5e2   :  { %v3353_v1 = vpop.f32.mrb[123].mxu0 }
 0x5e3   :  { %v1580_v11 = vadd.f32 %v3351_v18, %v4860_v9  ;;  %v3354_v29 = vadd.f32 %v3353_v1, %v3352_v40  ;;  %v4923_v13 = vpack.c.bf16 %v1677_v0, %v1676_v27  ;;  %v5812_v1 = vld [vmem:[#allocation20_spill] sm:$0xff] }
 0x5e5   :  { %v1646_v28 = vmax.f32 %v1580_v11, 0.0  ;;  %v1583_v33 = vadd.f32 %v3354_v29, %v4860_v9  ;;  %3387 = vmatprep.subr.bf16.mxu1 %v4923_v13 }
 0x5e6   :  { %3388 = vmatpush3.bf16.msra.mxu1 %v4872_v57 }
 0x5e7   :  { %v1647_v21 = vmax.f32 %v1583_v33, 0.0  ;;  %v3355_v42 = vpop.f32.mrb[124].mxu0  ;;  %v1678_v22 = vmul.f32 %v1646_v28, %v4417_v52 }
 0x5e8   :  { %v3356_v23 = vpop.f32.mrb[125].mxu0 }
 0x5e9   :  { %v1679_v34 = vmul.f32 %v1647_v21, %v4419_v53  ;;  %v3357_v36 = vadd.f32 %v3356_v23, %v3355_v42  ;;  %v3358_v37 = vpop.f32.mrb[126].mxu0  ;;  %v1887_v53 = vld [vmem:[#allocation9 + $0xa0] sm:$0xff] }
 0x5ea   :  { %v3359_v16 = vpop.f32.mrb[127].mxu0 }
 0x5eb   :  { %v1588_v10 = vadd.f32 %v3357_v36, %v4860_v9  ;;  %v3360_v14 = vadd.f32 %v3359_v16, %v3358_v37  ;;  %v4931_v20 = vpack.c.bf16 %v1679_v34, %v1678_v22 }
 0x5ed   :  { %v1648_v39 = vmax.f32 %v1588_v10, 0.0  ;;  %v1591_v2 = vadd.f32 %v3360_v14, %v4860_v9  ;;  %3389 = vmatprep.subr.bf16.mxu1 %v4931_v20  ;;  %v5813_v10 = vld [vmem:[#allocation21_spill] sm:$0xff] }
 0x5ee   :  { %3390 = vmatpush3.bf16.msra.mxu1 %v4878_v38 }
 0x5ef   :  { %v1649_v27 = vmax.f32 %v1591_v2, 0.0  ;;  %v3361_v0 = vpop.f32.mrb[128].mxu0  ;;  %v1680_v40 = vmul.f32 %v1648_v39, %v4425_v56  ;;  %v5814_v39 = vld [vmem:[#allocation22_spill] sm:$0xff] }
 0x5f0   :  { %v3362_v18 = vpop.f32.mrb[129].mxu0 }
 0x5f1   :  { %v1681_v11 = vmul.f32 %v1649_v27, %v5812_v1  ;;  %v3363_v29 = vadd.f32 %v3362_v18, %v3361_v0  ;;  %v3364_v28 = vpop.f32.mrb[130].mxu0 }
 0x5f2   :  { %v3365_v33 = vpop.f32.mrb[131].mxu0 }
 0x5f3   :  { %v1596_v21 = vadd.f32 %v3363_v29, %v4860_v9  ;;  %v3366_v42 = vadd.f32 %v3365_v33, %v3364_v28  ;;  %v4939_v23 = vpack.c.bf16 %v1681_v11, %v1680_v40 }
 0x5f5   :  { %v1650_v22 = vmax.f32 %v1596_v21, 0.0  ;;  %v1599_v34 = vadd.f32 %v3366_v42, %v4860_v9  ;;  %3391 = vmatprep.subr.bf16.mxu1 %v4939_v23 }
 0x5f6   :  { %3392 = vmatpush3.bf16.msra.mxu1 %v4884_v5 }
 0x5f7   :  { %v1651_v36 = vmax.f32 %v1599_v34, 0.0  ;;  %v3367_v37 = vpop.f32.mrb[132].mxu0  ;;  %v1682_v14 = vmul.f32 %v1650_v22, %v5813_v10  ;;  %v5815_v34 = vld [vmem:[#allocation23_spill] sm:$0xff] }
 0x5f8   :  { %v3368_v16 = vpop.f32.mrb[133].mxu0 }
 0x5f9   :  { %v1683_v2 = vmul.f32 %v1651_v36, %v5814_v39  ;;  %v3369_v27 = vadd.f32 %v3368_v16, %v3367_v37  ;;  %v3370_v0 = vpop.f32.mrb[134].mxu0  ;;  %v5816_v37 = vld [vmem:[#allocation24_spill] sm:$0xff] }
 0x5fa   :  { %v3371_v18 = vpop.f32.mrb[135].mxu0 }
 0x5fb   :  { %v1604_v40 = vadd.f32 %v3369_v27, %v4860_v9  ;;  %v3372_v11 = vadd.f32 %v3371_v18, %v3370_v0  ;;  %v4947_v29 = vpack.c.bf16 %v1683_v2, %v1682_v14 }
 0x5fd   :  { %v1652_v28 = vmax.f32 %v1604_v40, 0.0  ;;  %v1607_v33 = vadd.f32 %v3372_v11, %v4860_v9  ;;  %3393 = vmatprep.subr.bf16.mxu1 %v4947_v29 }
 0x5fe   :  { %3394 = vmatpush3.bf16.msra.mxu1 %v4890_v26 }
 0x5ff   :  { %v1653_v21 = vmax.f32 %v1607_v33, 0.0  ;;  %v3373_v42 = vpop.f32.mrb[136].mxu0  ;;  %v1684_v36 = vmul.f32 %v1652_v28, %v5815_v34  ;;  %v5817_v34 = vld [vmem:[#allocation25_spill] sm:$0xff] }
 0x600   :  { %v3374_v22 = vpop.f32.mrb[137].mxu0 }
 0x601   :  { %v1685_v16 = vmul.f32 %v1653_v21, %v5816_v37  ;;  %v3375_v39 = vadd.f32 %v3374_v22, %v3373_v42  ;;  %v3376_v10 = vpop.f32.mrb[138].mxu0  ;;  %v5818_v42 = vld [vmem:[#allocation26_spill] sm:$0xff] }
 0x602   :  { %v3377_v27 = vpop.f32.mrb[139].mxu0 }
 0x603   :  { %v1612_v14 = vadd.f32 %v3375_v39, %v4860_v9  ;;  %v3378_v2 = vadd.f32 %v3377_v27, %v3376_v10  ;;  %v4955_v0 = vpack.c.bf16 %v1685_v16, %v1684_v36 }
 0x605   :  { %v1654_v18 = vmax.f32 %v1612_v14, 0.0  ;;  %v1615_v40 = vadd.f32 %v3378_v2, %v4860_v9  ;;  %3395 = vmatprep.subr.bf16.mxu1 %v4955_v0 }
 0x606   :  { %3396 = vmatpush3.bf16.msra.mxu1 %v4896_v43 }
 0x607   :  { %v1655_v11 = vmax.f32 %v1615_v40, 0.0  ;;  %v3379_v33 = vpop.f32.mrb[140].mxu0  ;;  %v1686_v21 = vmul.f32 %v1654_v18, %v5817_v34  ;;  %v5819_v40 = vld [vmem:[#allocation27_spill] sm:$0xff]  ;;  %v5820_v34 = vld [vmem:[#allocation28_spill] sm:$0xff] }
 0x608   :  { %v3380_v28 = vpop.f32.mrb[141].mxu0 }
 0x609   :  { %v1687_v22 = vmul.f32 %v1655_v11, %v5818_v42  ;;  %v3381_v37 = vadd.f32 %v3380_v28, %v3379_v33  ;;  %v3382_v1 = vpop.f32.mrb[142].mxu0  ;;  %v1883_v33 = vld [vmem:[#allocation9 + $0x80] sm:$0xff]  ;;  %v1884_v28 = vld [vmem:[#allocation9 + $0x88] sm:$0xff] }
 0x60a   :  { %v3383_v39 = vpop.f32.mrb[143].mxu0  ;;  %v1867_v42 = vld [vmem:[#allocation9] sm:$0xff]  ;;  %v1923_v56 = vpack.c.bf16 %v1884_v28, %v1883_v33  ;;  %v1872_v28 = vld [vmem:[#allocation9 + $0x28] sm:$0xff] }
 0x60b   :  { %v1620_v10 = vadd.f32 %v3381_v37, %v4860_v9  ;;  %v3384_v36 = vadd.f32 %v3383_v39, %v3382_v1  ;;  %v4963_v16 = vpack.c.bf16 %v1687_v22, %v1686_v21  ;;  %v1868_v37 = vld [vmem:[#allocation9 + $0x8] sm:$0xff]  ;;  %v1885_v1 = vld [vmem:[#allocation9 + $0x90] sm:$0xff]  ;;  %v1886_v21 = vld [vmem:[#allocation9 + $0x98] sm:$0xff] }
 0x60c   :  { %v1915_v39 = vpack.c.bf16 %v1868_v37, %v1867_v42  ;;  %3497 = vmatprep.subr.bf16.mxu0 %v1923_v56  ;;  %v1871_v33 = vld [vmem:[#allocation9 + $0x20] sm:$0xff]  ;;  %v1874_v37 = vld [vmem:[#allocation9 + $0x38] sm:$0xff] }
 0x60d   :  { %v1656_v27 = vmax.f32 %v1620_v10, 0.0  ;;  %v1623_v14 = vadd.f32 %v3384_v36, %v4860_v9  ;;  %3397 = vmatprep.subr.bf16.mxu1 %v4963_v16  ;;  %v1924_v9 = vpack.c.bf16 %v1886_v21, %v1885_v1  ;;  %v1869_v10 = vld [vmem:[#allocation9 + $0x10] sm:$0xff]  ;;  %v1870_v36 = vld [vmem:[#allocation9 + $0x18] sm:$0xff]  ;;  %v1917_v42 = vpack.c.bf16 %v1872_v28, %v1871_v33  ;;  %v1891_v1 = vld [vmem:[#allocation9 + $0xc0] sm:$0xff] }
 0x60e   :  { %3398 = vmatpush3.bf16.msra.mxu1 %v4902_v15  ;;  %3498 = vmatpush3.bf16.msra.mxu0 %v1915_v39  ;;  %v1892_v21 = vld [vmem:[#allocation9 + $0xc8] sm:$0xff]  ;;  %v5824_v28 = vld [vmem:[#allocation36_spill] sm:$0xff] }
 0x60f   :  { %v1657_v2 = vmax.f32 %v1623_v14, 0.0  ;;  %v1688_v18 = vmul.f32 %v1656_v27, %v5819_v40  ;;  %v1888_v14 = vld [vmem:[#allocation9 + $0xa8] sm:$0xff]  ;;  %v1916_v27 = vpack.c.bf16 %v1870_v36, %v1869_v10  ;;  %3499 = vmatprep.subr.bf16.mxu0 %v1924_v9  ;;  %v1875_v9 = vld [vmem:[#allocation9 + $0x40] sm:$0xff]  ;;  %v1893_v36 = vld [vmem:[#allocation9 + $0xd0] sm:$0xff] }
 0x610   :  { %v1876_v10 = vld [vmem:[#allocation9 + $0x48] sm:$0xff] }
 0x611   :  { %v1689_v11 = vmul.f32 %v1657_v2, %v5820_v34  ;;  %v1925_v2 = vpack.c.bf16 %v1888_v14, %v1887_v53  ;;  %v1889_v34 = vld [vmem:[#allocation9 + $0xb0] sm:$0xff]  ;;  %v1927_v53 = vpack.c.bf16 %v1892_v21, %v1891_v1  ;;  %v1894_v14 = vld [vmem:[#allocation9 + $0xd8] sm:$0xff]  ;;  %v5822_v33 = vld [vmem:[#allocation34_spill] sm:$0xff] }
 0x612   :  { %3500 = vmatpush3.bf16.msra.mxu0 %v1916_v27  ;;  %v1878_v27 = vld [vmem:[#allocation9 + $0x58] sm:$0xff]  ;;  %v5834_v1 = vld [vmem:[#allocation46_spill] sm:$0xff]  ;;  %v1895_v21 = vld [vmem:[#allocation9 + $0xe0] sm:$0xff] }
 0x613   :  { %v4970_v22 = vpack.c.bf16 %v1689_v11, %v1688_v18  ;;  %v1890_v18 = vld [vmem:[#allocation9 + $0xb8] sm:$0xff]  ;;  %3501 = vmatprep.subr.bf16.mxu0 %v1925_v2  ;;  %v1873_v11 = vld [vmem:[#allocation9 + $0x30] sm:$0xff] }
 0x614   :  { %v1926_v56 = vpack.c.bf16 %v1890_v18, %v1889_v34  ;;  %v1918_v39 = vpack.c.bf16 %v1874_v37, %v1873_v11  ;;  %v1877_v34 = vld [vmem:[#allocation9 + $0x50] sm:$0xff]  ;;  %v5825_v18 = vld [vmem:[#allocation37_spill] sm:$0xff]  ;;  %v5832_v11 = vld [vmem:[#allocation44_spill] sm:$0xff] }
 0x615   :  { %3399 = vmatprep.subr.bf16.mxu1 %v4970_v22  ;;  %v1920_v2 = vpack.c.bf16 %v1878_v27, %v1877_v34  ;;  %v5833_v37 = vld [vmem:[#allocation45_spill] sm:$0xff]  ;;  %v1881_v34 = vld [vmem:[#allocation9 + $0x70] sm:$0xff]  ;;  %v1882_v27 = vld [vmem:[#allocation9 + $0x78] sm:$0xff] }
 0x616   :  { %3400 = vmatpush3.bf16.msra.mxu1 %v4908_v19  ;;  %3502 = vmatpush3.bf16.msra.mxu0 %v1917_v42  ;;  %v5826_v42 = vld [vmem:[#allocation38_spill] sm:$0xff] }
 0x617   :  { %3503 = vmatprep.subr.bf16.mxu0 %v1926_v56  ;;  %v5828_v56 = vld [vmem:[#allocation40_spill] sm:$0xff] }
 0x619   :  { %1739 = vmatmul.mubr.bf16.vlgmr.msra.gmra.mrb[144].mxu1 %v4581_v30  ;;  %v1919_v30 = vpack.c.bf16 %v1876_v10, %v1875_v9  ;;  %v1879_v9 = vld [vmem:[#allocation9 + $0x60] sm:$0xff]  ;;  %v1880_v10 = vld [vmem:[#allocation9 + $0x68] sm:$0xff] }
 0x61a   :  { %1746 = vmatprep.mubr.bf16.mxu1 %v5786_v25  ;;  %3504 = vmatpush3.bf16.msra.mxu0 %v1918_v39  ;;  %v1928_v25 = vpack.c.bf16 %v1894_v14, %v1893_v36  ;;  %v1896_v39 = vld [vmem:[#allocation9 + $0xe8] sm:$0xff]  ;;  %v1921_v36 = vpack.c.bf16 %v1880_v10, %v1879_v9  ;;  %v1897_v14 = vld [vmem:[#allocation9 + $0xf0] sm:$0xff] }
 0x61b   :  { %3505 = vmatprep.subr.bf16.mxu0 %v1927_v53  ;;  %v1929_v53 = vpack.c.bf16 %v1896_v39, %v1895_v21 }
 0x61e   :  { %3506 = vmatpush3.bf16.msra.mxu0 %v1919_v30  ;;  %v1898_v30 = vld [vmem:[#allocation9 + $0xf8] sm:$0xff] }
 0x61f   :  { %3507 = vmatprep.subr.bf16.mxu0 %v1928_v25  ;;  %v1930_v25 = vpack.c.bf16 %v1898_v30, %v1897_v14 }
 0x621   :  { %1747 = vmatmul.mubr.bf16.gmra.mrb[148].mxu1 %v4588_v35  ;;  %v5821_v35 = vld [vmem:[#allocation33_spill] sm:$0xff] }
 0x622   :  { %1754 = vmatprep.mubr.bf16.mxu1 %v4590_v7  ;;  %3508 = vmatpush3.bf16.msra.mxu0 %v1920_v2  ;;  %v5823_v7 = vld [vmem:[#allocation35_spill] sm:$0xff]  ;;  %v1922_v2 = vpack.c.bf16 %v1882_v27, %v1881_v34 }
 0x623   :  { %3509 = vmatprep.subr.bf16.mxu0 %v1929_v53 }
 0x626   :  { %3510 = vmatpush3.bf16.msra.mxu0 %v1921_v36 }
 0x627   :  { %3511 = vmatprep.subr.bf16.mxu0 %v1930_v25 }
 0x629   :  { %1755 = vmatmul.mubr.bf16.gmra.mrb[152].mxu1 %v4594_v24  ;;  %v5827_v24 = vld [vmem:[#allocation39_spill] sm:$0xff] }
 0x62a   :  { %1762 = vmatprep.mubr.bf16.mxu1 %v5787_v6  ;;  %v5829_v6 = vld [vmem:[#allocation41_spill] sm:$0xff]  ;;  %3512 = vmatpush3.bf16.msra.mxu0 %v1922_v2 }
 0x631   :  { %1763 = vmatmul.mubr.bf16.gmra.mrb[156].mxu1 %v5788_v41  ;;  %v5830_v41 = vld [vmem:[#allocation42_spill] sm:$0xff] }
 0x632   :  { %1770 = vmatprep.mubr.bf16.mxu1 %v5789_v60  ;;  %v5831_v60 = vld [vmem:[#allocation43_spill] sm:$0xff] }
 0x639   :  { %1771 = vmatmul.mubr.bf16.gmra.mrb[160].mxu1 %v5821_v35  ;;  %v5835_v35 = vld [vmem:[#allocation47_spill] sm:$0xff] }
 0x63a   :  { %1778 = vmatprep.mubr.bf16.mxu1 %v5822_v33  ;;  %v5836_v33 = vld [vmem:[#allocation48_spill] sm:$0xff] }
 0x641   :  { %1779 = vmatmul.mubr.bf16.gmra.mrb[164].mxu1 %v5823_v7  ;;  %v5837_v7 = vld [vmem:[#allocation49_spill] sm:$0xff] }
 0x642   :  { %1786 = vmatprep.mubr.bf16.mxu1 %v5824_v28  ;;  %v5838_v28 = vld [vmem:[#allocation50_spill] sm:$0xff] }
 0x649   :  { %1787 = vmatmul.mubr.bf16.gmra.mrb[168].mxu1 %v5825_v18  ;;  %v5839_v18 = vld [vmem:[#allocation51_spill] sm:$0xff] }
 0x64a   :  { %1794 = vmatprep.mubr.bf16.mxu1 %v5826_v42  ;;  %v5840_v42 = vld [vmem:[#allocation52_spill] sm:$0xff] }
 0x651   :  { %1795 = vmatmul.mubr.bf16.gmra.mrb[172].mxu1 %v5827_v24  ;;  %v5841_v24 = vld [vmem:[#allocation53_spill] sm:$0xff] }
 0x652   :  { %1802 = vmatprep.mubr.bf16.mxu1 %v5828_v56  ;;  %v5842_v56 = vld [vmem:[#allocation54_spill] sm:$0xff] }
 0x659   :  { %1803 = vmatmul.mubr.bf16.gmra.mrb[176].mxu1 %v5829_v6  ;;  %v5843_v6 = vld [vmem:[#allocation55_spill] sm:$0xff] }
 0x65a   :  { %1810 = vmatprep.mubr.bf16.mxu1 %v5830_v41 }
 0x661   :  { %1811 = vmatmul.mubr.bf16.gmra.mrb[180].mxu1 %v5831_v60 }
 0x662   :  { %1818 = vmatprep.mubr.bf16.mxu1 %v5832_v11 }
 0x669   :  { %1819 = vmatmul.mubr.bf16.gmra.mrb[184].mxu1 %v5833_v37 }
 0x66a   :  { %1826 = vmatprep.mubr.bf16.mxu1 %v5834_v1 }
 0x671   :  { %1827 = vmatmul.mubr.bf16.gmra.mrb[188].mxu1 %v5835_v35 }
 0x672   :  { %1834 = vmatprep.mubr.bf16.mxu1 %v5836_v33 }
 0x679   :  { %1835 = vmatmul.mubr.bf16.gmra.mrb[192].mxu1 %v5837_v7 }
 0x67a   :  { %1842 = vmatprep.mubr.bf16.mxu1 %v5838_v28 }
 0x681   :  { %1843 = vmatmul.mubr.bf16.gmra.mrb[196].mxu1 %v5839_v18 }
 0x682   :  { %1850 = vmatprep.mubr.bf16.mxu1 %v5840_v42 }
 0x689   :  { %1851 = vmatmul.mubr.bf16.gmra.mrb[200].mxu1 %v5841_v24 }
 0x68a   :  { %1858 = vmatprep.mubr.bf16.mxu1 %v5842_v56 }
 0x691   :  { %1859 = vmatmul.mubr.bf16.gmra.mrb[204].mxu1 %v5843_v6 }
 0x6ec   :  { %v3401_v41 = vpop.f32.mrb[144].mxu1 }
 0x6ed   :  { %v3402_v60 = vpop.f32.mrb[145].mxu1 }
 0x6ee   :  { %v3403_v11 = vadd.f32 %v3402_v60, %v3401_v41  ;;  %v3404_v37 = vpop.f32.mrb[146].mxu1 }
 0x6ef   :  { %v3405_v1 = vpop.f32.mrb[147].mxu1 }
 0x6f0   :  { %v3406_v21 = vadd.f32 %v3405_v1, %v3404_v37 }
 0x6f2   :  { %v1899_v39 = vpack.c.bf16 %v3406_v21, %v3403_v11 }
 0x6f4   :  { %v3407_v53 = vpop.f32.mrb[148].mxu1  ;;  %1970 = vmatprep.mubr.bf16.mxu0 %v1899_v39 }
 0x6f5   :  { %v3408_v9 = vpop.f32.mrb[149].mxu1  ;;  %1971 = vmatmul.mubr.bf16.vlgmr.msra.gmra.mrb[144].mxu0 %v4866_v8 }
 0x6f6   :  { %v3409_v10 = vadd.f32 %v3408_v9, %v3407_v53  ;;  %v3410_v36 = vpop.f32.mrb[150].mxu1 }
 0x6f7   :  { %v3411_v14 = vpop.f32.mrb[151].mxu1 }
 0x6f8   :  { %v3412_v30 = vadd.f32 %v3411_v14, %v3410_v36 }
 0x6fa   :  { %v1900_v25 = vpack.c.bf16 %v3412_v30, %v3409_v10 }
 0x6fc   :  { %v3413_v34 = vpop.f32.mrb[152].mxu1  ;;  %1978 = vmatprep.mubr.bf16.mxu0 %v1900_v25 }
 0x6fd   :  { %v3414_v27 = vpop.f32.mrb[153].mxu1  ;;  %1979 = vmatmul.mubr.bf16.gmra.mrb[148].mxu0 %v4872_v57 }
 0x6fe   :  { %v3415_v2 = vadd.f32 %v3414_v27, %v3413_v34  ;;  %v3416_v35 = vpop.f32.mrb[154].mxu1 }
 0x6ff   :  { %v3417_v33 = vpop.f32.mrb[155].mxu1 }
 0x700   :  { %v3418_v7 = vadd.f32 %v3417_v33, %v3416_v35 }
 0x702   :  { %v1901_v28 = vpack.c.bf16 %v3418_v7, %v3415_v2 }
 0x704   :  { %v3419_v18 = vpop.f32.mrb[156].mxu1  ;;  %1986 = vmatprep.mubr.bf16.mxu0 %v1901_v28 }
 0x705   :  { %v3420_v42 = vpop.f32.mrb[157].mxu1  ;;  %1987 = vmatmul.mubr.bf16.gmra.mrb[152].mxu0 %v4878_v38 }
 0x706   :  { %v3421_v8 = vadd.f32 %v3420_v42, %v3419_v18  ;;  %v3422_v24 = vpop.f32.mrb[158].mxu1 }
 0x707   :  { %v3423_v56 = vpop.f32.mrb[159].mxu1 }
 0x708   :  { %v3424_v6 = vadd.f32 %v3423_v56, %v3422_v24 }
 0x70a   :  { %v1902_v41 = vpack.c.bf16 %v3424_v6, %v3421_v8 }
 0x70c   :  { %v3425_v60 = vpop.f32.mrb[160].mxu1  ;;  %1994 = vmatprep.mubr.bf16.mxu0 %v1902_v41 }
 0x70d   :  { %v3426_v11 = vpop.f32.mrb[161].mxu1  ;;  %1995 = vmatmul.mubr.bf16.gmra.mrb[156].mxu0 %v4884_v5 }
 0x70e   :  { %v3427_v57 = vadd.f32 %v3426_v11, %v3425_v60  ;;  %v3428_v37 = vpop.f32.mrb[162].mxu1 }
 0x70f   :  { %v3429_v1 = vpop.f32.mrb[163].mxu1 }
 0x710   :  { %v3430_v21 = vadd.f32 %v3429_v1, %v3428_v37 }
 0x712   :  { %v1903_v39 = vpack.c.bf16 %v3430_v21, %v3427_v57 }
 0x714   :  { %v3431_v53 = vpop.f32.mrb[164].mxu1  ;;  %2002 = vmatprep.mubr.bf16.mxu0 %v1903_v39 }
 0x715   :  { %v3432_v9 = vpop.f32.mrb[165].mxu1  ;;  %2003 = vmatmul.mubr.bf16.gmra.mrb[160].mxu0 %v4890_v26 }
 0x716   :  { %v3433_v38 = vadd.f32 %v3432_v9, %v3431_v53  ;;  %v3434_v10 = vpop.f32.mrb[166].mxu1 }
 0x717   :  { %v3435_v36 = vpop.f32.mrb[167].mxu1 }
 0x718   :  { %v3436_v14 = vadd.f32 %v3435_v36, %v3434_v10 }
 0x71a   :  { %v1904_v30 = vpack.c.bf16 %v3436_v14, %v3433_v38 }
 0x71c   :  { %v3437_v25 = vpop.f32.mrb[168].mxu1  ;;  %2010 = vmatprep.mubr.bf16.mxu0 %v1904_v30 }
 0x71d   :  { %v3438_v34 = vpop.f32.mrb[169].mxu1  ;;  %2011 = vmatmul.mubr.bf16.gmra.mrb[164].mxu0 %v4896_v43 }
 0x71e   :  { %v3439_v5 = vadd.f32 %v3438_v34, %v3437_v25  ;;  %v3440_v27 = vpop.f32.mrb[170].mxu1 }
 0x71f   :  { %v3441_v2 = vpop.f32.mrb[171].mxu1 }
 0x720   :  { %v3442_v35 = vadd.f32 %v3441_v2, %v3440_v27 }
 0x722   :  { %v1905_v33 = vpack.c.bf16 %v3442_v35, %v3439_v5 }
 0x724   :  { %v3443_v7 = vpop.f32.mrb[172].mxu1  ;;  %2018 = vmatprep.mubr.bf16.mxu0 %v1905_v33 }
 0x725   :  { %v3444_v28 = vpop.f32.mrb[173].mxu1  ;;  %2019 = vmatmul.mubr.bf16.gmra.mrb[168].mxu0 %v4902_v15 }
 0x726   :  { %v3445_v26 = vadd.f32 %v3444_v28, %v3443_v7  ;;  %v3446_v18 = vpop.f32.mrb[174].mxu1 }
 0x727   :  { %v3447_v42 = vpop.f32.mrb[175].mxu1 }
 0x728   :  { %v3448_v8 = vadd.f32 %v3447_v42, %v3446_v18 }
 0x72a   :  { %v1906_v24 = vpack.c.bf16 %v3448_v8, %v3445_v26 }
 0x72c   :  { %v3449_v56 = vpop.f32.mrb[176].mxu1  ;;  %2026 = vmatprep.mubr.bf16.mxu0 %v1906_v24 }
 0x72d   :  { %v3450_v6 = vpop.f32.mrb[177].mxu1  ;;  %2027 = vmatmul.mubr.bf16.gmra.mrb[172].mxu0 %v4908_v19 }
 0x72e   :  { %v3451_v43 = vadd.f32 %v3450_v6, %v3449_v56  ;;  %v3452_v41 = vpop.f32.mrb[178].mxu1 }
 0x72f   :  { %v3453_v60 = vpop.f32.mrb[179].mxu1 }
 0x730   :  { %v3454_v11 = vadd.f32 %v3453_v60, %v3452_v41 }
 0x732   :  { %v1907_v57 = vpack.c.bf16 %v3454_v11, %v3451_v43 }
 0x734   :  { %v3455_v37 = vpop.f32.mrb[180].mxu1  ;;  %2034 = vmatprep.mubr.bf16.mxu0 %v1907_v57 }
 0x735   :  { %v3456_v1 = vpop.f32.mrb[181].mxu1  ;;  %2035 = vmatmul.mubr.bf16.gmra.mrb[176].mxu0 %v4915_v61 }
 0x736   :  { %v3457_v15 = vadd.f32 %v3456_v1, %v3455_v37  ;;  %v3458_v21 = vpop.f32.mrb[182].mxu1 }
 0x737   :  { %v3459_v39 = vpop.f32.mrb[183].mxu1 }
 0x738   :  { %v3460_v53 = vadd.f32 %v3459_v39, %v3458_v21 }
 0x73a   :  { %v1908_v9 = vpack.c.bf16 %v3460_v53, %v3457_v15 }
 0x73c   :  { %v3461_v38 = vpop.f32.mrb[184].mxu1  ;;  %2042 = vmatprep.mubr.bf16.mxu0 %v1908_v9 }
 0x73d   :  { %v3462_v10 = vpop.f32.mrb[185].mxu1  ;;  %2043 = vmatmul.mubr.bf16.gmra.mrb[180].mxu0 %v4923_v13 }
 0x73e   :  { %v3463_v19 = vadd.f32 %v3462_v10, %v3461_v38  ;;  %v3464_v36 = vpop.f32.mrb[186].mxu1 }
 0x73f   :  { %v3465_v14 = vpop.f32.mrb[187].mxu1 }
 0x740   :  { %v3466_v30 = vadd.f32 %v3465_v14, %v3464_v36  ;;  %v2417_v36 = vld [vmem:[#allocation10] sm:$0xff] }
 0x742   :  { %v1909_v25 = vpack.c.bf16 %v3466_v30, %v3463_v19 }
 0x744   :  { %v3467_v34 = vpop.f32.mrb[188].mxu1  ;;  %2050 = vmatprep.mubr.bf16.mxu0 %v1909_v25 }
 0x745   :  { %v3468_v5 = vpop.f32.mrb[189].mxu1  ;;  %2051 = vmatmul.mubr.bf16.gmra.mrb[184].mxu0 %v4931_v20 }
 0x746   :  { %v3469_v61 = vadd.f32 %v3468_v5, %v3467_v34  ;;  %v3470_v27 = vpop.f32.mrb[190].mxu1 }
 0x747   :  { %v3471_v2 = vpop.f32.mrb[191].mxu1 }
 0x748   :  { %v3472_v35 = vadd.f32 %v3471_v2, %v3470_v27 }
 0x74a   :  { %v1910_v33 = vpack.c.bf16 %v3472_v35, %v3469_v61 }
 0x74c   :  { %v3473_v7 = vpop.f32.mrb[192].mxu1  ;;  %2058 = vmatprep.mubr.bf16.mxu0 %v1910_v33 }
 0x74d   :  { %v3474_v28 = vpop.f32.mrb[193].mxu1  ;;  %2059 = vmatmul.mubr.bf16.gmra.mrb[188].mxu0 %v4939_v23 }
 0x74e   :  { %v3475_v13 = vadd.f32 %v3474_v28, %v3473_v7  ;;  %v3476_v26 = vpop.f32.mrb[194].mxu1 }
 0x74f   :  { %v3477_v18 = vpop.f32.mrb[195].mxu1 }
 0x750   :  { %v3478_v42 = vadd.f32 %v3477_v18, %v3476_v26 }
 0x752   :  { %v1911_v8 = vpack.c.bf16 %v3478_v42, %v3475_v13 }
 0x754   :  { %v3479_v24 = vpop.f32.mrb[196].mxu1  ;;  %2066 = vmatprep.mubr.bf16.mxu0 %v1911_v8 }
 0x755   :  { %v3480_v56 = vpop.f32.mrb[197].mxu1  ;;  %2067 = vmatmul.mubr.bf16.gmra.mrb[192].mxu0 %v4947_v29 }
 0x756   :  { %v3481_v20 = vadd.f32 %v3480_v56, %v3479_v24  ;;  %v3482_v6 = vpop.f32.mrb[198].mxu1 }
 0x757   :  { %v3483_v43 = vpop.f32.mrb[199].mxu1 }
 0x758   :  { %v3484_v41 = vadd.f32 %v3483_v43, %v3482_v6 }
 0x75a   :  { %v1912_v60 = vpack.c.bf16 %v3484_v41, %v3481_v20 }
 0x75c   :  { %v3485_v11 = vpop.f32.mrb[200].mxu1  ;;  %2074 = vmatprep.mubr.bf16.mxu0 %v1912_v60 }
 0x75d   :  { %v3486_v57 = vpop.f32.mrb[201].mxu1  ;;  %2075 = vmatmul.mubr.bf16.gmra.mrb[196].mxu0 %v4955_v0  ;;  %v2418_v0 = vld [vmem:[#allocation10 + $0x8] sm:$0xff] }
 0x75e   :  { %v3487_v23 = vadd.f32 %v3486_v57, %v3485_v11  ;;  %v3488_v37 = vpop.f32.mrb[202].mxu1  ;;  %v2449_v14 = vpack.c.bf16 %v2418_v0, %v2417_v36  ;;  %v2421_v0 = vld [vmem:[#allocation10 + $0x20] sm:$0xff] }
 0x75f   :  { %v3489_v1 = vpop.f32.mrb[203].mxu1 }
 0x760   :  { %v3490_v15 = vadd.f32 %v3489_v1, %v3488_v37  ;;  %3705 = vmatprep.subr.bf16.mxu1 %v2449_v14  ;;  %v2420_v37 = vld [vmem:[#allocation10 + $0x18] sm:$0xff] }
 0x761   :  { %3706 = vmatpush3.bf16.msra.mxu1 %v2449_v14  ;;  %v2422_v14 = vld [vmem:[#allocation10 + $0x28] sm:$0xff] }
 0x762   :  { %v1913_v21 = vpack.c.bf16 %v3490_v15, %v3487_v23  ;;  %v2419_v23 = vld [vmem:[#allocation10 + $0x10] sm:$0xff] }
 0x763   :  { %v2450_v15 = vpack.c.bf16 %v2420_v37, %v2419_v23 }
 0x764   :  { %v3491_v39 = vpop.f32.mrb[204].mxu1  ;;  %2082 = vmatprep.mubr.bf16.mxu0 %v1913_v21 }
 0x765   :  { %v3492_v53 = vpop.f32.mrb[205].mxu1  ;;  %2083 = vmatmul.mubr.bf16.gmra.mrb[200].mxu0 %v4963_v16  ;;  %3707 = vmatprep.subr.bf16.mxu1 %v2450_v15 }
 0x766   :  { %v3493_v29 = vadd.f32 %v3492_v53, %v3491_v39  ;;  %v3494_v9 = vpop.f32.mrb[206].mxu1  ;;  %3708 = vmatpush3.bf16.msra.mxu1 %v2450_v15  ;;  %v2428_v15 = vld [vmem:[#allocation10 + $0x58] sm:$0xff] }
 0x767   :  { %v3495_v38 = vpop.f32.mrb[207].mxu1 }
 0x768   :  { %v3496_v10 = vadd.f32 %v3495_v38, %v3494_v9 }
 0x76a   :  { %v1914_v19 = vpack.c.bf16 %v3496_v10, %v3493_v29 }
 0x76c   :  { %2090 = vmatprep.mubr.bf16.mxu0 %v1914_v19 }
 0x76d   :  { %2091 = vmatmul.mubr.bf16.gmra.mrb[204].mxu0 %v4970_v22  ;;  %v5024_v22 = vld [vmem:[%s5651_s10] ss:$0 sm:$0xff] }
 0x7c8   :  { %v3513_v30 = vpop.f32.mrb[144].mxu0 }
 0x7c9   :  { %v3514_v25 = vpop.f32.mrb[145].mxu0 }
 0x7ca   :  { %v3515_v34 = vadd.f32 %v3514_v25, %v3513_v30  ;;  %v3516_v5 = vpop.f32.mrb[146].mxu0  ;;  %v2451_v30 = vpack.c.bf16 %v2422_v14, %v2421_v0 }
 0x7cb   :  { %v3517_v61 = vpop.f32.mrb[147].mxu0 }
 0x7cc   :  { %v3518_v27 = vadd.f32 %v3517_v61, %v3516_v5  ;;  %v1973_v56 = vadd.f32 %v3515_v34, %v5024_v22  ;;  %3709 = vmatprep.subr.bf16.mxu1 %v2451_v30 }
 0x7cd   :  { %3710 = vmatpush3.bf16.msra.mxu1 %v2451_v30 }
 0x7ce   :  { %v1976_v18 = vadd.f32 %v3518_v27, %v5024_v22  ;;  %v2099_v41 = vmax.f32 %v1973_v56, 0.0  ;;  %v2423_v27 = vld [vmem:[#allocation10 + $0x30] sm:$0xff] }
 0x7d0   :  { %v3519_v16 = vpop.f32.mrb[148].mxu0  ;;  %v2100_v43 = vmax.f32 %v1976_v18, 0.0  ;;  %v5035_v38 = vmul.f32 %v2099_v41, %v4403_v45 }
 0x7d1   :  { %v3520_v2 = vpop.f32.mrb[149].mxu0 }
 0x7d2   :  { %v3521_v35 = vadd.f32 %v3520_v2, %v3519_v16  ;;  %v3522_v33 = vpop.f32.mrb[150].mxu0  ;;  %v5031_v21 = vmul.f32 %v2100_v43, %v4407_v47  ;;  %v2200_v45 = vmul.f32 %v5035_v38, %v5035_v38  ;;  %v2424_v16 = vld [vmem:[#allocation10 + $0x38] sm:$0xff] }
 0x7d3   :  { %v3523_v7 = vpop.f32.mrb[151].mxu0 }
 0x7d4   :  { %v3524_v28 = vadd.f32 %v3523_v7, %v3522_v33  ;;  %v1981_v20 = vadd.f32 %v3521_v35, %v5024_v22  ;;  %v2201_v47 = vmul.f32 %v5031_v21, %v5031_v21  ;;  %v2163_v2 = vadd.f32 %v5031_v21, %v5035_v38 }
 0x7d5   :  { %v2452_v7 = vpack.c.bf16 %v2424_v16, %v2423_v27 }
 0x7d6   :  { %v2101_v60 = vmax.f32 %v1981_v20, 0.0  ;;  %v1984_v11 = vadd.f32 %v3524_v28, %v5024_v22  ;;  %v2232_v28 = vadd.f32 %v2201_v47, %v2200_v45  ;;  %v2425_v20 = vld [vmem:[#allocation10 + $0x40] sm:$0xff]  ;;  %v2432_v45 = vld [vmem:[#allocation10 + $0x78] sm:$0xff] }
 0x7d7   :  { %3711 = vmatprep.subr.bf16.mxu1 %v2452_v7 }
 0x7d8   :  { %v3525_v13 = vpop.f32.mrb[152].mxu0  ;;  %v5038_v10 = vmul.f32 %v2101_v60, %v4413_v50  ;;  %v2102_v19 = vmax.f32 %v1984_v11, 0.0  ;;  %3712 = vmatpush3.bf16.msra.mxu1 %v2452_v7 }
 0x7d9   :  { %v3526_v26 = vpop.f32.mrb[153].mxu0 }
 0x7da   :  { %v3527_v42 = vadd.f32 %v3526_v26, %v3525_v13  ;;  %v3528_v8 = vpop.f32.mrb[154].mxu0  ;;  %v2202_v50 = vmul.f32 %v5038_v10, %v5038_v10  ;;  %v5048_v5 = vmul.f32 %v2102_v19, %v4415_v51  ;;  %v2164_v18 = vadd.f32 %v2163_v2, %v5038_v10  ;;  %v2430_v19 = vld [vmem:[#allocation10 + $0x68] sm:$0xff] }
 0x7db   :  { %v3529_v24 = vpop.f32.mrb[155].mxu0 }
 0x7dc   :  { %v3530_v6 = vadd.f32 %v3529_v24, %v3528_v8  ;;  %v1989_v29 = vadd.f32 %v3527_v42, %v5024_v22  ;;  %v2233_v24 = vadd.f32 %v2232_v28, %v2202_v50  ;;  %v2203_v56 = vmul.f32 %v5048_v5, %v5048_v5 }
 0x7de   :  { %v2103_v25 = vmax.f32 %v1989_v29, 0.0  ;;  %v1992_v34 = vadd.f32 %v3530_v6, %v5024_v22  ;;  %v2426_v6 = vld [vmem:[#allocation10 + $0x48] sm:$0xff] }
 0x7df   :  { %v2453_v11 = vpack.c.bf16 %v2426_v6, %v2425_v20 }
 0x7e0   :  { %v3531_v57 = vpop.f32.mrb[156].mxu0  ;;  %v5055_v42 = vmul.f32 %v2103_v25, %v4421_v54  ;;  %v2104_v51 = vmax.f32 %v1992_v34, 0.0  ;;  %v2431_v34 = vld [vmem:[#allocation10 + $0x70] sm:$0xff] }
 0x7e1   :  { %v3532_v1 = vpop.f32.mrb[157].mxu0  ;;  %3713 = vmatprep.subr.bf16.mxu1 %v2453_v11  ;;  %v2456_v28 = vpack.c.bf16 %v2432_v45, %v2431_v34 }
 0x7e2   :  { %v3533_v39 = vadd.f32 %v3532_v1, %v3531_v57  ;;  %v3534_v53 = vpop.f32.mrb[158].mxu0  ;;  %v2165_v57 = vadd.f32 %v2164_v18, %v5048_v5  ;;  %v2204_v54 = vmul.f32 %v5055_v42, %v5055_v42  ;;  %v5064_v23 = vmul.f32 %v2104_v51, %v4423_v55  ;;  %v2427_v1 = vld [vmem:[#allocation10 + $0x50] sm:$0xff]  ;;  %3714 = vmatpush3.bf16.msra.mxu1 %v2453_v11 }
 0x7e3   :  { %v3535_v9 = vpop.f32.mrb[159].mxu0 }
 0x7e4   :  { %v3536_v36 = vadd.f32 %v3535_v9, %v3534_v53  ;;  %v1997_v35 = vadd.f32 %v3533_v39, %v5024_v22  ;;  %v2429_v39 = vld [vmem:[#allocation10 + $0x60] sm:$0xff]  ;;  %v2234_v53 = vadd.f32 %v2233_v24, %v2203_v56  ;;  %v2454_v9 = vpack.c.bf16 %v2428_v15, %v2427_v1 }
 0x7e5   :  { %v2455_v55 = vpack.c.bf16 %v2430_v19, %v2429_v39 }
 0x7e6   :  { %v2105_v43 = vmax.f32 %v1997_v35, 0.0  ;;  %v2000_v41 = vadd.f32 %v3536_v36, %v5024_v22  ;;  %v2166_v36 = vadd.f32 %v2165_v57, %v5055_v42  ;;  %3715 = vmatprep.subr.bf16.mxu1 %v2454_v9  ;;  %v2235_v50 = vadd.f32 %v2234_v53, %v2204_v54 }
 0x7e7   :  { %3716 = vmatpush3.bf16.msra.mxu1 %v2454_v9 }
 0x7e8   :  { %v3537_v61 = vpop.f32.mrb[160].mxu0  ;;  %v5069_v0 = vmul.f32 %v2105_v43, %v4429_v58  ;;  %v2106_v14 = vmax.f32 %v2000_v41, 0.0  ;;  %v2167_v58 = vadd.f32 %v2166_v36, %v5064_v23  ;;  %3717 = vmatprep.subr.bf16.mxu1 %v2455_v55 }
 0x7e9   :  { %v3538_v33 = vpop.f32.mrb[161].mxu0 }
 0x7ea   :  { %v3539_v13 = vadd.f32 %v3538_v33, %v3537_v61  ;;  %v3540_v26 = vpop.f32.mrb[162].mxu0  ;;  %v2205_v61 = vmul.f32 %v5064_v23, %v5064_v23  ;;  %v2206_v33 = vmul.f32 %v5069_v0, %v5069_v0  ;;  %v5078_v7 = vmul.f32 %v2106_v14, %v4431_v59 }
 0x7eb   :  { %v3541_v8 = vpop.f32.mrb[163].mxu0  ;;  %v2168_v18 = vadd.f32 %v2167_v58, %v5069_v0  ;;  %3718 = vmatpush3.bf16.msra.mxu1 %v2455_v55 }
 0x7ec   :  { %v3542_v60 = vadd.f32 %v3541_v8, %v3540_v26  ;;  %v2005_v37 = vadd.f32 %v3539_v13, %v5024_v22  ;;  %v2236_v26 = vadd.f32 %v2235_v50, %v2205_v61  ;;  %v2207_v20 = vmul.f32 %v5078_v7, %v5078_v7  ;;  %3719 = vmatprep.subr.bf16.mxu1 %v2456_v28 }
 0x7ed   :  { %v2169_v11 = vadd.f32 %v2168_v18, %v5078_v7 }
 0x7ee   :  { %v2107_v27 = vmax.f32 %v2005_v37, 0.0  ;;  %v2008_v16 = vadd.f32 %v3542_v60, %v5024_v22  ;;  %v2237_v56 = vadd.f32 %v2236_v26, %v2206_v33 }
 0x7ef   :  { %3720 = vmatpush3.bf16.msra.mxu1 %v2456_v28 }
 0x7f0   :  { %v3543_v29 = vpop.f32.mrb[164].mxu0  ;;  %v5083_v51 = vmul.f32 %v2107_v27, %v4437_v62  ;;  %v2108_v8 = vmax.f32 %v2008_v16, 0.0  ;;  %v2238_v1 = vadd.f32 %v2237_v56, %v2207_v20 }
 0x7f1   :  { %v3544_v30 = vpop.f32.mrb[165].mxu0 }
 0x7f2   :  { %v3545_v47 = vadd.f32 %v3544_v30, %v3543_v29  ;;  %v3546_v25 = vpop.f32.mrb[166].mxu0  ;;  %v2208_v62 = vmul.f32 %v5083_v51, %v5083_v51  ;;  %v5092_v57 = vmul.f32 %v2108_v8, %v4439_v63  ;;  %v2170_v15 = vadd.f32 %v2169_v11, %v5083_v51 }
 0x7f3   :  { %v3547_v2 = vpop.f32.mrb[167].mxu0 }
 0x7f4   :  { %v3548_v35 = vadd.f32 %v3547_v2, %v3546_v25  ;;  %v2013_v13 = vadd.f32 %v3545_v47, %v5024_v22  ;;  %v2239_v9 = vadd.f32 %v2238_v1, %v2208_v62  ;;  %v2209_v19 = vmul.f32 %v5092_v57, %v5092_v57 }
 0x7f5   :  { %v2171_v30 = vadd.f32 %v2170_v15, %v5092_v57 }
 0x7f6   :  { %v2109_v59 = vmax.f32 %v2013_v13, 0.0  ;;  %v2016_v43 = vadd.f32 %v3548_v35, %v5024_v22  ;;  %v2240_v45 = vadd.f32 %v2239_v9, %v2209_v19 }
 0x7f8   :  { %v3549_v24 = vpop.f32.mrb[168].mxu0  ;;  %v5097_v53 = vmul.f32 %v2109_v59, %v4450_v3  ;;  %v2110_v29 = vmax.f32 %v2016_v43, 0.0 }
 0x7f9   :  { %v3550_v6 = vpop.f32.mrb[169].mxu0 }
 0x7fa   :  { %v3551_v41 = vadd.f32 %v3550_v6, %v3549_v24  ;;  %v3552_v60 = vpop.f32.mrb[170].mxu0  ;;  %v2210_v47 = vmul.f32 %v5097_v53, %v5097_v53  ;;  %v5106_v25 = vmul.f32 %v2110_v29, %v4452_v4  ;;  %v2172_v50 = vadd.f32 %v2171_v30, %v5097_v53 }
 0x7fb   :  { %v3553_v54 = vpop.f32.mrb[171].mxu0 }
 0x7fc   :  { %v2021_v37 = vadd.f32 %v3551_v41, %v5024_v22  ;;  %v3554_v39 = vadd.f32 %v3553_v54, %v3552_v60  ;;  %v2241_v58 = vadd.f32 %v2240_v45, %v2210_v47  ;;  %v2211_v33 = vmul.f32 %v5106_v25, %v5106_v25 }
 0x7fd   :  { %v2173_v13 = vadd.f32 %v2172_v50, %v5106_v25 }
 0x7fe   :  { %v2111_v36 = vmax.f32 %v2021_v37, 0.0  ;;  %v2024_v63 = vadd.f32 %v3554_v39, %v5024_v22  ;;  %v2242_v56 = vadd.f32 %v2241_v58, %v2211_v33 }
 0x800   :  { %v3555_v14 = vpop.f32.mrb[172].mxu0  ;;  %v5110_v27 = vmul.f32 %v2111_v36, %v4493_v31  ;;  %v2112_v16 = vmax.f32 %v2024_v63, 0.0 }
 0x801   :  { %v3556_v55 = vpop.f32.mrb[173].mxu0 }
 0x802   :  { %v3557_v3 = vadd.f32 %v3556_v55, %v3555_v14  ;;  %v3558_v34 = vpop.f32.mrb[174].mxu0  ;;  %v2212_v26 = vmul.f32 %v5110_v27, %v5110_v27  ;;  %v5120_v18 = vmul.f32 %v2112_v16, %v4495_v32  ;;  %v2174_v8 = vadd.f32 %v2173_v13, %v5110_v27 }
 0x803   :  { %v3559_v61 = vpop.f32.mrb[175].mxu0 }
 0x804   :  { %v2029_v2 = vadd.f32 %v3557_v3, %v5024_v22  ;;  %v3560_v35 = vadd.f32 %v3559_v61, %v3558_v34  ;;  %v2243_v60 = vadd.f32 %v2242_v56, %v2212_v26  ;;  %v2213_v11 = vmul.f32 %v5120_v18, %v5120_v18 }
 0x805   :  { %v2175_v32 = vadd.f32 %v2174_v8, %v5120_v18 }
 0x806   :  { %v2113_v28 = vmax.f32 %v2029_v2, 0.0  ;;  %v2032_v4 = vadd.f32 %v3560_v35, %v5024_v22  ;;  %v2244_v29 = vadd.f32 %v2243_v60, %v2213_v11 }
 0x808   :  { %v3561_v31 = vpop.f32.mrb[176].mxu0  ;;  %v5124_v20 = vmul.f32 %v2113_v28, %v4556_v12  ;;  %v2114_v6 = vmax.f32 %v2032_v4, 0.0 }
 0x809   :  { %v3562_v24 = vpop.f32.mrb[177].mxu0 }
 0x80a   :  { %v3563_v59 = vadd.f32 %v3562_v24, %v3561_v31  ;;  %v3564_v43 = vpop.f32.mrb[178].mxu0  ;;  %v2214_v37 = vmul.f32 %v5124_v20, %v5124_v20  ;;  %v5133_v1 = vmul.f32 %v2114_v6, %v4558_v17  ;;  %v2176_v15 = vadd.f32 %v2175_v32, %v5124_v20 }
 0x80b   :  { %v3565_v41 = vpop.f32.mrb[179].mxu0 }
 0x80c   :  { %v2037_v62 = vadd.f32 %v3563_v59, %v5024_v22  ;;  %v3566_v54 = vadd.f32 %v3565_v41, %v3564_v43  ;;  %v2245_v14 = vadd.f32 %v2244_v29, %v2214_v37  ;;  %v2215_v30 = vmul.f32 %v5133_v1, %v5133_v1 }
 0x80d   :  { %v2177_v17 = vadd.f32 %v2176_v15, %v5133_v1 }
 0x80e   :  { %v2115_v12 = vmax.f32 %v2037_v62, 0.0  ;;  %v2040_v39 = vadd.f32 %v3566_v54, %v5024_v22  ;;  %v2246_v61 = vadd.f32 %v2245_v14, %v2215_v30  ;;  %v5844_v14 = vld [vmem:[#allocation18_spill] sm:$0xff] }
 0x810   :  { %v5138_v9 = vmul.f32 %v2115_v12, %v4401_v44  ;;  %v3567_v19 = vpop.f32.mrb[180].mxu0  ;;  %v2116_v36 = vmax.f32 %v2040_v39, 0.0 }
 0x811   :  { %v3568_v63 = vpop.f32.mrb[181].mxu0 }
 0x812   :  { %v3569_v55 = vadd.f32 %v3568_v63, %v3567_v19  ;;  %v3570_v47 = vpop.f32.mrb[182].mxu0  ;;  %v2216_v34 = vmul.f32 %v5138_v9, %v5138_v9  ;;  %v5146_v45 = vmul.f32 %v2116_v36, %v4405_v46  ;;  %v2178_v16 = vadd.f32 %v2177_v17, %v5138_v9 }
 0x813   :  { %v3571_v3 = vpop.f32.mrb[183].mxu0 }
 0x814   :  { %v2045_v44 = vadd.f32 %v3569_v55, %v5024_v22  ;;  %v3572_v50 = vadd.f32 %v3571_v3, %v3570_v47  ;;  %v2247_v58 = vadd.f32 %v2246_v61, %v2216_v34  ;;  %v2217_v33 = vmul.f32 %v5146_v45, %v5146_v45 }
 0x815   :  { %v2179_v26 = vadd.f32 %v2178_v16, %v5146_v45  ;;  %v5845_v16 = vld [vmem:[#allocation19_spill] sm:$0xff] }
 0x816   :  { %v2117_v2 = vmax.f32 %v2045_v44, 0.0  ;;  %v2048_v35 = vadd.f32 %v3572_v50, %v5024_v22  ;;  %v2248_v59 = vadd.f32 %v2247_v58, %v2217_v33 }
 0x818   :  { %v5154_v28 = vmul.f32 %v2117_v2, %v4409_v48  ;;  %v2118_v4 = vmax.f32 %v2048_v35, 0.0  ;;  %v3573_v13 = vpop.f32.mrb[184].mxu0 }
 0x819   :  { %v3574_v46 = vpop.f32.mrb[185].mxu0 }
 0x81a   :  { %v2218_v31 = vmul.f32 %v5154_v28, %v5154_v28  ;;  %v5160_v8 = vmul.f32 %v2118_v4, %v4411_v49  ;;  %v3575_v24 = vadd.f32 %v3574_v46, %v3573_v13  ;;  %v3576_v56 = vpop.f32.mrb[186].mxu0  ;;  %v2180_v43 = vadd.f32 %v2179_v26, %v5154_v28  ;;  %v5846_v46 = vld [vmem:[#allocation20_spill] sm:$0xff] }
 0x81b   :  { %v3577_v6 = vpop.f32.mrb[187].mxu0 }
 0x81c   :  { %v2053_v48 = vadd.f32 %v3575_v24, %v5024_v22  ;;  %v3578_v41 = vadd.f32 %v3577_v6, %v3576_v56  ;;  %v2249_v60 = vadd.f32 %v2248_v59, %v2218_v31  ;;  %v2219_v11 = vmul.f32 %v5160_v8, %v5160_v8 }
 0x81d   :  { %v2181_v54 = vadd.f32 %v2180_v43, %v5160_v8 }
 0x81e   :  { %v2119_v62 = vmax.f32 %v2053_v48, 0.0  ;;  %v2056_v32 = vadd.f32 %v3578_v41, %v5024_v22  ;;  %v2250_v39 = vadd.f32 %v2249_v60, %v2219_v11 }
 0x820   :  { %v5169_v49 = vmul.f32 %v2119_v62, %v4417_v52  ;;  %v3579_v37 = vpop.f32.mrb[188].mxu0  ;;  %v2120_v12 = vmax.f32 %v2056_v32, 0.0  ;;  %v2657_v62 = vld [vmem:[#allocation12] sm:$0xff]  ;;  %v2658_v32 = vld [vmem:[#allocation12 + $0x8] sm:$0xff] }
 0x821   :  { %v3580_v15 = vpop.f32.mrb[189].mxu0 }
 0x822   :  { %v2182_v29 = vadd.f32 %v2181_v54, %v5169_v49  ;;  %v2220_v19 = vmul.f32 %v5169_v49, %v5169_v49  ;;  %v3581_v36 = vadd.f32 %v3580_v15, %v3579_v37  ;;  %v3582_v63 = vpop.f32.mrb[190].mxu0  ;;  %v5175_v30 = vmul.f32 %v2120_v12, %v5844_v14  ;;  %v2659_v54 = vld [vmem:[#allocation12 + $0x10] sm:$0xff]  ;;  %v2660_v15 = vld [vmem:[#allocation12 + $0x18] sm:$0xff]  ;;  %v2662_v14 = vld [vmem:[#allocation12 + $0x28] sm:$0xff] }
 0x823   :  { %v3583_v55 = vpop.f32.mrb[191].mxu0  ;;  %v2689_v12 = vpack.c.bf16 %v2658_v32, %v2657_v62  ;;  %v2666_v62 = vld [vmem:[#allocation12 + $0x48] sm:$0xff] }
 0x824   :  { %v2251_v47 = vadd.f32 %v2250_v39, %v2220_v19  ;;  %v2061_v17 = vadd.f32 %v3581_v36, %v5024_v22  ;;  %v3584_v52 = vadd.f32 %v3583_v55, %v3582_v63  ;;  %v2183_v3 = vadd.f32 %v2182_v29, %v5175_v30  ;;  %v5847_v39 = vld [vmem:[#allocation21_spill] sm:$0xff] }
 0x825   :  { %v2221_v34 = vmul.f32 %v5175_v30, %v5175_v30  ;;  %v2690_v36 = vpack.c.bf16 %v2660_v15, %v2659_v54  ;;  %v2661_v63 = vld [vmem:[#allocation12 + $0x20] sm:$0xff]  ;;  %3753 = vmatprep.subr.bf16.mxu0 %v2689_v12 }
 0x826   :  { %v2121_v44 = vmax.f32 %v2061_v17, 0.0  ;;  %v2064_v50 = vadd.f32 %v3584_v52, %v5024_v22  ;;  %3754 = vmatpush3.bf16.msra.mxu0 %v2689_v12  ;;  %v5850_v12 = vld [vmem:[#allocation24_spill] sm:$0xff] }
 0x827   :  { %v2252_v61 = vadd.f32 %v2251_v47, %v2221_v34  ;;  %3755 = vmatprep.subr.bf16.mxu0 %v2690_v36 }
 0x828   :  { %v5183_v2 = vmul.f32 %v2121_v44, %v5845_v16  ;;  %v2122_v35 = vmax.f32 %v2064_v50, 0.0  ;;  %v3585_v58 = vpop.f32.mrb[192].mxu0  ;;  %v5848_v44 = vld [vmem:[#allocation22_spill] sm:$0xff]  ;;  %v2691_v16 = vpack.c.bf16 %v2662_v14, %v2661_v63 }
 0x829   :  { %v3586_v33 = vpop.f32.mrb[193].mxu0 }
 0x82a   :  { %v2184_v4 = vadd.f32 %v2183_v3, %v5183_v2  ;;  %v2222_v13 = vmul.f32 %v5183_v2, %v5183_v2  ;;  %v5189_v26 = vmul.f32 %v2122_v35, %v5846_v46  ;;  %v3587_v31 = vadd.f32 %v3586_v33, %v3585_v58  ;;  %v3588_v24 = vpop.f32.mrb[194].mxu0  ;;  %3756 = vmatpush3.bf16.msra.mxu0 %v2690_v36 }
 0x82b   :  { %v3589_v56 = vpop.f32.mrb[195].mxu0  ;;  %3757 = vmatprep.subr.bf16.mxu0 %v2691_v16 }
 0x82c   :  { %v2253_v6 = vadd.f32 %v2252_v61, %v2222_v13  ;;  %v2185_v59 = vadd.f32 %v2184_v4, %v5189_v26  ;;  %v2223_v43 = vmul.f32 %v5189_v26, %v5189_v26  ;;  %v2069_v48 = vadd.f32 %v3587_v31, %v5024_v22  ;;  %v2663_v4 = vld [vmem:[#allocation12 + $0x30] sm:$0xff]  ;;  %v2664_v13 = vld [vmem:[#allocation12 + $0x38] sm:$0xff] }
 0x82d   :  { %v3590_v41 = vadd.f32 %v3589_v56, %v3588_v24 }
 0x82e   :  { %v2254_v60 = vadd.f32 %v2253_v6, %v2223_v43  ;;  %v2123_v11 = vmax.f32 %v2069_v48, 0.0  ;;  %v5849_v43 = vld [vmem:[#allocation23_spill] sm:$0xff]  ;;  %3758 = vmatpush3.bf16.msra.mxu0 %v2691_v16 }
 0x82f   :  { %v2072_v37 = vadd.f32 %v3590_v41, %v5024_v22 }
 0x830   :  { %v5197_v29 = vmul.f32 %v2123_v11, %v5847_v39  ;;  %v3591_v19 = vpop.f32.mrb[196].mxu0  ;;  %v2665_v11 = vld [vmem:[#allocation12 + $0x40] sm:$0xff] }
 0x831   :  { %v2124_v55 = vmax.f32 %v2072_v37, 0.0  ;;  %v3592_v47 = vpop.f32.mrb[197].mxu0  ;;  %v2693_v63 = vpack.c.bf16 %v2666_v62, %v2665_v11 }
 0x832   :  { %v2186_v17 = vadd.f32 %v2185_v59, %v5197_v29  ;;  %v2224_v52 = vmul.f32 %v5197_v29, %v5197_v29  ;;  %v3593_v3 = vadd.f32 %v3592_v47, %v3591_v19  ;;  %v3594_v34 = vpop.f32.mrb[198].mxu0  ;;  %v2692_v59 = vpack.c.bf16 %v2664_v13, %v2663_v4 }
 0x833   :  { %v5203_v50 = vmul.f32 %v2124_v55, %v5848_v44  ;;  %v3595_v61 = vpop.f32.mrb[199].mxu0 }
 0x834   :  { %v2255_v35 = vadd.f32 %v2254_v60, %v2224_v52  ;;  %v2077_v58 = vadd.f32 %v3593_v3, %v5024_v22  ;;  %v3596_v33 = vadd.f32 %v3595_v61, %v3594_v34  ;;  %3759 = vmatprep.subr.bf16.mxu0 %v2692_v59  ;;  %v2667_v52 = vld [vmem:[#allocation12 + $0x50] sm:$0xff]  ;;  %v2668_v3 = vld [vmem:[#allocation12 + $0x58] sm:$0xff] }
 0x835   :  { %v2187_v46 = vadd.f32 %v2186_v17, %v5203_v50  ;;  %v2225_v31 = vmul.f32 %v5203_v50, %v5203_v50  ;;  %3760 = vmatpush3.bf16.msra.mxu0 %v2692_v59  ;;  %v2694_v16 = vpack.c.bf16 %v2668_v3, %v2667_v52 }
 0x836   :  { %v2125_v24 = vmax.f32 %v2077_v58, 0.0  ;;  %v2080_v56 = vadd.f32 %v3596_v33, %v5024_v22  ;;  %3761 = vmatprep.subr.bf16.mxu0 %v2693_v63  ;;  %v5851_v58 = vld [vmem:[#allocation25_spill] sm:$0xff] }
 0x837   :  { %v2256_v6 = vadd.f32 %v2255_v35, %v2225_v31 }
 0x838   :  { %v5211_v48 = vmul.f32 %v2125_v24, %v5849_v43  ;;  %v2126_v41 = vmax.f32 %v2080_v56, 0.0  ;;  %v3597_v60 = vpop.f32.mrb[200].mxu0  ;;  %v5852_v43 = vld [vmem:[#allocation26_spill] sm:$0xff] }
 0x839   :  { %v3598_v32 = vpop.f32.mrb[201].mxu0  ;;  %3762 = vmatpush3.bf16.msra.mxu0 %v2693_v63 }
 0x83a   :  { %v2188_v54 = vadd.f32 %v2187_v46, %v5211_v48  ;;  %v2226_v37 = vmul.f32 %v5211_v48, %v5211_v48  ;;  %v5217_v15 = vmul.f32 %v2126_v41, %v5850_v12  ;;  %v3599_v39 = vadd.f32 %v3598_v32, %v3597_v60  ;;  %v3600_v19 = vpop.f32.mrb[202].mxu0  ;;  %3763 = vmatprep.subr.bf16.mxu0 %v2694_v16 }
 0x83b   :  { %v3601_v36 = vpop.f32.mrb[203].mxu0 }
 0x83c   :  { %v2257_v14 = vadd.f32 %v2256_v6, %v2226_v37  ;;  %v2189_v55 = vadd.f32 %v2188_v54, %v5217_v15  ;;  %v2227_v47 = vmul.f32 %v5217_v15, %v5217_v15  ;;  %v2085_v17 = vadd.f32 %v3599_v39, %v5024_v22 }
 0x83d   :  { %v3602_v34 = vadd.f32 %v3601_v36, %v3600_v19  ;;  %3764 = vmatpush3.bf16.msra.mxu0 %v2694_v16 }
 0x83e   :  { %v2258_v44 = vadd.f32 %v2257_v14, %v2227_v47  ;;  %v2127_v61 = vmax.f32 %v2085_v17, 0.0 }
 0x83f   :  { %v2088_v35 = vadd.f32 %v3602_v34, %v5024_v22 }
 0x840   :  { %v5225_v33 = vmul.f32 %v2127_v61, %v5851_v58  ;;  %v3603_v4 = vpop.f32.mrb[204].mxu0 }
 0x841   :  { %v2128_v13 = vmax.f32 %v2088_v35, 0.0  ;;  %v3604_v46 = vpop.f32.mrb[205].mxu0 }
 0x842   :  { %v2190_v31 = vadd.f32 %v2189_v55, %v5225_v33  ;;  %v2228_v24 = vmul.f32 %v5225_v33, %v5225_v33  ;;  %v3605_v56 = vadd.f32 %v3604_v46, %v3603_v4  ;;  %v3606_v6 = vpop.f32.mrb[206].mxu0  ;;  %v5853_v55 = vld [vmem:[#allocation28_spill] sm:$0xff] }
 0x843   :  { %v5231_v59 = vmul.f32 %v2128_v13, %v5852_v43  ;;  %v3607_v41 = vpop.f32.mrb[207].mxu0 }
 0x844   :  { %v2259_v60 = vadd.f32 %v2258_v44, %v2228_v24  ;;  %v2093_v11 = vadd.f32 %v3605_v56, %v5024_v22  ;;  %v3608_v62 = vadd.f32 %v3607_v41, %v3606_v6 }
 0x845   :  { %v2191_v32 = vadd.f32 %v2190_v31, %v5231_v59  ;;  %v2229_v54 = vmul.f32 %v5231_v59, %v5231_v59 }
 0x846   :  { %v2129_v37 = vmax.f32 %v2093_v11, 0.0  ;;  %v2096_v12 = vadd.f32 %v3608_v62, %v5024_v22 }
 0x847   :  { %v2260_v39 = vadd.f32 %v2259_v60, %v2229_v54 }
 0x848   :  { %v5239_v19 = vmul.f32 %v2129_v37, %v5819_v40  ;;  %v2130_v36 = vmax.f32 %v2096_v12, 0.0 }
 0x84a   :  { %v2192_v63 = vadd.f32 %v2191_v32, %v5239_v19  ;;  %v2230_v14 = vmul.f32 %v5239_v19, %v5239_v19  ;;  %v5245_v47 = vmul.f32 %v2130_v36, %v5853_v55 }
 0x84c   :  { %v2261_v17 = vadd.f32 %v2260_v39, %v2230_v14  ;;  %v2193_v52 = vadd.f32 %v2192_v63, %v5245_v47  ;;  %v2231_v22 = vmul.f32 %v5245_v47, %v5245_v47 }
 0x84e   :  { %v2194_v3 = vrot.slane %v2193_v52, 4  ;;  %v2262_v34 = vadd.f32 %v2261_v17, %v2231_v22 }
 0x850   :  { %v2195_v44 = vadd.f32 %v2194_v3, %v2193_v52  ;;  %v2263_v40 = vrot.slane %v2262_v34, 4 }
 0x852   :  { %v2196_v61 = vrot.slane %v2195_v44, 2  ;;  %v2264_v35 = vadd.f32 %v2263_v40, %v2262_v34 }
 0x854   :  { %v2197_v16 = vadd.f32 %v2196_v61, %v2195_v44  ;;  %v2265_v58 = vrot.slane %v2264_v35, 2 }
 0x856   :  { %v2198_v4 = vrot.slane %v2197_v16, 1  ;;  %v2266_v13 = vadd.f32 %v2265_v58, %v2264_v35 }
 0x858   :  { %v2199_v46 = vadd.f32 %v2198_v4, %v2197_v16  ;;  %v2267_v31 = vrot.slane %v2266_v13, 1 }
 0x85a   :  { %v2268_v24 = vadd.f32 %v2267_v31, %v2266_v13  ;;  %v5250_v56 = vmul.f32 0.003984064, %v2199_v46 }
 0x85c   :  { %v2270_v6 = vmul.f32 0.003984064, %v2268_v24  ;;  %v2271_v43 = vmul.f32 %v5250_v56, %v5250_v56  ;;  %v2304_v41 = vsub.f32 %v5245_v47, %v5250_v56  ;;  %v2293_v62 = vsub.f32 %v5169_v49, %v5250_v56 }
 0x85d   :  { %v2294_v32 = vsub.f32 %v5175_v30, %v5250_v56  ;;  %v2295_v54 = vsub.f32 %v5183_v2, %v5250_v56  ;;  %v2296_v37 = vsub.f32 %v5189_v26, %v5250_v56  ;;  %v2297_v12 = vsub.f32 %v5197_v29, %v5250_v56 }
 0x85e   :  { %v2272_v60 = vsub.f32 %v2270_v6, %v2271_v43  ;;  %v2298_v39 = vsub.f32 %v5203_v50, %v5250_v56  ;;  %v2299_v36 = vsub.f32 %v5211_v48, %v5250_v56  ;;  %v2300_v63 = vsub.f32 %v5217_v15, %v5250_v56 }
 0x85f   :  { %v2301_v14 = vsub.f32 %v5225_v33, %v5250_v56  ;;  %v2302_v55 = vsub.f32 %v5231_v59, %v5250_v56  ;;  %v2303_v17 = vsub.f32 %v5239_v19, %v5250_v56  ;;  %v2273_v52 = vsub.f32 %v5035_v38, %v5250_v56 }
 0x860   :  { %v2305_v11 = vadd.f32 1e-05, %v2272_v60  ;;  %v2274_v22 = vsub.f32 %v5031_v21, %v5250_v56  ;;  %v2275_v3 = vsub.f32 %v5038_v10, %v5250_v56  ;;  %v2276_v34 = vsub.f32 %v5048_v5, %v5250_v56 }
 0x861   :  { %v2277_v44 = vsub.f32 %v5055_v42, %v5250_v56  ;;  %v2278_v40 = vsub.f32 %v5064_v23, %v5250_v56  ;;  %v2279_v61 = vsub.f32 %v5069_v0, %v5250_v56  ;;  %v2280_v38 = vsub.f32 %v5078_v7, %v5250_v56 }
 0x862   :  { %3831 = vrsqrt.f32 %v2305_v11  ;;  %v2281_v21 = vsub.f32 %v5083_v51, %v5250_v56  ;;  %v2282_v10 = vsub.f32 %v5092_v57, %v5250_v56  ;;  %v2283_v5 = vsub.f32 %v5097_v53, %v5250_v56  ;;  %v5315_v57 = vld [vmem:[%s5652_s11] ss:$0 sm:$0xff] }
 0x863   :  { %v2284_v42 = vsub.f32 %v5106_v25, %v5250_v56  ;;  %v2285_v23 = vsub.f32 %v5110_v27, %v5250_v56  ;;  %v2286_v0 = vsub.f32 %v5120_v18, %v5250_v56  ;;  %v2287_v7 = vsub.f32 %v5124_v20, %v5250_v56 }
 0x864   :  { %v2288_v51 = vsub.f32 %v5133_v1, %v5250_v56  ;;  %v2289_v53 = vsub.f32 %v5138_v9, %v5250_v56  ;;  %v2290_v25 = vsub.f32 %v5146_v45, %v5250_v56  ;;  %v2291_v27 = vsub.f32 %v5154_v28, %v5250_v56  ;;  %v5332_v9 = vld [vmem:[%s5653_s12] ss:$0 sm:$0xff] }
 0x865   :  { %v2292_v18 = vsub.f32 %v5160_v8, %v5250_v56 }
 0x86c   :  { %v5310_v35 = vpop.eup %3831 }
 0x86d   :  { %v2309_v20 = vmul.f32 %v5310_v35, %v2275_v3  ;;  %v2310_v1 = vmul.f32 %v5310_v35, %v2276_v34  ;;  %v2307_v16 = vmul.f32 %v5310_v35, %v2273_v52  ;;  %v2308_v58 = vmul.f32 %v5310_v35, %v2274_v22 }
 0x86e   :  { %v2311_v45 = vmul.f32 %v5310_v35, %v2277_v44  ;;  %v2312_v4 = vmul.f32 %v5310_v35, %v2278_v40  ;;  %v2313_v13 = vmul.f32 %v5310_v35, %v2279_v61  ;;  %v2314_v46 = vmul.f32 %v5310_v35, %v2280_v38 }
 0x86f   :  { %v2348_v31 = vmul.f32 %v5315_v57, %v2309_v20  ;;  %v2349_v24 = vmul.f32 %v5315_v57, %v2310_v1  ;;  %v2346_v6 = vmul.f32 %v5315_v57, %v2307_v16  ;;  %v2347_v43 = vmul.f32 %v5315_v57, %v2308_v58 }
 0x870   :  { %v2350_v60 = vmul.f32 %v5315_v57, %v2311_v45  ;;  %v2351_v11 = vmul.f32 %v5315_v57, %v2312_v4  ;;  %v2352_v52 = vmul.f32 %v5315_v57, %v2313_v13  ;;  %v2353_v22 = vmul.f32 %v5315_v57, %v2314_v46 }
 0x871   :  { %v2385_v3 = vadd.f32 %v5332_v9, %v2346_v6  ;;  %v2386_v34 = vadd.f32 %v5332_v9, %v2347_v43  ;;  %v2387_v44 = vadd.f32 %v5332_v9, %v2348_v31  ;;  %v2388_v40 = vadd.f32 %v5332_v9, %v2349_v24 }
 0x872   :  { %v2389_v61 = vadd.f32 %v5332_v9, %v2350_v60  ;;  %v2390_v38 = vadd.f32 %v5332_v9, %v2351_v11  ;;  %v2391_v20 = vadd.f32 %v5332_v9, %v2352_v52  ;;  %v2392_v1 = vadd.f32 %v5332_v9, %v2353_v22 }
 0x873   :  { %v2433_v16 = vpack.c.bf16 %v2386_v34, %v2385_v3  ;;  %v2434_v58 = vpack.c.bf16 %v2388_v40, %v2387_v44  ;;  %v2315_v45 = vmul.f32 %v5310_v35, %v2281_v21  ;;  %v2316_v4 = vmul.f32 %v5310_v35, %v2282_v10 }
 0x874   :  { %v2435_v13 = vpack.c.bf16 %v2390_v38, %v2389_v61  ;;  %v2436_v46 = vpack.c.bf16 %v2392_v1, %v2391_v20  ;;  %v2317_v31 = vmul.f32 %v5310_v35, %v2283_v5  ;;  %v2318_v24 = vmul.f32 %v5310_v35, %v2284_v42 }
 0x875   :  { %3721 = vmatprep.mubr.bf16.mxu1 %v2433_v16  ;;  %v2354_v6 = vmul.f32 %v5315_v57, %v2315_v45  ;;  %v2355_v43 = vmul.f32 %v5315_v57, %v2316_v4  ;;  %v2319_v60 = vmul.f32 %v5310_v35, %v2285_v23  ;;  %v2320_v11 = vmul.f32 %v5310_v35, %v2286_v0 }
 0x876   :  { %3722 = vmatmul.mubr.bf16.vlgmr.msra.gmra.mrb[208].mxu1 %v2434_v58  ;;  %v2356_v21 = vmul.f32 %v5315_v57, %v2317_v31  ;;  %v2357_v10 = vmul.f32 %v5315_v57, %v2318_v24  ;;  %v2321_v52 = vmul.f32 %v5310_v35, %v2287_v7  ;;  %v2322_v5 = vmul.f32 %v5310_v35, %v2288_v51 }
 0x877   :  { %3725 = vmatprep.mubr.bf16.mxu1 %v2435_v13  ;;  %v2393_v42 = vadd.f32 %v5332_v9, %v2354_v6  ;;  %v2394_v22 = vadd.f32 %v5332_v9, %v2355_v43  ;;  %v2358_v3 = vmul.f32 %v5315_v57, %v2319_v60  ;;  %v2359_v23 = vmul.f32 %v5315_v57, %v2320_v11 }
 0x878   :  { %v2395_v0 = vadd.f32 %v5332_v9, %v2356_v21  ;;  %v2396_v34 = vadd.f32 %v5332_v9, %v2357_v10  ;;  %v2360_v44 = vmul.f32 %v5315_v57, %v2321_v52  ;;  %v2361_v40 = vmul.f32 %v5315_v57, %v2322_v5 }
 0x879   :  { %v2437_v7 = vpack.c.bf16 %v2394_v22, %v2393_v42  ;;  %v2397_v51 = vadd.f32 %v5332_v9, %v2358_v3  ;;  %v2398_v61 = vadd.f32 %v5332_v9, %v2359_v23  ;;  %v2323_v38 = vmul.f32 %v5310_v35, %v2289_v53 }
 0x87a   :  { %v2438_v20 = vpack.c.bf16 %v2396_v34, %v2395_v0  ;;  %v5378_v1 = vadd.f32 %v5332_v9, %v2360_v44  ;;  %v2400_v16 = vadd.f32 %v5332_v9, %v2361_v40  ;;  %v2324_v58 = vmul.f32 %v5310_v35, %v2290_v25 }
 0x87b   :  { %v2439_v45 = vpack.c.bf16 %v2398_v61, %v2397_v51  ;;  %v2362_v4 = vmul.f32 %v5315_v57, %v2323_v38  ;;  %v2325_v13 = vmul.f32 %v5310_v35, %v2291_v27  ;;  %v2326_v53 = vmul.f32 %v5310_v35, %v2292_v18  ;;  %v2669_v61 = vld [vmem:[#allocation12 + $0x60] sm:$0xff]  ;;  %v2670_v38 = vld [vmem:[#allocation12 + $0x68] sm:$0xff] }
 0x87c   :  { %v2440_v31 = vpack.c.bf16 %v2400_v16, %v5378_v1  ;;  %v2363_v24 = vmul.f32 %v5315_v57, %v2324_v58  ;;  %v2327_v25 = vmul.f32 %v5310_v35, %v2293_v62  ;;  %v2328_v28 = vmul.f32 %v5310_v35, %v2294_v32  ;;  %v2672_v1 = vld [vmem:[#allocation12 + $0x78] sm:$0xff] }
 0x87d   :  { %v2401_v27 = vadd.f32 %v5332_v9, %v2362_v4  ;;  %v2364_v8 = vmul.f32 %v5315_v57, %v2325_v13  ;;  %v2365_v18 = vmul.f32 %v5315_v57, %v2326_v53  ;;  %v2329_v6 = vmul.f32 %v5310_v35, %v2295_v54 }
 0x87e   :  { %3726 = vmatmul.mubr.bf16.gmra.mrb[212].mxu1 %v2436_v46  ;;  %v2402_v49 = vadd.f32 %v5332_v9, %v2363_v24  ;;  %v2366_v62 = vmul.f32 %v5315_v57, %v2327_v25  ;;  %v2367_v30 = vmul.f32 %v5315_v57, %v2328_v28  ;;  %v2330_v32 = vmul.f32 %v5310_v35, %v2296_v37 }
 0x87f   :  { %3729 = vmatprep.mubr.bf16.mxu1 %v2437_v7  ;;  %v2403_v43 = vadd.f32 %v5332_v9, %v2364_v8  ;;  %v2404_v60 = vadd.f32 %v5332_v9, %v2365_v18  ;;  %v2368_v2 = vmul.f32 %v5315_v57, %v2329_v6  ;;  %v2331_v54 = vmul.f32 %v5310_v35, %v2297_v12 }
 0x880   :  { %v2441_v46 = vpack.c.bf16 %v2402_v49, %v2401_v27  ;;  %v2405_v11 = vadd.f32 %v5332_v9, %v2366_v62  ;;  %v2406_v21 = vadd.f32 %v5332_v9, %v2367_v30  ;;  %v2369_v26 = vmul.f32 %v5315_v57, %v2330_v32 }
 0x881   :  { %v2442_v37 = vpack.c.bf16 %v2404_v60, %v2403_v43  ;;  %v2407_v10 = vadd.f32 %v5332_v9, %v2368_v2  ;;  %v2332_v52 = vmul.f32 %v5310_v35, %v2298_v39  ;;  %v2370_v5 = vmul.f32 %v5315_v57, %v2331_v54 }
 0x882   :  { %v2443_v29 = vpack.c.bf16 %v2406_v21, %v2405_v11  ;;  %v2408_v12 = vadd.f32 %v5332_v9, %v2369_v26  ;;  %v2333_v42 = vmul.f32 %v5310_v35, %v2299_v36  ;;  %v2334_v22 = vmul.f32 %v5310_v35, %v2300_v63 }
 0x883   :  { %v2371_v3 = vmul.f32 %v5315_v57, %v2332_v52  ;;  %v2409_v50 = vadd.f32 %v5332_v9, %v2370_v5  ;;  %v2335_v39 = vmul.f32 %v5310_v35, %v2301_v14  ;;  %v2336_v48 = vmul.f32 %v5310_v35, %v2302_v55 }
 0x884   :  { %v2444_v36 = vpack.c.bf16 %v2408_v12, %v2407_v10  ;;  %v2372_v23 = vmul.f32 %v5315_v57, %v2333_v42  ;;  %v2373_v15 = vmul.f32 %v5315_v57, %v2334_v22  ;;  %v2337_v63 = vmul.f32 %v5310_v35, %v2303_v17 }
 0x885   :  { %v2410_v0 = vadd.f32 %v5332_v9, %v2371_v3  ;;  %v2374_v33 = vmul.f32 %v5315_v57, %v2335_v39  ;;  %v2375_v14 = vmul.f32 %v5315_v57, %v2336_v48  ;;  %v2338_v59 = vmul.f32 %v5310_v35, %v2304_v41 }
 0x886   :  { %3730 = vmatmul.mubr.bf16.gmra.mrb[216].mxu1 %v2438_v20  ;;  %v2411_v55 = vadd.f32 %v5332_v9, %v2372_v23  ;;  %v2412_v34 = vadd.f32 %v5332_v9, %v2373_v15  ;;  %v2376_v19 = vmul.f32 %v5315_v57, %v2337_v63  ;;  %v2671_v20 = vld [vmem:[#allocation12 + $0x70] sm:$0xff] }
 0x887   :  { %3733 = vmatprep.mubr.bf16.mxu1 %v2439_v45  ;;  %v2445_v17 = vpack.c.bf16 %v2410_v0, %v2409_v50  ;;  %v2413_v44 = vadd.f32 %v5332_v9, %v2374_v33  ;;  %v2414_v40 = vadd.f32 %v5332_v9, %v2375_v14  ;;  %v2377_v7 = vmul.f32 %v5315_v57, %v2338_v59 }
 0x888   :  { %v2446_v51 = vpack.c.bf16 %v2412_v34, %v2411_v55  ;;  %v2415_v47 = vadd.f32 %v5332_v9, %v2376_v19  ;;  %v2695_v57 = vpack.c.bf16 %v2670_v38, %v2669_v61  ;;  %v2696_v16 = vpack.c.bf16 %v2672_v1, %v2671_v20 }
 0x889   :  { %v2447_v56 = vpack.c.bf16 %v2414_v40, %v2413_v44  ;;  %v2416_v41 = vadd.f32 %v5332_v9, %v2377_v7  ;;  %v5474_v9 = vld [vmem:[%s5655_s14] ss:$0 sm:$0xff] }
 0x88a   :  { %3765 = vmatprep.subr.bf16.mxu0 %v2695_v57 }
 0x88b   :  { %v2448_v35 = vpack.c.bf16 %v2416_v41, %v2415_v47  ;;  %3766 = vmatpush3.bf16.msra.mxu0 %v2695_v57 }
 0x88c   :  { %3767 = vmatprep.subr.bf16.mxu0 %v2696_v16 }
 0x88e   :  { %3734 = vmatmul.mubr.bf16.gmra.mrb[220].mxu1 %v2440_v31 }
 0x88f   :  { %3737 = vmatprep.mubr.bf16.mxu1 %v2441_v46  ;;  %3768 = vmatpush3.bf16.msra.mxu0 %v2696_v16 }
 0x896   :  { %3738 = vmatmul.mubr.bf16.gmra.mrb[224].mxu1 %v2442_v37 }
 0x897   :  { %3741 = vmatprep.mubr.bf16.mxu1 %v2443_v29 }
 0x89e   :  { %3742 = vmatmul.mubr.bf16.gmra.mrb[228].mxu1 %v2444_v36 }
 0x89f   :  { %3745 = vmatprep.mubr.bf16.mxu1 %v2445_v17 }
 0x8a6   :  { %3746 = vmatmul.mubr.bf16.gmra.mrb[232].mxu1 %v2446_v51 }
 0x8a7   :  { %3749 = vmatprep.mubr.bf16.mxu1 %v2447_v56 }
 0x8ae   :  { %3750 = vmatmul.mubr.bf16.gmra.mrb[236].mxu1 %v2448_v35 }
 0x949   :  { %v3723_v58 = vpop.f32.mrb[208].mxu1 }
 0x94a   :  { %v2507_v45 = vadd.f32 %v3723_v58, %v5474_v9  ;;  %v2498_v4 = vpop.f32.mrb[209].mxu1 }
 0x94b   :  { %v2499_v13 = vadd.f32 %v5474_v9, %v2498_v4  ;;  %v3724_v53 = vpop.f32.mrb[210].mxu1 }
 0x94c   :  { %v2510_v31 = vadd.f32 %v3724_v53, %v5474_v9  ;;  %v2501_v24 = vpop.f32.mrb[211].mxu1  ;;  %v2627_v28 = vmax.f32 %v2507_v45, 0.0 }
 0x94d   :  { %v2502_v25 = vadd.f32 %v5474_v9, %v2501_v24  ;;  %v2625_v8 = vmax.f32 %v2499_v13, 0.0 }
 0x94e   :  { %v2628_v27 = vmax.f32 %v2510_v31, 0.0 }
 0x94f   :  { %v2626_v18 = vmax.f32 %v2502_v25, 0.0 }
 0x950   :  { %v2674_v6 = vpack.c.bf16 %v2628_v27, %v2627_v28 }
 0x951   :  { %v2673_v49 = vpack.c.bf16 %v2626_v18, %v2625_v8  ;;  %v3727_v62 = vpop.f32.mrb[212].mxu1 }
 0x952   :  { %v2523_v30 = vadd.f32 %v3727_v62, %v5474_v9  ;;  %v2514_v32 = vpop.f32.mrb[213].mxu1 }
 0x953   :  { %v2515_v43 = vadd.f32 %v5474_v9, %v2514_v32  ;;  %v3728_v60 = vpop.f32.mrb[214].mxu1  ;;  %3769 = vmatprep.mubr.bf16.mxu0 %v2673_v49 }
 0x954   :  { %v2526_v2 = vadd.f32 %v3728_v60, %v5474_v9  ;;  %v2517_v54 = vpop.f32.mrb[215].mxu1  ;;  %3770 = vmatmul.mubr.bf16.vlgmr.msra.gmra.mrb[208].mxu0 %v2674_v6  ;;  %v2631_v11 = vmax.f32 %v2523_v30, 0.0 }
 0x955   :  { %v2518_v46 = vadd.f32 %v5474_v9, %v2517_v54  ;;  %v2629_v26 = vmax.f32 %v2515_v43, 0.0 }
 0x956   :  { %v2632_v21 = vmax.f32 %v2526_v2, 0.0 }
 0x957   :  { %v2630_v37 = vmax.f32 %v2518_v46, 0.0 }
 0x958   :  { %v2676_v10 = vpack.c.bf16 %v2632_v21, %v2631_v11 }
 0x959   :  { %v2675_v52 = vpack.c.bf16 %v2630_v37, %v2629_v26  ;;  %v3731_v5 = vpop.f32.mrb[216].mxu1 }
 0x95a   :  { %v2539_v29 = vadd.f32 %v3731_v5, %v5474_v9  ;;  %v2530_v12 = vpop.f32.mrb[217].mxu1 }
 0x95b   :  { %v2531_v42 = vadd.f32 %v5474_v9, %v2530_v12  ;;  %v3732_v22 = vpop.f32.mrb[218].mxu1  ;;  %3773 = vmatprep.mubr.bf16.mxu0 %v2675_v52 }
 0x95c   :  { %v2542_v3 = vadd.f32 %v3732_v22, %v5474_v9  ;;  %v2533_v50 = vpop.f32.mrb[219].mxu1  ;;  %3774 = vmatmul.mubr.bf16.gmra.mrb[212].mxu0 %v2676_v10  ;;  %v2635_v48 = vmax.f32 %v2539_v29, 0.0 }
 0x95d   :  { %v2534_v39 = vadd.f32 %v5474_v9, %v2533_v50  ;;  %v2633_v23 = vmax.f32 %v2531_v42, 0.0 }
 0x95e   :  { %v2636_v36 = vmax.f32 %v2542_v3, 0.0 }
 0x95f   :  { %v2634_v15 = vmax.f32 %v2534_v39, 0.0 }
 0x960   :  { %v2678_v63 = vpack.c.bf16 %v2636_v36, %v2635_v48 }
 0x961   :  { %v2677_v0 = vpack.c.bf16 %v2634_v15, %v2633_v23  ;;  %v3735_v33 = vpop.f32.mrb[220].mxu1 }
 0x962   :  { %v2555_v14 = vadd.f32 %v3735_v33, %v5474_v9  ;;  %v2546_v59 = vpop.f32.mrb[221].mxu1 }
 0x963   :  { %v2547_v55 = vadd.f32 %v5474_v9, %v2546_v59  ;;  %v3736_v34 = vpop.f32.mrb[222].mxu1  ;;  %3777 = vmatprep.mubr.bf16.mxu0 %v2677_v0 }
 0x964   :  { %v2558_v19 = vadd.f32 %v3736_v34, %v5474_v9  ;;  %v2549_v17 = vpop.f32.mrb[223].mxu1  ;;  %3778 = vmatmul.mubr.bf16.gmra.mrb[216].mxu0 %v2678_v63  ;;  %v2639_v40 = vmax.f32 %v2555_v14, 0.0 }
 0x965   :  { %v2550_v44 = vadd.f32 %v5474_v9, %v2549_v17  ;;  %v2637_v51 = vmax.f32 %v2547_v55, 0.0 }
 0x966   :  { %v2640_v7 = vmax.f32 %v2558_v19, 0.0 }
 0x967   :  { %v2638_v47 = vmax.f32 %v2550_v44, 0.0  ;;  %v5511_v44 = vld [vmem:[%s5657_s16] ss:$0 sm:$0xff] }
 0x968   :  { %v2680_v56 = vpack.c.bf16 %v2640_v7, %v2639_v40 }
 0x969   :  { %v2679_v41 = vpack.c.bf16 %v2638_v47, %v2637_v51  ;;  %v3739_v35 = vpop.f32.mrb[224].mxu1 }
 0x96a   :  { %v2571_v61 = vadd.f32 %v3739_v35, %v5474_v9  ;;  %v2562_v38 = vpop.f32.mrb[225].mxu1 }
 0x96b   :  { %v2563_v20 = vadd.f32 %v5474_v9, %v2562_v38  ;;  %v3740_v57 = vpop.f32.mrb[226].mxu1  ;;  %3781 = vmatprep.mubr.bf16.mxu0 %v2679_v41 }
 0x96c   :  { %v2574_v1 = vadd.f32 %v3740_v57, %v5474_v9  ;;  %v2565_v16 = vpop.f32.mrb[227].mxu1  ;;  %3782 = vmatmul.mubr.bf16.gmra.mrb[220].mxu0 %v2680_v56  ;;  %v2643_v45 = vmax.f32 %v2571_v61, 0.0 }
 0x96d   :  { %v2566_v58 = vadd.f32 %v5474_v9, %v2565_v16  ;;  %v2641_v13 = vmax.f32 %v2563_v20, 0.0 }
 0x96e   :  { %v2644_v4 = vmax.f32 %v2574_v1, 0.0 }
 0x96f   :  { %v2642_v53 = vmax.f32 %v2566_v58, 0.0 }
 0x970   :  { %v2682_v31 = vpack.c.bf16 %v2644_v4, %v2643_v45 }
 0x971   :  { %v2681_v24 = vpack.c.bf16 %v2642_v53, %v2641_v13  ;;  %v3743_v25 = vpop.f32.mrb[228].mxu1 }
 0x972   :  { %v2587_v28 = vadd.f32 %v3743_v25, %v5474_v9  ;;  %v2578_v27 = vpop.f32.mrb[229].mxu1 }
 0x973   :  { %v2579_v8 = vadd.f32 %v5474_v9, %v2578_v27  ;;  %v3744_v18 = vpop.f32.mrb[230].mxu1  ;;  %3785 = vmatprep.mubr.bf16.mxu0 %v2681_v24 }
 0x974   :  { %v2590_v6 = vadd.f32 %v3744_v18, %v5474_v9  ;;  %v2581_v49 = vpop.f32.mrb[231].mxu1  ;;  %3786 = vmatmul.mubr.bf16.gmra.mrb[224].mxu0 %v2682_v31  ;;  %v2647_v30 = vmax.f32 %v2587_v28, 0.0 }
 0x975   :  { %v2582_v62 = vadd.f32 %v5474_v9, %v2581_v49  ;;  %v2645_v43 = vmax.f32 %v2579_v8, 0.0 }
 0x976   :  { %v2648_v32 = vmax.f32 %v2590_v6, 0.0 }
 0x977   :  { %v2646_v60 = vmax.f32 %v2582_v62, 0.0 }
 0x978   :  { %v2684_v2 = vpack.c.bf16 %v2648_v32, %v2647_v30 }
 0x979   :  { %v2683_v54 = vpack.c.bf16 %v2646_v60, %v2645_v43  ;;  %v3747_v46 = vpop.f32.mrb[232].mxu1 }
 0x97a   :  { %v2603_v11 = vadd.f32 %v3747_v46, %v5474_v9  ;;  %v2594_v21 = vpop.f32.mrb[233].mxu1 }
 0x97b   :  { %v2595_v26 = vadd.f32 %v5474_v9, %v2594_v21  ;;  %v3748_v37 = vpop.f32.mrb[234].mxu1  ;;  %3789 = vmatprep.mubr.bf16.mxu0 %v2683_v54 }
 0x97c   :  { %v2606_v10 = vadd.f32 %v3748_v37, %v5474_v9  ;;  %v2597_v52 = vpop.f32.mrb[235].mxu1  ;;  %3790 = vmatmul.mubr.bf16.gmra.mrb[228].mxu0 %v2684_v2  ;;  %v2651_v29 = vmax.f32 %v2603_v11, 0.0 }
 0x97d   :  { %v2598_v5 = vadd.f32 %v5474_v9, %v2597_v52  ;;  %v2649_v42 = vmax.f32 %v2595_v26, 0.0 }
 0x97e   :  { %v2652_v12 = vmax.f32 %v2606_v10, 0.0 }
 0x97f   :  { %v2650_v22 = vmax.f32 %v2598_v5, 0.0 }
 0x980   :  { %v2686_v3 = vpack.c.bf16 %v2652_v12, %v2651_v29 }
 0x981   :  { %v2685_v50 = vpack.c.bf16 %v2650_v22, %v2649_v42  ;;  %v3751_v39 = vpop.f32.mrb[236].mxu1 }
 0x982   :  { %v2619_v48 = vadd.f32 %v3751_v39, %v5474_v9  ;;  %v2610_v36 = vpop.f32.mrb[237].mxu1 }
 0x983   :  { %v2611_v23 = vadd.f32 %v5474_v9, %v2610_v36  ;;  %v3752_v15 = vpop.f32.mrb[238].mxu1  ;;  %3793 = vmatprep.mubr.bf16.mxu0 %v2685_v50 }
 0x984   :  { %v2622_v63 = vadd.f32 %v3752_v15, %v5474_v9  ;;  %v2613_v0 = vpop.f32.mrb[239].mxu1  ;;  %3794 = vmatmul.mubr.bf16.gmra.mrb[232].mxu0 %v2686_v3  ;;  %v2655_v14 = vmax.f32 %v2619_v48, 0.0 }
 0x985   :  { %v2614_v33 = vadd.f32 %v5474_v9, %v2613_v0  ;;  %v2653_v55 = vmax.f32 %v2611_v23, 0.0 }
 0x986   :  { %v2656_v59 = vmax.f32 %v2622_v63, 0.0 }
 0x987   :  { %v2654_v34 = vmax.f32 %v2614_v33, 0.0 }
 0x988   :  { %v2688_v19 = vpack.c.bf16 %v2656_v59, %v2655_v14 }
 0x989   :  { %v2687_v17 = vpack.c.bf16 %v2654_v34, %v2653_v55 }
 0x98b   :  { %3797 = vmatprep.mubr.bf16.mxu0 %v2687_v17 }
 0x98c   :  { %3798 = vmatmul.mubr.bf16.gmra.mrb[236].mxu0 %v2688_v19 }
 0xa27   :  { %v3771_v40 = vpop.f32.mrb[208].mxu0 }
 0xa28   :  { %v2747_v7 = vadd.f32 %v3771_v40, %v5511_v44  ;;  %v2738_v51 = vpop.f32.mrb[209].mxu0 }
 0xa29   :  { %v2739_v47 = vadd.f32 %v5511_v44, %v2738_v51  ;;  %v3772_v9 = vpop.f32.mrb[210].mxu0 }
 0xa2a   :  { %2867 = vst [vmem:[%s5854_s26 + $0x10] sm:$0xff] %v2747_v7  ;;  %v2750_v56 = vadd.f32 %v3772_v9, %v5511_v44  ;;  %v2741_v41 = vpop.f32.mrb[211].mxu0 }
 0xa2b   :  { %2865 = vst [vmem:[%s5854_s26] sm:$0xff] %v2739_v47  ;;  %v2742_v35 = vadd.f32 %v5511_v44, %v2741_v41 }
 0xa2c   :  { %2868 = vst [vmem:[%s5854_s26 + $0x18] sm:$0xff] %v2750_v56 }
 0xa2d   :  { %2866 = vst [vmem:[%s5854_s26 + $0x8] sm:$0xff] %v2742_v35 }
 0xa2f   :  { %v3775_v61 = vpop.f32.mrb[212].mxu0 }
 0xa30   :  { %v2763_v38 = vadd.f32 %v3775_v61, %v5511_v44  ;;  %v2754_v20 = vpop.f32.mrb[213].mxu0 }
 0xa31   :  { %v2755_v57 = vadd.f32 %v5511_v44, %v2754_v20  ;;  %v3776_v1 = vpop.f32.mrb[214].mxu0 }
 0xa32   :  { %2871 = vst [vmem:[%s5854_s26 + $0x30] sm:$0xff] %v2763_v38  ;;  %v2766_v16 = vadd.f32 %v3776_v1, %v5511_v44  ;;  %v2757_v58 = vpop.f32.mrb[215].mxu0 }
 0xa33   :  { %2869 = vst [vmem:[%s5854_s26 + $0x20] sm:$0xff] %v2755_v57  ;;  %v2758_v45 = vadd.f32 %v5511_v44, %v2757_v58 }
 0xa34   :  { %2872 = vst [vmem:[%s5854_s26 + $0x38] sm:$0xff] %v2766_v16 }
 0xa35   :  { %2870 = vst [vmem:[%s5854_s26 + $0x28] sm:$0xff] %v2758_v45 }
 0xa37   :  { %v3779_v4 = vpop.f32.mrb[216].mxu0 }
 0xa38   :  { %v2779_v13 = vadd.f32 %v3779_v4, %v5511_v44  ;;  %v2770_v53 = vpop.f32.mrb[217].mxu0 }
 0xa39   :  { %v2771_v31 = vadd.f32 %v5511_v44, %v2770_v53  ;;  %v3780_v24 = vpop.f32.mrb[218].mxu0 }
 0xa3a   :  { %2875 = vst [vmem:[%s5854_s26 + $0x50] sm:$0xff] %v2779_v13  ;;  %v2782_v25 = vadd.f32 %v3780_v24, %v5511_v44  ;;  %v2773_v28 = vpop.f32.mrb[219].mxu0 }
 0xa3b   :  { %2873 = vst [vmem:[%s5854_s26 + $0x40] sm:$0xff] %v2771_v31  ;;  %v2774_v27 = vadd.f32 %v5511_v44, %v2773_v28 }
 0xa3c   :  { %2876 = vst [vmem:[%s5854_s26 + $0x58] sm:$0xff] %v2782_v25 }
 0xa3d   :  { %2874 = vst [vmem:[%s5854_s26 + $0x48] sm:$0xff] %v2774_v27 }
 0xa3f   :  { %v3783_v8 = vpop.f32.mrb[220].mxu0 }
 0xa40   :  { %v2795_v18 = vadd.f32 %v3783_v8, %v5511_v44  ;;  %v2786_v6 = vpop.f32.mrb[221].mxu0 }
 0xa41   :  { %v2787_v49 = vadd.f32 %v5511_v44, %v2786_v6  ;;  %v3784_v62 = vpop.f32.mrb[222].mxu0 }
 0xa42   :  { %2879 = vst [vmem:[%s5854_s26 + $0x70] sm:$0xff] %v2795_v18  ;;  %v2798_v30 = vadd.f32 %v3784_v62, %v5511_v44  ;;  %v2789_v32 = vpop.f32.mrb[223].mxu0 }
 0xa43   :  { %2877 = vst [vmem:[%s5854_s26 + $0x60] sm:$0xff] %v2787_v49  ;;  %v2790_v43 = vadd.f32 %v5511_v44, %v2789_v32 }
 0xa44   :  { %2880 = vst [vmem:[%s5854_s26 + $0x78] sm:$0xff] %v2798_v30 }
 0xa45   :  { %2878 = vst [vmem:[%s5854_s26 + $0x68] sm:$0xff] %v2790_v43 }
 0xa47   :  { %v3787_v60 = vpop.f32.mrb[224].mxu0 }
 0xa48   :  { %v2811_v2 = vadd.f32 %v3787_v60, %v5511_v44  ;;  %v2802_v54 = vpop.f32.mrb[225].mxu0 }
 0xa49   :  { %v2803_v46 = vadd.f32 %v5511_v44, %v2802_v54  ;;  %v3788_v11 = vpop.f32.mrb[226].mxu0 }
 0xa4a   :  { %2883 = vst [vmem:[%s5854_s26 + $0x90] sm:$0xff] %v2811_v2  ;;  %v2814_v21 = vadd.f32 %v3788_v11, %v5511_v44  ;;  %v2805_v26 = vpop.f32.mrb[227].mxu0 }
 0xa4b   :  { %2881 = vst [vmem:[%s5854_s26 + $0x80] sm:$0xff] %v2803_v46  ;;  %v2806_v37 = vadd.f32 %v5511_v44, %v2805_v26 }
 0xa4c   :  { %2884 = vst [vmem:[%s5854_s26 + $0x98] sm:$0xff] %v2814_v21 }
 0xa4d   :  { %2882 = vst [vmem:[%s5854_s26 + $0x88] sm:$0xff] %v2806_v37 }
 0xa4f   :  { %v3791_v10 = vpop.f32.mrb[228].mxu0 }
 0xa50   :  { %v2827_v52 = vadd.f32 %v3791_v10, %v5511_v44  ;;  %v2818_v5 = vpop.f32.mrb[229].mxu0 }
 0xa51   :  { %v2819_v29 = vadd.f32 %v5511_v44, %v2818_v5  ;;  %v3792_v12 = vpop.f32.mrb[230].mxu0 }
 0xa52   :  { %2887 = vst [vmem:[%s5854_s26 + $0xb0] sm:$0xff] %v2827_v52  ;;  %v2830_v42 = vadd.f32 %v3792_v12, %v5511_v44  ;;  %v2821_v22 = vpop.f32.mrb[231].mxu0 }
 0xa53   :  { %2885 = vst [vmem:[%s5854_s26 + $0xa0] sm:$0xff] %v2819_v29  ;;  %v2822_v3 = vadd.f32 %v5511_v44, %v2821_v22 }
 0xa54   :  { %2888 = vst [vmem:[%s5854_s26 + $0xb8] sm:$0xff] %v2830_v42 }
 0xa55   :  { %2886 = vst [vmem:[%s5854_s26 + $0xa8] sm:$0xff] %v2822_v3 }
 0xa57   :  { %v3795_v50 = vpop.f32.mrb[232].mxu0 }
 0xa58   :  { %v2843_v39 = vadd.f32 %v3795_v50, %v5511_v44  ;;  %v2834_v48 = vpop.f32.mrb[233].mxu0 }
 0xa59   :  { %v2835_v36 = vadd.f32 %v5511_v44, %v2834_v48  ;;  %v3796_v23 = vpop.f32.mrb[234].mxu0 }
 0xa5a   :  { %2891 = vst [vmem:[%s5854_s26 + $0xd0] sm:$0xff] %v2843_v39  ;;  %v2846_v15 = vadd.f32 %v3796_v23, %v5511_v44  ;;  %v2837_v63 = vpop.f32.mrb[235].mxu0 }
 0xa5b   :  { %2889 = vst [vmem:[%s5854_s26 + $0xc0] sm:$0xff] %v2835_v36  ;;  %v2838_v0 = vadd.f32 %v5511_v44, %v2837_v63 }
 0xa5c   :  { %2892 = vst [vmem:[%s5854_s26 + $0xd8] sm:$0xff] %v2846_v15 }
 0xa5d   :  { %2890 = vst [vmem:[%s5854_s26 + $0xc8] sm:$0xff] %v2838_v0 }
 0xa5f   :  { %v3799_v33 = vpop.f32.mrb[236].mxu0 }
 0xa60   :  { %v2859_v14 = vadd.f32 %v3799_v33, %v5511_v44  ;;  %v2850_v59 = vpop.f32.mrb[237].mxu0 }
 0xa61   :  { %v2851_v55 = vadd.f32 %v5511_v44, %v2850_v59  ;;  %v3800_v34 = vpop.f32.mrb[238].mxu0 }
 0xa62   :  { %2895 = vst [vmem:[%s5854_s26 + $0xf0] sm:$0xff] %v2859_v14  ;;  %v2862_v19 = vadd.f32 %v3800_v34, %v5511_v44  ;;  %v2853_v17 = vpop.f32.mrb[239].mxu0 }
 0xa63   :  { %2893 = vst [vmem:[%s5854_s26 + $0xe0] sm:$0xff] %v2851_v55  ;;  %v2854_v40 = vadd.f32 %v5511_v44, %v2853_v17 }
 0xa64   :  { %2896 = vst [vmem:[%s5854_s26 + $0xf8] sm:$0xff] %v2862_v19 }
 0xa65   :  { %2894 = vst [vmem:[%s5854_s26 + $0xe8] sm:$0xff] %v2854_v40 }
 0xa66   :  { %2901 = vsyncpa [#allocation3], 1 }
 0xa67   :  { %2902 = vsyncpa [#allocation5], 1 }
 0xa68   :  { %2903 = vsyncpa [#allocation8], 1 }
 0xa69   :  { %2904 = vsyncpa [#allocation11], 1 }

</bundles_post_ra>
